<compile_context>
chip_gen: v6e
topology: v6e:2x2x1
jax: 0.10.0
libtpu: 0.0.40
codegen_flags: <defaults>
</compile_context>

<pallas_src>
import functools

import jax
import jax.numpy as jnp
from jax.experimental import pallas as pl
from jax.experimental.pallas import tpu as pltpu


# ---------------------------------------------------------------------------
# Kernel
# ---------------------------------------------------------------------------
def pixelnet3b_kernel(
    x_ref,        # (Bb, HW, Cin_pad) bf16
    w_sh_ref,     # (Cin_pad, C)      bf16   folded shallow weight
    b_sh_ref,     # (1, C)            f32    folded shallow bias
    w_att_ref,    # (C, 3)            bf16   fused attention-logit weight
    w_t1_ref,     # (3C, C)           bf16   stacked transformer conv-1 weights
    b_t1_ref,     # (3, C)            f32
    g_ln_ref,     # (3, C)            f32    LayerNorm gain
    b_ln_ref,     # (3, C)            f32    LayerNorm bias
    w_t2fg_ref,   # (3C, C)           bf16   aw_t2[i] @ (W_i * wbn_s), stacked
    w_t_out_ref,  # (C, C)            bf16   I + (W0+W1+W2)*wbn_s   (residual folded in)
    b_out_ref,    # (1, C)            f32    b_W*wbn_s + wbn_b + sum_i ab_t2[i]@(W_i*wbn_s)
    out_ref,      # (Bb, HW, C)       out dtype
):
    Bb, HW, Cin = x_ref.shape
    C = w_sh_ref.shape[1]
    rows = Bb * HW
    bf16, f32 = jnp.bfloat16, jnp.float32

    # flatten the block batch into the row (sublane) axis for the big matmuls
    x = x_ref[...].reshape(rows, Cin)

    # ---- folded ShallowResNet: one matmul + bias (t kept only as bf16) ----
    t_bf = (jnp.dot(x, w_sh_ref[...], preferred_element_type=f32)
            + b_sh_ref[...]).astype(bf16)                                 # (rows, C)

    # ---- fused attention logits, all 3 heads (bias dropped: softmax-invariant) ----
    logits = jnp.dot(t_bf, w_att_ref[...], preferred_element_type=f32)    # (rows, 3)

    # ---- folded "cat + 1x1 conv W + BN + residual": residual is inside w_t_out ----
    acc = jnp.dot(t_bf, w_t_out_ref[...], preferred_element_type=f32)     # (rows, C)

    dn = (((0,), (0,)), ((), ()))           # contract dim 0 of both operands
    ones_col = jnp.ones((HW, 1), bf16)
    head_col = jax.lax.broadcasted_iota(jnp.int32, (3, 1), 0)             # [[0],[1],[2]]
    b_t1 = b_t1_ref[...]
    g_ln = g_ln_ref[...]
    b_ln = b_ln_ref[...]
    b_out = b_out_ref[...]

    def block_diag(m):
        # (3, C) -> (3, 3C): row i placed in column block i (lane-aligned concat)
        mb = m.astype(bf16)
        return jnp.concatenate(
            [mb * (head_col == j).astype(bf16) for j in range(3)], axis=1)

    # per-batch-segment attention pooling + transformer heads + epilogue
    for b in range(Bb):
        sl = slice(b * HW, (b + 1) * HW)

        # softmax over the spatial axis; normalization deferred past the pooling matmul
        lg = logits[sl]                                                    # (HW, 3)
        e = jnp.exp(lg - jnp.max(lg, axis=0, keepdims=True)).astype(bf16)  # (HW, 3)
        t_seg = t_bf[sl]                                                   # (HW, C)
        feat_u = jax.lax.dot_general(e, t_seg, dn,
                                     preferred_element_type=f32)           # (3, C)
        den = jax.lax.dot_general(e, ones_col, dn,
                                  preferred_element_type=f32)              # (3, 1)
        feat = feat_u * pl.reciprocal(den, approx=True)                    # (3, C)

        # both transformer convs for all 3 heads: two block-diagonal matmuls
        h = jnp.dot(block_diag(feat), w_t1_ref[...],
                    preferred_element_type=f32) + b_t1                     # (3, C)
        mu = jnp.mean(h, axis=1, keepdims=True)
        var = jnp.mean((h - mu) ** 2, axis=1, keepdims=True)
        h = (h - mu) * jax.lax.rsqrt(var + 1e-5) * g_ln + b_ln
        h = jnp.maximum(h, 0.0)
        fg = jnp.dot(block_diag(h), w_t2fg_ref[...],
                     preferred_element_type=f32)                           # (3, C)

        # pre-summed (1, C) bias row; single broadcast-add epilogue
        bias = fg[0:1] + fg[1:2] + fg[2:3] + b_out                         # (1, C)
        out_ref[b] = (acc[sl] + bias).astype(out_ref.dtype)


# ---------------------------------------------------------------------------
# Wrapper
# ---------------------------------------------------------------------------
_WEIGHT_ORDER = [
    "w_sh", "b_sh", "w_att",
    "w_t1", "b_t1", "g_ln", "b_ln", "w_t2fg",
    "w_t_out", "b_out",
]


def _single_tensorcore_device():
    """True for 1-TensorCore chips (v5e / v6e); False/unknown -> keep batch grid."""
    try:
        kind = jax.devices()[0].device_kind.lower()
    except Exception:
        return False
    return any(tag in kind for tag in ("lite", "v5e", "v6e"))


def pixelnet3b(x, folded, *, merge_batch=None, out_dtype=jnp.bfloat16):
    """x: (B, HW, Cin) f32; folded: dict from fold_params(). Returns (B, HW, C)."""
    B, HW, Cin = x.shape
    Cin_pad, C = folded["w_sh"].shape

    # pad input channels to a full lane width and cast to bf16 (halves x DMA)
    if Cin_pad > Cin:
        x = jnp.pad(x, ((0, 0), (0, 0), (0, Cin_pad - Cin)))
    x = x.astype(jnp.bfloat16)

    # generation-aware batch handling:
    #   single-TC chips -> merge the batch into one grid step (bigger matmul M,
    #   one fewer grid step); megacore chips -> keep B as a parallel grid axis.
    if merge_batch is None:
        merge_batch = _single_tensorcore_device()
    bb = B if merge_batch else 1

    weight_args = [folded[k] for k in _WEIGHT_ORDER]

    def full_spec(arr):
        nd = arr.ndim
        # constant index_map -> weights fetched once and stay resident across the grid
        return pl.BlockSpec(arr.shape, lambda i, _nd=nd: (0,) * _nd)

    in_specs = [pl.BlockSpec((bb, HW, Cin_pad), lambda i: (i, 0, 0))]
    in_specs += [full_spec(a) for a in weight_args]
    out_spec = pl.BlockSpec((bb, HW, C), lambda i: (i, 0, 0))

    return pl.pallas_call(
        pixelnet3b_kernel,
        out_shape=jax.ShapeDtypeStruct((B, HW, C), out_dtype),
        grid_spec=pltpu.PrefetchScalarGridSpec(
            num_scalar_prefetch=0,
            grid=(B // bb,),
            in_specs=in_specs,
            out_specs=out_spec,
        ),
        compiler_params=pltpu.CompilerParams(
            dimension_semantics=("parallel",),
        ),
    )(x, *weight_args)


# ---------------------------------------------------------------------------
# Parameter folding (exact algebra in f32, big matrices then cast to bf16)
# ---------------------------------------------------------------------------
def fold_params(p, cin_pad=128):
    bf = jnp.bfloat16
    C = p["bn3_s"].shape[-1]

    # ShallowResNet: conv1x1 -> BN -> conv1x1 -> BN (all affine) -> single matmul
    a = p["w_c1"] * p["bn1_s"]                    # (cin, cin) column scale
    bm = p["w_c3"] * p["bn3_s"]                   # (cin, C)
    w_sh = a @ bm                                 # (cin, C)
    b_sh = p["bn1_b"] @ bm + p["bn3_b"]           # (1, C)
    cin = w_sh.shape[0]
    if cin_pad > cin:
        w_sh = jnp.pad(w_sh, ((0, cin_pad - cin), (0, 0)))

    # fused attention-logit weight (bias dropped: softmax over HW is invariant)
    w_att = jnp.transpose(p["aw_att"][:, :, 0])   # (C, 3)

    # final stage: out = t @ (I + sum_i Wt_i) + sum_i fg_i @ Wt_i + b_out,
    # with Wt_i = w_W[iC:(i+1)C] * wbn_s.  Residual folded into w_t_out; each
    # head's second transformer conv folded into Wt_i (-> w_t2fg, b_out).
    w_tilde = p["w_W"] * p["wbn_s"]               # (3C, C)
    w_t_out = (jnp.eye(C, dtype=w_tilde.dtype)
               + w_tilde[0:C] + w_tilde[C:2 * C] + w_tilde[2 * C:3 * C])
    w_t2fg = jnp.concatenate(
        [p["aw_t2"][i] @ w_tilde[i * C:(i + 1) * C] for i in range(3)], axis=0)
    b_out = p["b_W"] * p["wbn_s"] + p["wbn_b"]
    for i in range(3):
        b_out = b_out + p["ab_t2"][i] @ w_tilde[i * C:(i + 1) * C]

    return {
        "w_sh": w_sh.astype(bf),
        "b_sh": b_sh,
        "w_att": w_att.astype(bf),
        "w_t1": p["aw_t1"].reshape(3 * C, C).astype(bf),
        "b_t1": p["ab_t1"].reshape(3, C),
        "g_ln": p["ag_ln"].reshape(3, C),
        "b_ln": p["ab_ln"].reshape(3, C),
        "w_t2fg": w_t2fg.astype(bf),
        "w_t_out": w_t_out.astype(bf),
        "b_out": b_out,
    }


# ---------------------------------------------------------------------------
# Pure-JAX reference: ORIGINAL (unfolded) semantics in f32
# ---------------------------------------------------------------------------
def pixelnet3b_ref(x, p):
    def one_batch(xb):
        h1 = xb @ p["w_c1"]
        h1 = h1 * p["bn1_s"] + p["bn1_b"]
        t = h1 @ p["w_c3"]
        t = t * p["bn3_s"] + p["bn3_b"]
        branches = []
        for i in range(3):
            logits = t @ p["aw_att"][i] + p["ab_att"][i]
            pr = jax.nn.softmax(logits, axis=0)
            feat = jnp.sum(t * pr, axis=0, keepdims=True)
            h = feat @ p["aw_t1"][i] + p["ab_t1"][i]
            mu = jnp.mean(h, axis=1, keepdims=True)
            var = jnp.mean((h - mu) ** 2, axis=1, keepdims=True)
            h = (h - mu) * jax.lax.rsqrt(var + 1e-5) * p["ag_ln"][i] + p["ab_ln"][i]
            h = jnp.maximum(h, 0.0)
            fg = h @ p["aw_t2"][i] + p["ab_t2"][i]
            branches.append(t + fg)
        cat = jnp.concatenate(branches, axis=1)
        acc = cat @ p["w_W"] + p["b_W"]
        acc = acc * p["wbn_s"] + p["wbn_b"]
        return acc + t
    return jax.vmap(one_batch)(x)


# ---------------------------------------------------------------------------
# Deterministic parameter construction
# ---------------------------------------------------------------------------
def make_params(key, cin=64, c=256):
    ks = jax.random.split(key, 20)
    n = functools.partial(jax.random.normal, dtype=jnp.float32)
    s = 0.05  # small scale keeps softmax / layernorm numerically tame
    return {
        # ShallowResNet (BN folded to inference-mode scale/shift)
        "w_c1": n(ks[0], (cin, cin)) * s,
        "bn1_s": 1.0 + n(ks[1], (1, cin)) * s,
        "bn1_b": n(ks[2], (1, cin)) * s,
        "w_c3": n(ks[3], (cin, c)) * s,
        "bn3_s": 1.0 + n(ks[4], (1, c)) * s,
        "bn3_b": n(ks[5], (1, c)) * s,
        # Three AttentionBlocks, parameters stacked on a leading dim of 3
        "aw_att": n(ks[6], (3, c, 1)) * s,
        "ab_att": n(ks[7], (3, 1, 1)) * s,
        "aw_t1": n(ks[8], (3, c, c)) * s,
        "ab_t1": n(ks[9], (3, 1, c)) * s,
        "ag_ln": 1.0 + n(ks[10], (3, 1, c)) * s,
        "ab_ln": n(ks[11], (3, 1, c)) * s,
        "aw_t2": n(ks[12], (3, c, c)) * s,   # zero-init in torch; random here
        "ab_t2": n(ks[13], (3, 1, c)) * s,   # zero-init in torch; random here
        # Final W = Conv2d(3C, C, 1) + BatchNorm2d(C) (inference affine)
        "w_W": n(ks[14], (3 * c, c)) * s,
        "b_W": n(ks[15], (1, c)) * s,
        "wbn_s": n(ks[16], (1, c)) * s,      # zero-init in torch; random here
        "wbn_b": n(ks[17], (1, c)) * s,
    }


if __name__ == "__main__":
    key = jax.random.PRNGKey(0)
    k_x, k_p = jax.random.split(key)

    B, Cin, H, W = 2, 64, 16, 16   # shallow stage requires 64 input channels
    C = 256

    # NCHW input (as PyTorch sees it), converted to kernel layout [B, HW, C]
    x_nchw = jax.random.normal(k_x, (B, Cin, H, W), dtype=jnp.float32)
    x = jnp.transpose(x_nchw, (0, 2, 3, 1)).reshape(B, H * W, Cin)

    params = make_params(k_p, cin=Cin, c=C)
    folded = fold_params(params, cin_pad=128)

    out = pixelnet3b(x, folded)              # bf16 output by default
    out = jax.block_until_ready(out)

    ref = pixelnet3b_ref(x, params)
    assert out.shape == (B, H * W, C)
    out_f32 = out.astype(jnp.float32)
    max_err = float(jnp.max(jnp.abs(out_f32 - ref)))
    # bf16 weights/activations/output in the matmuls -> loosened tolerance
    assert jnp.allclose(out_f32, ref, atol=3e-2, rtol=3e-2), (
        f"mismatch vs pure-JAX reference (max abs err {max_err})")

    print("KERNEL_OK")
</pallas_src>

<mosaic_0001>
module attributes {stable_mosaic.version = 11 : i64} {
  func.func @pixelnet3b_kernel(%arg0: i32, %arg1: memref<1x256x128xbf16, #tpu.memory_space<vmem>>, %arg2: memref<128x256xbf16, #tpu.memory_space<vmem>>, %arg3: memref<1x256xf32, #tpu.memory_space<vmem>>, %arg4: memref<256x3xbf16, #tpu.memory_space<vmem>>, %arg5: memref<768x256xbf16, #tpu.memory_space<vmem>>, %arg6: memref<3x256xf32, #tpu.memory_space<vmem>>, %arg7: memref<3x256xf32, #tpu.memory_space<vmem>>, %arg8: memref<3x256xf32, #tpu.memory_space<vmem>>, %arg9: memref<768x256xbf16, #tpu.memory_space<vmem>>, %arg10: memref<256x256xbf16, #tpu.memory_space<vmem>>, %arg11: memref<1x256xf32, #tpu.memory_space<vmem>>, %arg12: memref<1x256x256xbf16, #tpu.memory_space<vmem>>) attributes {dimension_semantics = [#tpu.dimension_semantics<parallel>], iteration_bounds = array<i64: 2>, scalar_prefetch = 0 : i64, scratch_operands = 0 : i64, tpu.core_type = #tpu.core_type<tc>, window_params = [{transform_indices = @transform_0, window_bounds = array<i64: 1, 256, 128>}, {pipeline_mode = #tpu.pipeline_mode<synchronous>, transform_indices = @transform_1, window_bounds = array<i64: 128, 256>}, {pipeline_mode = #tpu.pipeline_mode<synchronous>, transform_indices = @transform_2, window_bounds = array<i64: 1, 256>}, {pipeline_mode = #tpu.pipeline_mode<synchronous>, transform_indices = @transform_3, window_bounds = array<i64: 256, 3>}, {pipeline_mode = #tpu.pipeline_mode<synchronous>, transform_indices = @transform_4, window_bounds = array<i64: 768, 256>}, {pipeline_mode = #tpu.pipeline_mode<synchronous>, transform_indices = @transform_5, window_bounds = array<i64: 3, 256>}, {pipeline_mode = #tpu.pipeline_mode<synchronous>, transform_indices = @transform_6, window_bounds = array<i64: 3, 256>}, {pipeline_mode = #tpu.pipeline_mode<synchronous>, transform_indices = @transform_7, window_bounds = array<i64: 3, 256>}, {pipeline_mode = #tpu.pipeline_mode<synchronous>, transform_indices = @transform_8, window_bounds = array<i64: 768, 256>}, {pipeline_mode = #tpu.pipeline_mode<synchronous>, transform_indices = @transform_9, window_bounds = array<i64: 256, 256>}, {pipeline_mode = #tpu.pipeline_mode<synchronous>, transform_indices = @transform_10, window_bounds = array<i64: 1, 256>}, {transform_indices = @transform_11, window_bounds = array<i64: 1, 256, 256>}]} {
    %c0 = arith.constant 0 : index
    %c0_0 = arith.constant 0 : index
    %c0_1 = arith.constant 0 : index
    %0 = vector.load %arg1[%c0, %c0_0, %c0_1] : memref<1x256x128xbf16, #tpu.memory_space<vmem>>, vector<1x256x128xbf16>
    %1 = vector.shape_cast %0 : vector<1x256x128xbf16> to vector<256x128xbf16>
    %c0_2 = arith.constant 0 : index
    %c0_3 = arith.constant 0 : index
    %2 = vector.load %arg2[%c0_2, %c0_3] : memref<128x256xbf16, #tpu.memory_space<vmem>>, vector<128x256xbf16>
    %cst = arith.constant dense<0.000000e+00> : vector<256x256xf32>
    %3 = tpu.matmul %1, %2, %cst {dimension_numbers = #tpu.dot_dimension_numbers<[1], [0], [0], [1], [0, 0, 1, 1], [], []>} : vector<256x128xbf16>, vector<128x256xbf16>, vector<256x256xf32> -> vector<256x256xf32>
    %c0_4 = arith.constant 0 : index
    %c0_5 = arith.constant 0 : index
    %4 = vector.load %arg3[%c0_4, %c0_5] : memref<1x256xf32, #tpu.memory_space<vmem>>, vector<1x256xf32>
    %5 = vector.broadcast %4 : vector<1x256xf32> to vector<256x256xf32>
    %6 = arith.addf %3, %5 : vector<256x256xf32>
    %7 = arith.truncf %6 : vector<256x256xf32> to vector<256x256xbf16>
    %c0_6 = arith.constant 0 : index
    %c0_7 = arith.constant 0 : index
    %8 = vector.load %arg4[%c0_6, %c0_7] : memref<256x3xbf16, #tpu.memory_space<vmem>>, vector<256x3xbf16>
    %cst_8 = arith.constant dense<0.000000e+00> : vector<256x3xf32>
    %9 = tpu.matmul %7, %8, %cst_8 {dimension_numbers = #tpu.dot_dimension_numbers<[1], [0], [0], [1], [0, 0, 1, 1], [], []>} : vector<256x256xbf16>, vector<256x3xbf16>, vector<256x3xf32> -> vector<256x3xf32>
    %c0_9 = arith.constant 0 : index
    %c0_10 = arith.constant 0 : index
    %10 = vector.load %arg10[%c0_9, %c0_10] : memref<256x256xbf16, #tpu.memory_space<vmem>>, vector<256x256xbf16>
    %cst_11 = arith.constant dense<0.000000e+00> : vector<256x256xf32>
    %11 = tpu.matmul %7, %10, %cst_11 {dimension_numbers = #tpu.dot_dimension_numbers<[1], [0], [0], [1], [0, 0, 1, 1], [], []>} : vector<256x256xbf16>, vector<256x256xbf16>, vector<256x256xf32> -> vector<256x256xf32>
    %cst_12 = arith.constant 1.000000e+00 : bf16
    %12 = vector.broadcast %cst_12 : bf16 to vector<256x1xbf16>
    %13 = tpu.iota {dimensions = array<i32: 0>} : vector<3x1xi32>
    %c0_13 = arith.constant 0 : index
    %c0_14 = arith.constant 0 : index
    %14 = vector.load %arg6[%c0_13, %c0_14] : memref<3x256xf32, #tpu.memory_space<vmem>>, vector<3x256xf32>
    %c0_15 = arith.constant 0 : index
    %c0_16 = arith.constant 0 : index
    %15 = vector.load %arg7[%c0_15, %c0_16] : memref<3x256xf32, #tpu.memory_space<vmem>>, vector<3x256xf32>
    %c0_17 = arith.constant 0 : index
    %c0_18 = arith.constant 0 : index
    %16 = vector.load %arg8[%c0_17, %c0_18] : memref<3x256xf32, #tpu.memory_space<vmem>>, vector<3x256xf32>
    %c0_19 = arith.constant 0 : index
    %c0_20 = arith.constant 0 : index
    %17 = vector.load %arg11[%c0_19, %c0_20] : memref<1x256xf32, #tpu.memory_space<vmem>>, vector<1x256xf32>
    %cst_21 = arith.constant dense<0xFF800000> : vector<3xf32>
    %18 = vector.multi_reduction <maximumf>, %9, %cst_21 [0] : vector<256x3xf32> to vector<3xf32>
    %19 = vector.shape_cast %18 : vector<3xf32> to vector<1x3xf32>
    %20 = vector.broadcast %19 : vector<1x3xf32> to vector<256x3xf32>
    %21 = arith.subf %9, %20 : vector<256x3xf32>
    %22 = math.exp %21 : vector<256x3xf32>
    %23 = arith.truncf %22 : vector<256x3xf32> to vector<256x3xbf16>
    %cst_22 = arith.constant dense<0.000000e+00> : vector<3x256xf32>
    %24 = tpu.matmul %23, %7, %cst_22 {dimension_numbers = #tpu.dot_dimension_numbers<[0], [0], [1], [1], [0, 1, 1, 1], [], []>} : vector<256x3xbf16>, vector<256x256xbf16>, vector<3x256xf32> -> vector<3x256xf32>
    %cst_23 = arith.constant dense<0.000000e+00> : vector<3x1xf32>
    %25 = tpu.matmul %23, %12, %cst_23 {dimension_numbers = #tpu.dot_dimension_numbers<[0], [0], [1], [1], [0, 1, 1, 1], [], []>} : vector<256x3xbf16>, vector<256x1xbf16>, vector<3x1xf32> -> vector<3x1xf32>
    %26 = tpu.reciprocal %25 {approx = true} : vector<3x1xf32> -> vector<3x1xf32>
    %27 = vector.broadcast %26 : vector<3x1xf32> to vector<3x256xf32>
    %28 = arith.mulf %24, %27 : vector<3x256xf32>
    %29 = arith.truncf %28 : vector<3x256xf32> to vector<3x256xbf16>
    %c0_i32 = arith.constant 0 : i32
    %30 = vector.broadcast %c0_i32 : i32 to vector<3x1xi32>
    %31 = arith.cmpi eq, %13, %30 : vector<3x1xi32>
    %32 = arith.extui %31 : vector<3x1xi1> to vector<3x1xi32>
    %33 = arith.sitofp %32 : vector<3x1xi32> to vector<3x1xf32>
    %34 = arith.truncf %33 : vector<3x1xf32> to vector<3x1xbf16>
    %35 = vector.broadcast %34 : vector<3x1xbf16> to vector<3x256xbf16>
    %36 = arith.mulf %29, %35 : vector<3x256xbf16>
    %c1_i32 = arith.constant 1 : i32
    %37 = vector.broadcast %c1_i32 : i32 to vector<3x1xi32>
    %38 = arith.cmpi eq, %13, %37 : vector<3x1xi32>
    %39 = arith.extui %38 : vector<3x1xi1> to vector<3x1xi32>
    %40 = arith.sitofp %39 : vector<3x1xi32> to vector<3x1xf32>
    %41 = arith.truncf %40 : vector<3x1xf32> to vector<3x1xbf16>
    %42 = vector.broadcast %41 : vector<3x1xbf16> to vector<3x256xbf16>
    %43 = arith.mulf %29, %42 : vector<3x256xbf16>
    %c2_i32 = arith.constant 2 : i32
    %44 = vector.broadcast %c2_i32 : i32 to vector<3x1xi32>
    %45 = arith.cmpi eq, %13, %44 : vector<3x1xi32>
    %46 = arith.extui %45 : vector<3x1xi1> to vector<3x1xi32>
    %47 = arith.sitofp %46 : vector<3x1xi32> to vector<3x1xf32>
    %48 = arith.truncf %47 : vector<3x1xf32> to vector<3x1xbf16>
    %49 = vector.broadcast %48 : vector<3x1xbf16> to vector<3x256xbf16>
    %50 = arith.mulf %29, %49 : vector<3x256xbf16>
    %51 = tpu.concatenate %36, %43, %50 in 1 : vector<3x256xbf16>, vector<3x256xbf16>, vector<3x256xbf16> -> vector<3x768xbf16>
    %c0_24 = arith.constant 0 : index
    %c0_25 = arith.constant 0 : index
    %52 = vector.load %arg5[%c0_24, %c0_25] : memref<768x256xbf16, #tpu.memory_space<vmem>>, vector<768x256xbf16>
    %cst_26 = arith.constant dense<0.000000e+00> : vector<3x256xf32>
    %53 = tpu.matmul %51, %52, %cst_26 {dimension_numbers = #tpu.dot_dimension_numbers<[1], [0], [0], [1], [0, 0, 1, 1], [], []>} : vector<3x768xbf16>, vector<768x256xbf16>, vector<3x256xf32> -> vector<3x256xf32>
    %54 = arith.addf %53, %14 : vector<3x256xf32>
    %cst_27 = arith.constant dense<0.000000e+00> : vector<3xf32>
    %55 = vector.multi_reduction <add>, %54, %cst_27 [1] : vector<3x256xf32> to vector<3xf32>
    %56 = vector.shape_cast %55 : vector<3xf32> to vector<3x1xf32>
    %cst_28 = arith.constant 2.560000e+02 : f32
    %57 = vector.broadcast %cst_28 : f32 to vector<3x1xf32>
    %58 = arith.divf %56, %57 : vector<3x1xf32>
    %59 = vector.broadcast %58 : vector<3x1xf32> to vector<3x256xf32>
    %60 = arith.subf %54, %59 : vector<3x256xf32>
    %61 = arith.mulf %60, %60 : vector<3x256xf32>
    %cst_29 = arith.constant dense<0.000000e+00> : vector<3xf32>
    %62 = vector.multi_reduction <add>, %61, %cst_29 [1] : vector<3x256xf32> to vector<3xf32>
    %63 = vector.shape_cast %62 : vector<3xf32> to vector<3x1xf32>
    %cst_30 = arith.constant 2.560000e+02 : f32
    %64 = vector.broadcast %cst_30 : f32 to vector<3x1xf32>
    %65 = arith.divf %63, %64 : vector<3x1xf32>
    %66 = vector.broadcast %58 : vector<3x1xf32> to vector<3x256xf32>
    %67 = arith.subf %54, %66 : vector<3x256xf32>
    %cst_31 = arith.constant 9.99999974E-6 : f32
    %68 = vector.broadcast %cst_31 : f32 to vector<3x1xf32>
    %69 = arith.addf %65, %68 : vector<3x1xf32>
    %70 = math.rsqrt %69 : vector<3x1xf32>
    %71 = vector.broadcast %70 : vector<3x1xf32> to vector<3x256xf32>
    %72 = arith.mulf %67, %71 : vector<3x256xf32>
    %73 = arith.mulf %72, %15 : vector<3x256xf32>
    %74 = arith.addf %73, %16 : vector<3x256xf32>
    %cst_32 = arith.constant 0.000000e+00 : f32
    %75 = vector.broadcast %cst_32 : f32 to vector<3x256xf32>
    %76 = arith.maximumf %74, %75 : vector<3x256xf32>
    %77 = arith.truncf %76 : vector<3x256xf32> to vector<3x256xbf16>
    %c0_i32_33 = arith.constant 0 : i32
    %78 = vector.broadcast %c0_i32_33 : i32 to vector<3x1xi32>
    %79 = arith.cmpi eq, %13, %78 : vector<3x1xi32>
    %80 = arith.extui %79 : vector<3x1xi1> to vector<3x1xi32>
    %81 = arith.sitofp %80 : vector<3x1xi32> to vector<3x1xf32>
    %82 = arith.truncf %81 : vector<3x1xf32> to vector<3x1xbf16>
    %83 = vector.broadcast %82 : vector<3x1xbf16> to vector<3x256xbf16>
    %84 = arith.mulf %77, %83 : vector<3x256xbf16>
    %c1_i32_34 = arith.constant 1 : i32
    %85 = vector.broadcast %c1_i32_34 : i32 to vector<3x1xi32>
    %86 = arith.cmpi eq, %13, %85 : vector<3x1xi32>
    %87 = arith.extui %86 : vector<3x1xi1> to vector<3x1xi32>
    %88 = arith.sitofp %87 : vector<3x1xi32> to vector<3x1xf32>
    %89 = arith.truncf %88 : vector<3x1xf32> to vector<3x1xbf16>
    %90 = vector.broadcast %89 : vector<3x1xbf16> to vector<3x256xbf16>
    %91 = arith.mulf %77, %90 : vector<3x256xbf16>
    %c2_i32_35 = arith.constant 2 : i32
    %92 = vector.broadcast %c2_i32_35 : i32 to vector<3x1xi32>
    %93 = arith.cmpi eq, %13, %92 : vector<3x1xi32>
    %94 = arith.extui %93 : vector<3x1xi1> to vector<3x1xi32>
    %95 = arith.sitofp %94 : vector<3x1xi32> to vector<3x1xf32>
    %96 = arith.truncf %95 : vector<3x1xf32> to vector<3x1xbf16>
    %97 = vector.broadcast %96 : vector<3x1xbf16> to vector<3x256xbf16>
    %98 = arith.mulf %77, %97 : vector<3x256xbf16>
    %99 = tpu.concatenate %84, %91, %98 in 1 : vector<3x256xbf16>, vector<3x256xbf16>, vector<3x256xbf16> -> vector<3x768xbf16>
    %c0_36 = arith.constant 0 : index
    %c0_37 = arith.constant 0 : index
    %100 = vector.load %arg9[%c0_36, %c0_37] : memref<768x256xbf16, #tpu.memory_space<vmem>>, vector<768x256xbf16>
    %cst_38 = arith.constant dense<0.000000e+00> : vector<3x256xf32>
    %101 = tpu.matmul %99, %100, %cst_38 {dimension_numbers = #tpu.dot_dimension_numbers<[1], [0], [0], [1], [0, 0, 1, 1], [], []>} : vector<3x768xbf16>, vector<768x256xbf16>, vector<3x256xf32> -> vector<3x256xf32>
    %102 = vector.extract_strided_slice %101 {offsets = [0, 0], sizes = [1, 256], strides = [1, 1]} : vector<3x256xf32> to vector<1x256xf32>
    %103 = vector.extract_strided_slice %101 {offsets = [1, 0], sizes = [1, 256], strides = [1, 1]} : vector<3x256xf32> to vector<1x256xf32>
    %104 = arith.addf %102, %103 : vector<1x256xf32>
    %105 = vector.extract_strided_slice %101 {offsets = [2, 0], sizes = [1, 256], strides = [1, 1]} : vector<3x256xf32> to vector<1x256xf32>
    %106 = arith.addf %104, %105 : vector<1x256xf32>
    %107 = arith.addf %106, %17 : vector<1x256xf32>
    %108 = vector.broadcast %107 : vector<1x256xf32> to vector<256x256xf32>
    %109 = arith.addf %11, %108 : vector<256x256xf32>
    %110 = arith.truncf %109 : vector<256x256xf32> to vector<256x256xbf16>
    %c0_39 = arith.constant 0 : index
    %c0_40 = arith.constant 0 : index
    %c0_41 = arith.constant 0 : index
    %111 = vector.load %arg12[%c0_39, %c0_40, %c0_41] : memref<1x256x256xbf16, #tpu.memory_space<vmem>>, vector<1x256x256xbf16>
    %112 = vector.shape_cast %111 : vector<1x256x256xbf16> to vector<256x256xbf16>
    %113 = vector.shape_cast %110 : vector<256x256xbf16> to vector<1x256x256xbf16>
    tpu.vector_store %arg12[%c0_39, %c0_40, %c0_41], %113 {strides = array<i32>} : memref<1x256x256xbf16, #tpu.memory_space<vmem>>, vector<1x256x256xbf16>,
    return
  }
  func.func @transform_0(%arg0: i32) -> (i32, i32, i32) {
    %c0_i32 = arith.constant 0 : i32
    %c0_i32_0 = arith.constant 0 : i32
    %c0_i32_1 = arith.constant 0 : i32
    return %arg0, %c0_i32, %c0_i32_0 : i32, i32, i32
  }
  func.func @transform_1(%arg0: i32) -> (i32, i32) {
    %c0_i32 = arith.constant 0 : i32
    %c0_i32_0 = arith.constant 0 : i32
    %c0_i32_1 = arith.constant 0 : i32
    return %c0_i32, %c0_i32_0 : i32, i32
  }
  func.func @transform_2(%arg0: i32) -> (i32, i32) {
    %c0_i32 = arith.constant 0 : i32
    %c0_i32_0 = arith.constant 0 : i32
    %c0_i32_1 = arith.constant 0 : i32
    return %c0_i32, %c0_i32_0 : i32, i32
  }
  func.func @transform_3(%arg0: i32) -> (i32, i32) {
    %c0_i32 = arith.constant 0 : i32
    %c0_i32_0 = arith.constant 0 : i32
    %c0_i32_1 = arith.constant 0 : i32
    return %c0_i32, %c0_i32_0 : i32, i32
  }
  func.func @transform_4(%arg0: i32) -> (i32, i32) {
    %c0_i32 = arith.constant 0 : i32
    %c0_i32_0 = arith.constant 0 : i32
    %c0_i32_1 = arith.constant 0 : i32
    return %c0_i32, %c0_i32_0 : i32, i32
  }
  func.func @transform_5(%arg0: i32) -> (i32, i32) {
    %c0_i32 = arith.constant 0 : i32
    %c0_i32_0 = arith.constant 0 : i32
    %c0_i32_1 = arith.constant 0 : i32
    return %c0_i32, %c0_i32_0 : i32, i32
  }
  func.func @transform_6(%arg0: i32) -> (i32, i32) {
    %c0_i32 = arith.constant 0 : i32
    %c0_i32_0 = arith.constant 0 : i32
    %c0_i32_1 = arith.constant 0 : i32
    return %c0_i32, %c0_i32_0 : i32, i32
  }
  func.func @transform_7(%arg0: i32) -> (i32, i32) {
    %c0_i32 = arith.constant 0 : i32
    %c0_i32_0 = arith.constant 0 : i32
    %c0_i32_1 = arith.constant 0 : i32
    return %c0_i32, %c0_i32_0 : i32, i32
  }
  func.func @transform_8(%arg0: i32) -> (i32, i32) {
    %c0_i32 = arith.constant 0 : i32
    %c0_i32_0 = arith.constant 0 : i32
    %c0_i32_1 = arith.constant 0 : i32
    return %c0_i32, %c0_i32_0 : i32, i32
  }
  func.func @transform_9(%arg0: i32) -> (i32, i32) {
    %c0_i32 = arith.constant 0 : i32
    %c0_i32_0 = arith.constant 0 : i32
    %c0_i32_1 = arith.constant 0 : i32
    return %c0_i32, %c0_i32_0 : i32, i32
  }
  func.func @transform_10(%arg0: i32) -> (i32, i32) {
    %c0_i32 = arith.constant 0 : i32
    %c0_i32_0 = arith.constant 0 : i32
    %c0_i32_1 = arith.constant 0 : i32
    return %c0_i32, %c0_i32_0 : i32, i32
  }
  func.func @transform_11(%arg0: i32) -> (i32, i32, i32) {
    %c0_i32 = arith.constant 0 : i32
    %c0_i32_0 = arith.constant 0 : i32
    %c0_i32_1 = arith.constant 0 : i32
    return %arg0, %c0_i32, %c0_i32_0 : i32, i32, i32
  }
}

</mosaic_0001>

<bundles_post_ra>
// kernel: tpu_custom_call.1
= control target key start
LH: loop header
LB: loop body
LE: loop exit
PB: predicated region body
PF: predicated region fallthrough
CT: control target
= control target key end

     0   :  { %s6243_s0 = inlined_call_operand.hbm [shape: bf16[2,256,128], index: 0, kind: input, shape index: {}]   ;;  %s6244_s1 = inlined_call_operand.vmem [shape: bf16[128,256], index: 1, kind: input, shape index: {}]   ;;  %s6245_s2 = inlined_call_operand.hbm [shape: f32[1,256], index: 2, kind: input, shape index: {}]   ;;  %s6246_s3 = inlined_call_operand.vmem [shape: bf16[256,3], index: 3, kind: input, shape index: {}]   ;;  %s6247_s4 = inlined_call_operand.hbm [shape: bf16[768,256], index: 4, kind: input, shape index: {}]   ;;  %s6248_s5 = inlined_call_operand.vmem [shape: f32[3,256], index: 5, kind: input, shape index: {}]   ;;  %s6249_s6 = inlined_call_operand.hbm [shape: f32[3,256], index: 6, kind: input, shape index: {}]   ;;  %s6250_s7 = inlined_call_operand.vmem [shape: f32[3,256], index: 7, kind: input, shape index: {}]   ;;  %s6251_s8 = inlined_call_operand.hbm [shape: bf16[768,256], index: 8, kind: input, shape index: {}]   ;;  %s6252_s9 = inlined_call_operand.hbm [shape: bf16[256,256], index: 9, kind: input, shape index: {}]   ;;  %s6253_s10 = inlined_call_operand.vmem [shape: f32[1,256], index: 10, kind: input, shape index: {}]   ;;  %s6254_s11 = inlined_call_operand.hbm [shape: bf16[2,256,256], index: 11, kind: output, shape index: {}]  }
   0x1   :  { %6288 = sst [smem:[#allocation45_spill]] %s6245_s2 }
   0x2   :  { %6289 = sst [smem:[#allocation46_spill]] %s6247_s4 }
   0x3   :  { %6290 = sst [smem:[#allocation47_spill]] %s6249_s6 }
   0x4   :  { %6291 = sst [smem:[#allocation48_spill]] %s6251_s8 }
   0x5   :  { %6292 = sst [smem:[#allocation49_spill]] %s6252_s9 }
   0x6   :  { %16 = vsyncpa [#allocation3], 0 }
   0x7   :  { %18 = vsyncpa [#allocation3 + $0x1], 0 }
   0x8   :  { %19 = vsyncpa [#allocation6], 0 }
   0x9   :  { %20 = vsyncpa [#allocation9], 0 }
   0xa   :  { %21 = vsyncpa [#allocation12], 0 }
   0xb   :  { %22 = vsyncpa [#allocation4], 0 }
   0xc   :  { %24 = vsyncpa [#allocation4 + $0x1], 0  ;;  %s5174_s17 = smov 0   ;;  %s5176_s18 = smov 0  }
   0xd   :  { %s5178_s19 = smov 0   ;;  %s5180_s20 = smov 0  }
   0xe LB: > { %s5098_s21 = smov [#allocation5]   ;;  %s5195_s23 = sadd.s32 4294967295, %s5096_s20   ;;  %s5096_s20 = sphi %s5180_s20, %s6374_s20   ;;  %s5092_s19 = sphi %s5178_s19, %s6373_s19   ;;  %s5088_s18 = sphi %s5176_s18, %s6372_s18   ;;  %s5084_s17 = sphi %s5174_s17, %s6371_s17  }
   0xf   : > { %s313_s22 = sshll.u32 %s5098_s21, 4  ;;  %p3778_p0 = scmp.ge.s32.totalorder %s5096_s20, 1  ;;  %s314_s22 = int_to_ptr.vmem [resolvable:$true] %s313_s22 }
  0x10   : > { %p6255_p1 = scmp.eq.s32.totalorder %s5195_s23, 0  ;;  %p297_p2 = scmp.lt.s32.totalorder %s5096_s20, 3 }
  0x11   : > { %s5099_s25 = smov [#allocation8]   ;;  %s5100_s27 = smov [#allocation7]  }
  0x12   : > { %p5200_p3 = pnand %p3778_p0, %p297_p2  ;;  %s343_s26 = sshll.u32 %s5099_s25, 4  ;;  %s344_s26 = int_to_ptr.vmem [resolvable:$true] %s343_s26 }
  0x13   : > { %s326_s28 = sshll.u32 %s5100_s27, 4  ;;  %s4873_s12 = scalar_lea.vmem %s314_s22, 32  ;;  %s5213_s28 = int_to_ptr.vmem [resolvable:$true] %s326_s28 }
  0x14   : > { %s6293_s24 = scalar_select %p5200_p3, 1, 0 }
  0x15   : > { %p4316_p5 = pneg %p5200_p3  ;;  %p4874_p8 = scmp.ne.s32.totalorder %s314_s22, %s4873_s12 }
  0x16   : > { %p4881_p11 = scmp.lt.s32.totalorder %s314_s22, %s314_s22  ;;  %p4882_p12 = scmp.lt.s32.totalorder %s4873_s12, %s4873_s12 }
  0x17   : > { %p5209_p6 = pnand %p4316_p5, %p6255_p1 }
  0x18   : > { %p4883_p13 = por %p4882_p12, %p4881_p11 }
  0x19   : > { %p5217_p7 = pneg %p5209_p6 }
  0x1b   : > { %p4876_p9 = pnand %p4874_p8, %p5217_p7 }
  0x1d   : > { %p4877_p10 = pneg %p4876_p9 }
  0x1f   : > { %p4884_p0 = pnand %p4883_p13, %p4877_p10 }
  0x21   : > { %4887 = shalt.err (!%p4884_p0)
}
  0x22   : > { %s6296_s2 = sld [smem:[#allocation45_spill]]  ;;  %s4899_s15 = scalar_lea.vmem %s344_s26, 128 }
  0x23   : > { %p4900_p2 = scmp.ne.s32.totalorder %s344_s26, %s4899_s15  ;;  %p4907_p1 = scmp.lt.s32.totalorder %s344_s26, %s344_s26 }
  0x24   : > { %p4908_p8 = scmp.lt.s32.totalorder %s4899_s15, %s4899_s15 }
  0x25   : > { %p4902_p5 = pnand %p4900_p2, %p5217_p7 }
  0x26   : > { %p4909_p9 = por %p4908_p8, %p4907_p1 }
  0x27   : > { %p4903_p4 = pneg %p4902_p5 }
  0x28   : > { %4319 = dma.hbm_to_vmem [thread:$0]  (!%p5209_p6), %s6296_s2, 32, %s314_s22, [#allocation6]  }
  0x29   : > { %p4910_p3 = pnand %p4909_p9, %p4903_p4 }
  0x2b   : > { %4913 = shalt.err (!%p4910_p3)
}
  0x2c   : > { %s6297_s6 = sld [smem:[#allocation47_spill]]  ;;  %s4925_s22 = scalar_lea.vmem %s5213_s28, 12288 }
  0x2d   : > { %p4926_p10 = scmp.ne.s32.totalorder %s5213_s28, %s4925_s22  ;;  %p4933_p13 = scmp.lt.s32.totalorder %s5213_s28, %s5213_s28 }
  0x2e   : > { %p4934_p1 = scmp.lt.s32.totalorder %s4925_s22, %s4925_s22 }
  0x2f   : > { %p4928_p11 = pnand %p4926_p10, %p5217_p7 }
  0x30   : > { %p4935_p4 = por %p4934_p1, %p4933_p13 }
  0x31   : > { %p4929_p12 = pneg %p4928_p11 }
  0x32   : > { %4325 = dma.hbm_to_vmem [thread:$0]  (!%p5209_p6), %s6297_s6, 128, %s344_s26, [#allocation9]  }
  0x33   : > { %p4936_p3 = pnand %p4935_p4, %p4929_p12 }
  0x35   : > { %4939 = shalt.err (!%p4936_p3)
}
  0x36   : > { %s5101_s25 = smov 128   ;;  %s5102_s27 = smov 8  }
  0x37   : > { %s6298_s4 = sld [smem:[#allocation46_spill]]  ;;  %s5103_s13 = smov [#allocation10]  }
  0x38   : > { %s356_s14 = sshll.u32 %s5103_s13, 4  ;;  %s5104_s15 = smov [#allocation11]   ;;  %s357_s14 = int_to_ptr.vmem [resolvable:$true] %s356_s14 }
  0x39   : > { %s369_s16 = sshll.u32 %s5104_s15, 4  ;;  %s4951_s21 = scalar_lea.vmem %s357_s14, 12288  ;;  %s370_s16 = int_to_ptr.vmem [resolvable:$true] %s369_s16 }
  0x3a   : > { %p4952_p0 = scmp.ne.s32.totalorder %s357_s14, %s4951_s21  ;;  %p4959_p8 = scmp.lt.s32.totalorder %s357_s14, %s357_s14 }
  0x3b   : > { %p4960_p9 = scmp.lt.s32.totalorder %s4951_s21, %s4951_s21 }
  0x3c   : > { %p4954_p2 = pnand %p4952_p0, %p5217_p7 }
  0x3d   : > { %4322 = dma.hbm_to_vmem [thread:$0]  (!%p5209_p6), %s6298_s4, 12288, %s5213_s28, [#allocation6], %s5101_s25, %s5101_s25, %s5102_s27  }
  0x3e   : > { %p4955_p5 = pneg %p4954_p2  ;;  %p4961_p10 = por %p4960_p9, %p4959_p8 }
  0x40   : > { %p4962_p11 = pnand %p4961_p10, %p4955_p5 }
  0x42   : > { %4965 = shalt.err (!%p4962_p11)
}
  0x43   : > { %s6299_s8 = sld [smem:[#allocation48_spill]]  ;;  %s4977_s26 = scalar_lea.vmem %s370_s16, 4096 }
  0x44   : > { %p4978_p12 = scmp.ne.s32.totalorder %s370_s16, %s4977_s26  ;;  %p4985_p4 = scmp.lt.s32.totalorder %s370_s16, %s370_s16 }
  0x45   : > { %p4986_p3 = scmp.lt.s32.totalorder %s4977_s26, %s4977_s26 }
  0x46   : > { %p4980_p13 = pnand %p4978_p12, %p5217_p7 }
  0x47   : > { %p4987_p0 = por %p4986_p3, %p4985_p4 }
  0x48   : > { %p4981_p1 = pneg %p4980_p13 }
  0x49   : > { %4328 = dma.hbm_to_vmem [thread:$0]  (!%p5209_p6), %s6299_s8, 12288, %s357_s14, [#allocation9], %s5101_s25, %s5101_s25, %s5102_s27  }
  0x4a   : > { %p4988_p2 = pnand %p4987_p0, %p4981_p1 }
  0x4c   : > { %4991 = shalt.err (!%p4988_p2)
}
  0x4d   : > { %s6300_s9 = sld [smem:[#allocation49_spill]]  ;;  %s3777_s29 = sadd.s32 4294967294, %s5096_s20  }
  0x4e   : > { %s5272_s30 = sadd.s32 1, %s5096_s20   ;;  %s37_s14 = sadd.s32 1, %s5092_s19 }
  0x4f   : > { %s34_s15 = ssub.s32 %s5096_s20, %s5272_s30  ;;  %p44_p7 = scmp.ne.s32.totalorder %s5092_s19, %s5088_s18 }
  0x50   : > { %p35_p5 = scmp.eq.s32.totalorder %s34_s15, 0  ;;  %p45_p8 = scmp.eq.s32.totalorder %s5096_s20, 0 }
  0x51   : > { %p50_p9 = scmp.ne.s32.totalorder %s5088_s18, %s5084_s17  ;;  %p284_p10 = scmp.eq.s32.totalorder %s5195_s23, 1 }
  0x52   : > { %s5284_s21 = scalar_select %p35_p5, %s5092_s19, %s37_s14  }
  0x53   : > { %4331 = dma.hbm_to_vmem [thread:$0]  (!%p5209_p6), %s6300_s9, 4096, %s370_s16, [#allocation12], %s5101_s25, %s5101_s25, %s5102_s27  }
  0x54   : > { %p46_p11 = por %p45_p8, %p44_p7  ;;  %p6301_p12 = scmp.eq.s32.totalorder %s5195_s23, 0 }
  0x55   : > { %p5292_p6 = por %p284_p10, %p44_p7  ;;  %p290_p1 = scmp.eq.s32.totalorder %s3777_s29, 1 }
  0x56   : > { %p5288_p13 = por %p6301_p12, %p50_p9  ;;  %p4345_p4 = scmp.lt.s32.totalorder %s5096_s20, 2 }
  0x57   : > { %s6303_s25 = scalar_select %p5292_p6, 1, 0 }
  0x58   : > { %s6302_s28 = scalar_select %p5288_p13, 1, 0 }
  0x59   : > { %s386_s27 = sand.u32 1, %s5092_s19   ;;  %p5298_p3 = por %p290_p1, %p50_p9 }
  0x5a   : > { %s3785_s22 = sshll.u32 %s386_s27, 7  ;;  %s4108_s26 = sshll.u32 %s5096_s20, 11 }
  0x5b   : > { %s6304_s16 = scalar_select %p5298_p3, 1, 0 }
  0x5c   : > { %s5306_s14 = scalar_lea.hbm %s6243_s0, %s4108_s26  ;;  %s390_s15 = scalar_lea.vmem [#allocation2], %s3785_s22 }
  0x5d   : > { %s397_s2 = sshll.u32 %s390_s15, 4  ;;  %p5308_p0 = pnand %p4345_p4, %p46_p11  ;;  %s5312_s2 = int_to_ptr.vmem [resolvable:$true] %s397_s2 }
  0x5e   : > { %s5314_s4 = scalar_lea.sflag [#allocation3], %s386_s27  ;;  %s4992_s6 = scalar_lea.hbm %s5306_s14, 2048 }
  0x5f   : > { %p4993_p2 = scmp.ne.s32.totalorder %s5306_s14, %s4992_s6  ;;  %p4994_p7 = pneg %p5308_p0 }
  0x60   : > { %s4997_s22 = scalar_lea.hbm %s6243_s0, 4096  ;;  %p4998_p9 = scmp.lt.s32.totalorder %s5306_s14, %s6243_s0 }
  0x61   : > { %p4995_p5 = pnand %p4994_p7, %p4993_p2  ;;  %p4999_p10 = scmp.lt.s32.totalorder %s4997_s22, %s4992_s6 }
  0x63   : > { %p4996_p8 = pneg %p4995_p5  ;;  %p5000_p11 = por %p4999_p10, %p4998_p9 }
  0x65   : > { %p5001_p12 = pnand %p5000_p11, %p4996_p8 }
  0x67   : > { %5004 = shalt.err (!%p5001_p12)
}
  0x68   : > { %s5005_s27 = scalar_lea.vmem %s5312_s2, 2048  ;;  %s5105_s8 = smov [#allocation2]  }
  0x69   : > { %p5006_p1 = scmp.ne.s32.totalorder %s5312_s2, %s5005_s27  ;;  %s5010_s9 = sshll.u32 %s5105_s8, 4  ;;  %s5011_s9 = int_to_ptr.vmem [resolvable:$false] %s5010_s9 }
  0x6a   : > { %s5012_s26 = scalar_lea.vmem %s5011_s9, 4096  ;;  %p5013_p5 = scmp.lt.s32.totalorder %s5312_s2, %s5011_s9 }
  0x6b   : > { %p5008_p4 = pnand %p5006_p1, %p4994_p7  ;;  %p5014_p3 = scmp.lt.s32.totalorder %s5012_s26, %s5005_s27 }
  0x6d   : > { %p5009_p2 = pneg %p5008_p4  ;;  %p5015_p6 = por %p5014_p3, %p5013_p5 }
  0x6f   : > { %p5016_p13 = pnand %p5015_p6, %p5009_p2 }
  0x71   : > { %5019 = shalt.err (!%p5016_p13)
}
  0x72   : > { %s5106_s6 = smov 64   ;;  %s5107_s12 = smov 4  }
  0x73   : > { %4335 = dma.hbm_to_vmem [thread:$0]  (!%p5308_p0), %s5306_s14, 2048, %s5312_s2, %s5314_s4, %s5106_s6, %s5106_s6, %s5107_s12  }
  0x74   : > { %p6306_p7 = scmp.ne.s32.totalorder %s6293_s24, 0 }
  0x76   : > { %409 = sbr.rel (%p6306_p7) target bundleno = 2206 (0x89e), region = 64 }
  0x7b   : > { %s5338_s8 = sand.u32 1, %s5088_s18   ;;  %p6307_p13 = scmp.ne.s32.totalorder %s6302_s28, 0 }
  0x7c   : > { %s3789_s9 = sshll.u32 %s5338_s8, 7  ;;  %s412_s22 = scalar_lea.sflag [#allocation3], %s5338_s8 }
  0x7d   : > { %s5342_s13 = scalar_lea.vmem [#allocation2], %s3789_s9 }
  0x7e   : > { %5063 = dma.done.wait (%p6307_p13), %s412_s22, 2048  }
  0x7f   : > { %5065 = vsyncadd (%p6307_p13), %s412_s22, 4294965248  ;;  %p6308_p6 = scmp.eq.s32.totalorder %s5195_s23, 0 }
  0x81   : > { %5067 = dma.done.wait (%p6308_p6), [#allocation6], 12320   ;;  %p6309_p3 = pmov %p6308_p6 }
  0x83   : > { %5069 = vsyncadd (%p6309_p3), [#allocation6], 4294954976  ;;  %p6310_p0 = pmov %p6309_p3 }
  0x85   : > { %5071 = dma.done.wait (%p6310_p0), [#allocation9], 12416   ;;  %p6311_p8 = pmov %p6310_p0 }
  0x86   : > { %p6312_p9 = pmov %p6310_p0 }
  0x87   : > { %5073 = vsyncadd (%p6311_p8), [#allocation9], 4294954880 }
  0x88   : > { %5075 = dma.done.wait (%p6312_p9), [#allocation12], 4096   ;;  %p6313_p10 = pmov %p6310_p0 }
  0x89   : > { %v6260_v0 = vmov 0   ;;  %v4399_v1 = vld [vmem:[%s6244_s1 + $0x74] ss:$8 sps:$4 sm:$0xff]   ;;  %v4401_v2 = vld [vmem:[%s6244_s1 + $0x70] ss:$8 sps:$4 sm:$0xff]   ;;  %v4423_v18 = vld [vmem:[%s5342_s13] sm:$0xff]   ;;  %v526_v49 = vlaneseq }
  0x8a   : > { %5077 = vsyncadd (%p6313_p10), [#allocation12], 4294963200  ;;  %744 = vmatprep.mubr.bf16.mxu0 %v6260_v0  ;;  %824 = vmatprep.mubr.bf16.mxu1 %v6260_v0  ;;  %v4402_v3 = vld [vmem:[%s6244_s1 + $0x64] ss:$8 sps:$4 sm:$0xff]   ;;  %v4404_v4 = vld [vmem:[%s6244_s1 + $0x60] ss:$8 sps:$4 sm:$0xff]  }
  0x8b   : > { %712 = vmatprep.subr.bf16.mxu0 %v4399_v1  ;;  %4276 = vmatprep.subr.bf16.mxu1 %v4399_v1  ;;  %v4405_v5 = vld [vmem:[%s6244_s1 + $0x54] ss:$8 sps:$4 sm:$0xff]   ;;  %v4407_v6 = vld [vmem:[%s6244_s1 + $0x50] ss:$8 sps:$4 sm:$0xff]   ;;  %v4408_v7 = vld [vmem:[%s6244_s1 + $0x44] ss:$8 sps:$4 sm:$0xff]  }
  0x8c   : > { %713 = vmatpush1.bf16.msra.mxu0 %v4401_v2  ;;  %4284 = vmatpush1.bf16.msra.mxu1 %v4401_v2  ;;  %v4410_v8 = vld [vmem:[%s6244_s1 + $0x40] ss:$8 sps:$4 sm:$0xff]   ;;  %v4411_v9 = vld [vmem:[%s6244_s1 + $0x34] ss:$8 sps:$4 sm:$0xff]   ;;  %v4413_v10 = vld [vmem:[%s6244_s1 + $0x30] ss:$8 sps:$4 sm:$0xff]  }
  0x8d   : > { %714 = vmatprep.subr.bf16.mxu0 %v4402_v3  ;;  %4277 = vmatprep.subr.bf16.mxu1 %v4402_v3  ;;  %v4414_v11 = vld [vmem:[%s6244_s1 + $0x24] ss:$8 sps:$4 sm:$0xff]   ;;  %v4416_v12 = vld [vmem:[%s6244_s1 + $0x20] ss:$8 sps:$4 sm:$0xff]   ;;  %v4417_v13 = vld [vmem:[%s6244_s1 + $0x14] ss:$8 sps:$4 sm:$0xff]  }
  0x8e   : > { %v4419_v14 = vld [vmem:[%s6244_s1 + $0x10] ss:$8 sps:$4 sm:$0xff]   ;;  %v4420_v15 = vld [vmem:[%s6244_s1 + $0x4] ss:$8 sps:$4 sm:$0xff]   ;;  %v4422_v16 = vld [vmem:[%s6244_s1] ss:$8 sps:$4 sm:$0xff]  }
  0x8f   : > { %v4439_v17 = vld [vmem:[%s6246_s3 + $0x78] sm:$0xff]   ;;  %v4428_v19 = vld [vmem:[%s5342_s13 + $0x40] sm:$0xff]   ;;  %v4441_v21 = vld [vmem:[%s6246_s3 + $0x70] sm:$0xff]   ;;  %v5488_v50 = vshrl.u32 %v526_v49, 7  ;;  %vm1264_vm0 = vcmask 23552   ;;  %vm2289_vm4 = vcmask 1042432  }
  0x90   : > { %715 = vmatpush1.bf16.msra.mxu0 %v4404_v4  ;;  %4285 = vmatpush1.bf16.msra.mxu1 %v4404_v4  ;;  %v4440_v20 = vld [vmem:[%s6246_s3 + $0x38] sm:$0xff]   ;;  %v4424_v22 = vld [vmem:[%s5342_s13 + $0x8] sm:$0xff]   ;;  %v4442_v23 = vld [vmem:[%s6246_s3 + $0x30] sm:$0xff]   ;;  %s3795_s14 = sshll.u32 %s5338_s8, 8  ;;  %s4141_s15 = sshll.u32 %s5195_s23, 12 }
  0x91   : > { %716 = vmatprep.subr.bf16.mxu0 %v4405_v5  ;;  %4278 = vmatprep.subr.bf16.mxu1 %v4405_v5  ;;  %v4443_v24 = vld [vmem:[%s6246_s3 + $0x68] sm:$0xff]   ;;  %v4445_v27 = vld [vmem:[%s6246_s3 + $0x60] sm:$0xff]   ;;  %v4447_v29 = vld [vmem:[%s6246_s3 + $0x58] sm:$0xff]   ;;  %v6259_v51 = vsub.s32 1, %v5488_v50  ;;  %v5492_v52 = vsub.s32 0, %v5488_v50  ;;  %vm1569_vm1 = vcmp.eq.s32.totalorder %v5488_v50, 0  ;;  %s6197_s12 = scalar_lea.hbm %s6254_s11, %s4141_s15 }
  0x92   : > { %v4430_v25 = vld [vmem:[%s5342_s13 + $0x48] sm:$0xff]   ;;  %v4446_v28 = vld [vmem:[%s6246_s3 + $0x20] sm:$0xff]   ;;  %v4425_v30 = vld [vmem:[%s5342_s13 + $0x10] sm:$0xff]   ;;  %vm1575_vm2 = vcmp.eq.s32.totalorder %v5488_v50, 1  ;;  %vm1581_vm3 = vcmp.eq.s32.totalorder %v5488_v50, 2  ;;  %s6103_s29 = scalar_lea.vmem [#allocation13], %s3795_s14 }
  0x93   : > { %v4444_v26 = vld [vmem:[%s6246_s3 + $0x28] sm:$0xff]   ;;  %v4432_v31 = vld [vmem:[%s5342_s13 + $0x50] sm:$0xff]   ;;  %v4448_v32 = vld [vmem:[%s6246_s3 + $0x18] sm:$0xff]   ;;  %6314 = vst [vmem:[#allocation19_spill] sm:$0xff] %v5492_v52  ;;  %s3656_s27 = sshll.u32 %s6103_s29, 4  ;;  %s3643_s23 = scalar_lea.sflag [#allocation4], %s5338_s8  ;;  %s6199_s27 = int_to_ptr.vmem [resolvable:$true] %s3656_s27 }
  0x94   : > { %717 = vmatpush1.bf16.msra.mxu0 %v4407_v6  ;;  %4286 = vmatpush1.bf16.msra.mxu1 %v4407_v6  ;;  %v4449_v33 = vld [vmem:[%s6246_s3 + $0x50] sm:$0xff]   ;;  %v4451_v35 = vld [vmem:[%s6246_s3 + $0x48] sm:$0xff]   ;;  %v4426_v36 = vld [vmem:[%s5342_s13 + $0x18] sm:$0xff]   ;;  %s5020_s9 = scalar_lea.vmem %s6199_s27, 4096  ;;  %p6368_p12 = scmp.ne.s32.totalorder %s6303_s25, 0 }
  0x95   : > { %718 = vmatprep.subr.bf16.mxu0 %v4408_v7  ;;  %4279 = vmatprep.subr.bf16.mxu1 %v4408_v7  ;;  %v4450_v34 = vld [vmem:[%s6246_s3 + $0x10] sm:$0xff]   ;;  %v4434_v37 = vld [vmem:[%s5342_s13 + $0x58] sm:$0xff]   ;;  %v4452_v38 = vld [vmem:[%s6246_s3 + $0x8] sm:$0xff]   ;;  %p5021_p11 = scmp.ne.s32.totalorder %s6199_s27, %s5020_s9 }
  0x96   : > { %v4427_v39 = vld [vmem:[%s5342_s13 + $0x20] sm:$0xff]   ;;  %v4429_v41 = vld [vmem:[%s5342_s13 + $0x28] sm:$0xff]   ;;  %v4431_v43 = vld [vmem:[%s5342_s13 + $0x30] sm:$0xff]  }
  0x97   : > { %v4435_v40 = vld [vmem:[%s5342_s13 + $0x60] sm:$0xff]   ;;  %v4436_v42 = vld [vmem:[%s5342_s13 + $0x68] sm:$0xff]   ;;  %v4437_v44 = vld [vmem:[%s5342_s13 + $0x70] sm:$0xff]   ;;  %p5022_p1 = pnand %p5021_p11, %p6368_p12 }
  0x98   : > { %719 = vmatpush1.bf16.msra.mxu0 %v4410_v8  ;;  %4287 = vmatpush1.bf16.msra.mxu1 %v4410_v8  ;;  %v4433_v45 = vld [vmem:[%s5342_s13 + $0x38] sm:$0xff]   ;;  %v4453_v47 = vld [vmem:[%s6246_s3 + $0x40] sm:$0xff]  }
  0x99   : > { %720 = vmatprep.subr.bf16.mxu0 %v4411_v9  ;;  %4280 = vmatprep.subr.bf16.mxu1 %v4411_v9  ;;  %v4438_v46 = vld [vmem:[%s5342_s13 + $0x78] sm:$0xff]   ;;  %v4454_v48 = vld [vmem:[%s6246_s3] sm:$0xff]   ;;  %p5023_p4 = pneg %p5022_p1  ;;  %s5111_s13 = smov [#allocation13]  }
  0x9a   : > { %v524_v55 = vld [vmem:[#allocation5] sm:$0x3]  ;;  %s5024_s22 = sshll.u32 %s5111_s13, 4  ;;  %s5025_s22 = int_to_ptr.vmem [resolvable:$false] %s5024_s22 }
  0x9b   : > { %v5500_v58 = vrot.slane %v524_v55, %v6259_v51  ;;  %v5503_v59 = vrot.slane %v524_v55, %v5492_v52  ;;  %s5026_s2 = scalar_lea.vmem %s5025_s22, 8192  ;;  %p5027_p2 = scmp.lt.s32.totalorder %s6199_s27, %s5025_s22 }
  0x9c   : > { %721 = vmatpush1.bf16.msra.mxu0 %v4413_v10  ;;  %4288 = vmatpush1.bf16.msra.mxu1 %v4413_v10  ;;  %p5028_p5 = scmp.lt.s32.totalorder %s5026_s2, %s5020_s9 }
  0x9d   : > { %722 = vmatprep.subr.bf16.mxu0 %v4414_v11  ;;  %4281 = vmatprep.subr.bf16.mxu1 %v4414_v11 }
  0x9e   : > { %p5029_p7 = por %p5028_p5, %p5027_p2 }
  0xa0   : > { %723 = vmatpush1.bf16.msra.mxu0 %v4416_v12  ;;  %4289 = vmatpush1.bf16.msra.mxu1 %v4416_v12  ;;  %p5030_p13 = pnand %p5029_p7, %p5023_p4 }
  0xa1   : > { %724 = vmatprep.subr.bf16.mxu0 %v4417_v13  ;;  %4282 = vmatprep.subr.bf16.mxu1 %v4417_v13 }
  0xa4   : > { %725 = vmatpush1.bf16.msra.mxu0 %v4419_v14  ;;  %4290 = vmatpush1.bf16.msra.mxu1 %v4419_v14 }
  0xa5   : > { %726 = vmatprep.subr.bf16.mxu0 %v4420_v15  ;;  %4283 = vmatprep.subr.bf16.mxu1 %v4420_v15 }
  0xa8   : > { %727 = vmatpush1.bf16.msra.mxu0 %v4422_v16  ;;  %4291 = vmatpush1.bf16.msra.mxu1 %v4422_v16 }
  0xa9   : > { %4142 = vmatprep.subr.bf16.mxu1 %v4439_v17 }
  0xab   : > { %745 = vmatmul.mubr.bf16.vlgmr.msra.gmra.mxu0 %v4423_v18  ;;  %825 = vmatmul.mubr.bf16.vlgmr.msra.gmra.mxu1 %v4428_v19 }
  0xac   : > { %754 = vmatprep.mubr.bf16.mxu0 %v6260_v0  ;;  %834 = vmatprep.mubr.bf16.mxu1 %v6260_v0 }
  0xad   : > { %4143 = vmatpush3.bf16.msra.mxu1 %v4440_v20 }
  0xae   : > { %4144 = vmatprep.subr.bf16.mxu1 %v4441_v21 }
  0xb1   : > { %4145 = vmatpush3.bf16.msra.mxu1 %v4442_v23 }
  0xb2   : > { %4146 = vmatprep.subr.bf16.mxu1 %v4443_v24 }
  0xb3   : > { %755 = vmatmul.mubr.bf16.gmra.mxu0 %v4424_v22  ;;  %835 = vmatmul.mubr.bf16.gmra.mxu1 %v4430_v25 }
  0xb4   : > { %764 = vmatprep.mubr.bf16.mxu0 %v6260_v0  ;;  %844 = vmatprep.mubr.bf16.mxu1 %v6260_v0 }
  0xb5   : > { %4147 = vmatpush3.bf16.msra.mxu1 %v4444_v26 }
  0xb6   : > { %4148 = vmatprep.subr.bf16.mxu1 %v4445_v27 }
  0xb9   : > { %4149 = vmatpush3.bf16.msra.mxu1 %v4446_v28 }
  0xba   : > { %4150 = vmatprep.subr.bf16.mxu1 %v4447_v29 }
  0xbb   : > { %765 = vmatmul.mubr.bf16.gmra.mxu0 %v4425_v30  ;;  %845 = vmatmul.mubr.bf16.gmra.mxu1 %v4432_v31 }
  0xbc   : > { %774 = vmatprep.mubr.bf16.mxu0 %v6260_v0  ;;  %854 = vmatprep.mubr.bf16.mxu1 %v6260_v0 }
  0xbd   : > { %4151 = vmatpush3.bf16.msra.mxu1 %v4448_v32 }
  0xbe   : > { %4152 = vmatprep.subr.bf16.mxu1 %v4449_v33 }
  0xc1   : > { %4153 = vmatpush3.bf16.msra.mxu1 %v4450_v34 }
  0xc2   : > { %4154 = vmatprep.subr.bf16.mxu1 %v4451_v35 }
  0xc3   : > { %775 = vmatmul.mubr.bf16.gmra.mxu0 %v4426_v36  ;;  %855 = vmatmul.mubr.bf16.gmra.mxu1 %v4434_v37 }
  0xc4   : > { %784 = vmatprep.mubr.bf16.mxu0 %v6260_v0  ;;  %864 = vmatprep.mubr.bf16.mxu1 %v6260_v0 }
  0xc5   : > { %4155 = vmatpush3.bf16.msra.mxu1 %v4452_v38 }
  0xc6   : > { %4156 = vmatprep.subr.bf16.mxu1 %v4453_v47 }
  0xc9   : > { %4157 = vmatpush3.bf16.msra.mxu1 %v4454_v48 }
  0xcb   : > { %785 = vmatmul.mubr.bf16.gmra.mxu0 %v4427_v39  ;;  %865 = vmatmul.mubr.bf16.gmra.mxu1 %v4435_v40 }
  0xcc   : > { %794 = vmatprep.mubr.bf16.mxu0 %v6260_v0  ;;  %874 = vmatprep.mubr.bf16.mxu1 %v6260_v0 }
  0xd3   : > { %795 = vmatmul.mubr.bf16.gmra.mxu0 %v4429_v41  ;;  %875 = vmatmul.mubr.bf16.gmra.mxu1 %v4436_v42 }
  0xd4   : > { %804 = vmatprep.mubr.bf16.mxu0 %v6260_v0  ;;  %884 = vmatprep.mubr.bf16.mxu1 %v6260_v0 }
  0xdb   : > { %805 = vmatmul.mubr.bf16.gmra.mxu0 %v4431_v43  ;;  %885 = vmatmul.mubr.bf16.gmra.mxu1 %v4437_v44 }
  0xdc   : > { %814 = vmatprep.mubr.bf16.mxu0 %v6260_v0  ;;  %894 = vmatprep.mubr.bf16.mxu1 %v6260_v0 }
  0xe3   : > { %815 = vmatmul.mubr.bf16.gmra.mxu0 %v4433_v45  ;;  %895 = vmatmul.mubr.bf16.gmra.mxu1 %v4438_v46 }
 0x16b   : > { %v746_v53 = vpop.f32.mrf.mxu0  ;;  %v5494_v54 = vpop.f32.mrf.mxu1 }
 0x16c   : > { %v747_v4 = vadd.f32 %v746_v53, %v5503_v59 }
 0x16d   : > { %v748_v56 = vpop.f32.mrf.mxu0  ;;  %v5496_v57 = vpop.f32.mrf.mxu1 }
 0x16e   : > { %v749_v2 = vadd.f32 %v748_v56, %v5500_v58 }
 0x16f   : > { %v750_v60 = vpop.f32.mrf.mxu0  ;;  %v5505_v61 = vpop.f32.mrf.mxu1 }
 0x170   : > { %v751_v62 = vadd.f32 %v750_v60, %v5503_v59 }
 0x171   : > { %v752_v63 = vpop.f32.mrf.mxu0  ;;  %v5508_v1 = vpop.f32.mrf.mxu1 }
 0x172   : > { %v753_v3 = vadd.f32 %v752_v63, %v5500_v58  ;;  %v5517_v8 = vpack.c.bf16 %v751_v62, %v747_v4 }
 0x173   : > { %v756_v5 = vpop.f32.mrf.mxu0  ;;  %v5513_v6 = vpop.f32.mrf.mxu1 }
 0x174   : > { %v5515_v7 = vpack.c.bf16 %v753_v3, %v749_v2  ;;  %v757_v18 = vadd.f32 %v756_v5, %v5503_v59 }
 0x175   : > { %v758_v9 = vpop.f32.mrf.mxu0  ;;  %v5519_v10 = vpop.f32.mrf.mxu1 }
 0x176   : > { %1097 = vmatprep.mubr.bf16.mxu1 %v5515_v7  ;;  %v759_v16 = vadd.f32 %v758_v9, %v5500_v58 }
 0x177   : > { %v760_v11 = vpop.f32.mrf.mxu0  ;;  %1098 = vmatmul.mubr.bf16.vlgmr.msra.gmra.mxu1 %v5517_v8  ;;  %v5523_v12 = vpop.f32.mrf.mxu1 }
 0x178   : > { %v761_v13 = vadd.f32 %v760_v11, %v5503_v59 }
 0x179   : > { %v762_v14 = vpop.f32.mrf.mxu0  ;;  %v5526_v15 = vpop.f32.mrf.mxu1 }
 0x17a   : > { %v763_v17 = vadd.f32 %v762_v14, %v5500_v58  ;;  %v5535_v22 = vpack.c.bf16 %v761_v13, %v757_v18 }
 0x17b   : > { %v766_v19 = vpop.f32.mrf.mxu0  ;;  %v5531_v20 = vpop.f32.mrf.mxu1 }
 0x17c   : > { %v5533_v21 = vpack.c.bf16 %v763_v17, %v759_v16  ;;  %v767_v32 = vadd.f32 %v766_v19, %v5503_v59 }
 0x17d   : > { %v768_v23 = vpop.f32.mrf.mxu0  ;;  %v5537_v24 = vpop.f32.mrf.mxu1 }
 0x17e   : > { %1105 = vmatprep.mubr.bf16.mxu1 %v5533_v21  ;;  %v769_v30 = vadd.f32 %v768_v23, %v5500_v58 }
 0x17f   : > { %v770_v25 = vpop.f32.mrf.mxu0  ;;  %1106 = vmatmul.mubr.bf16.gmra.mxu1 %v5535_v22  ;;  %v5541_v26 = vpop.f32.mrf.mxu1 }
 0x180   : > { %v771_v27 = vadd.f32 %v770_v25, %v5503_v59 }
 0x181   : > { %v772_v28 = vpop.f32.mrf.mxu0  ;;  %v5544_v29 = vpop.f32.mrf.mxu1 }
 0x182   : > { %v773_v31 = vadd.f32 %v772_v28, %v5500_v58  ;;  %v5553_v36 = vpack.c.bf16 %v771_v27, %v767_v32 }
 0x183   : > { %v776_v33 = vpop.f32.mrf.mxu0  ;;  %v5549_v34 = vpop.f32.mrf.mxu1 }
 0x184   : > { %v5551_v35 = vpack.c.bf16 %v773_v31, %v769_v30  ;;  %v777_v46 = vadd.f32 %v776_v33, %v5503_v59 }
 0x185   : > { %v778_v37 = vpop.f32.mrf.mxu0  ;;  %v5555_v38 = vpop.f32.mrf.mxu1 }
 0x186   : > { %1113 = vmatprep.mubr.bf16.mxu1 %v5551_v35  ;;  %v779_v44 = vadd.f32 %v778_v37, %v5500_v58 }
 0x187   : > { %v780_v39 = vpop.f32.mrf.mxu0  ;;  %1114 = vmatmul.mubr.bf16.gmra.mxu1 %v5553_v36  ;;  %v5559_v40 = vpop.f32.mrf.mxu1 }
 0x188   : > { %v781_v41 = vadd.f32 %v780_v39, %v5503_v59 }
 0x189   : > { %v782_v42 = vpop.f32.mrf.mxu0  ;;  %v5562_v43 = vpop.f32.mrf.mxu1 }
 0x18a   : > { %v783_v45 = vadd.f32 %v782_v42, %v5500_v58  ;;  %v5571_v53 = vpack.c.bf16 %v781_v41, %v777_v46 }
 0x18b   : > { %v786_v47 = vpop.f32.mrf.mxu0  ;;  %v5567_v48 = vpop.f32.mrf.mxu1 }
 0x18c   : > { %v5569_v49 = vpack.c.bf16 %v783_v45, %v779_v44  ;;  %6315 = vst [vmem:[#allocation20_spill] sm:$0xff] %v5571_v53  ;;  %v787_v9 = vadd.f32 %v786_v47, %v5503_v59 }
 0x18d   : > { %v788_v55 = vpop.f32.mrf.mxu0  ;;  %v5573_v56 = vpop.f32.mrf.mxu1 }
 0x18e   : > { %1121 = vmatprep.mubr.bf16.mxu1 %v5569_v49  ;;  %v789_v3 = vadd.f32 %v788_v55, %v5500_v58 }
 0x18f   : > { %v790_v60 = vpop.f32.mrf.mxu0  ;;  %1122 = vmatmul.mubr.bf16.gmra.mxu1 %v5571_v53  ;;  %v5577_v62 = vpop.f32.mrf.mxu1 }
 0x190   : > { %v791_v63 = vadd.f32 %v790_v60, %v5503_v59 }
 0x191   : > { %v792_v2 = vpop.f32.mrf.mxu0  ;;  %v5582_v5 = vpop.f32.mrf.mxu1 }
 0x192   : > { %v793_v4 = vadd.f32 %v792_v2, %v5500_v58  ;;  %v5587_v14 = vpack.c.bf16 %v791_v63, %v787_v9 }
 0x193   : > { %v796_v11 = vpop.f32.mrf.mxu0  ;;  %v5590_v17 = vpop.f32.mrf.mxu1 }
 0x194   : > { %v5585_v13 = vpack.c.bf16 %v793_v4, %v789_v3  ;;  %6317 = vst [vmem:[#allocation22_spill] sm:$0xff] %v5587_v14  ;;  %v797_v30 = vadd.f32 %v796_v11, %v5503_v59  ;;  %v829_v11 = vadd.f32 %v5496_v57, %v5500_v58 }
 0x195   : > { %v798_v16 = vpop.f32.mrf.mxu0  ;;  %v5596_v28 = vpop.f32.mrf.mxu1 }
 0x196   : > { %6316 = vst [vmem:[#allocation21_spill] sm:$0xff] %v5585_v13  ;;  %1129 = vmatprep.mubr.bf16.mxu1 %v5585_v13  ;;  %v799_v25 = vadd.f32 %v798_v16, %v5500_v58  ;;  %v833_v16 = vadd.f32 %v5508_v1, %v5500_v58  ;;  %v839_v1 = vadd.f32 %v5519_v10, %v5500_v58 }
 0x197   : > { %v800_v18 = vpop.f32.mrf.mxu0  ;;  %1130 = vmatmul.mubr.bf16.gmra.mxu1 %v5587_v14  ;;  %v5604_v39 = vpop.f32.mrf.mxu1 }
 0x198   : > { %v801_v19 = vadd.f32 %v800_v18, %v5503_v59 }
 0x199   : > { %v802_v23 = vpop.f32.mrf.mxu0  ;;  %v5610_v47 = vpop.f32.mrf.mxu1 }
 0x19a   : > { %v803_v27 = vadd.f32 %v802_v23, %v5500_v58  ;;  %v5601_v33 = vpack.c.bf16 %v801_v19, %v797_v30 }
 0x19b   : > { %v806_v31 = vpop.f32.mrf.mxu0  ;;  %v5618_v4 = vpop.f32.mrf.mxu1 }
 0x19c   : > { %v5599_v32 = vpack.c.bf16 %v803_v27, %v799_v25  ;;  %6319 = vst [vmem:[#allocation24_spill] sm:$0xff] %v5601_v33  ;;  %v807_v55 = vadd.f32 %v806_v31, %v5503_v59  ;;  %v5629_v31 = vpack.c.bf16 %v833_v16, %v829_v11  ;;  %v847_v16 = vadd.f32 %v5531_v20, %v5503_v59 }
 0x19d   : > { %v808_v37 = vpop.f32.mrf.mxu0  ;;  %v888_v27 = vpop.f32.mrf.mxu1  ;;  %v857_v20 = vadd.f32 %v5549_v34, %v5503_v59 }
 0x19e   : > { %6318 = vst [vmem:[#allocation23_spill] sm:$0xff] %v5599_v32  ;;  %1137 = vmatprep.mubr.bf16.mxu1 %v5599_v32  ;;  %v809_v45 = vadd.f32 %v808_v37, %v5500_v58  ;;  %6322 = vst [vmem:[#allocation27_spill] sm:$0xff] %v5629_v31  ;;  %v889_v34 = vadd.f32 %v888_v27, %v5500_v58  ;;  %v879_v27 = vadd.f32 %v5596_v28, %v5500_v58 }
 0x19f   : > { %v810_v41 = vpop.f32.mrf.mxu0  ;;  %1138 = vmatmul.mubr.bf16.gmra.mxu1 %v5601_v33  ;;  %v890_v57 = vpop.f32.mrf.mxu1  ;;  %v871_v28 = vadd.f32 %v5577_v62, %v5503_v59 }
 0x1a0   : > { %v811_v42 = vadd.f32 %v810_v41, %v5503_v59 }
 0x1a1   : > { %v812_v44 = vpop.f32.mrf.mxu0 }
 0x1a2   : > { %v813_v46 = vadd.f32 %v812_v44, %v5500_v58  ;;  %v5615_v2 = vpack.c.bf16 %v811_v42, %v807_v55  ;;  %v843_v42 = vadd.f32 %v5526_v15, %v5500_v58  ;;  %v827_v44 = vadd.f32 %v5494_v54, %v5503_v59 }
 0x1a3   : > { %v816_v60 = vpop.f32.mrf.mxu0  ;;  %v849_v54 = vadd.f32 %v5537_v24, %v5500_v58 }
 0x1a4   : > { %v5613_v63 = vpack.c.bf16 %v813_v46, %v809_v45  ;;  %6321 = vst [vmem:[#allocation26_spill] sm:$0xff] %v5615_v2  ;;  %v817_v30 = vadd.f32 %v816_v60, %v5503_v59  ;;  %v831_v45 = vadd.f32 %v5505_v61, %v5503_v59  ;;  %v892_v46 = vpop.f32.mrf.mxu1  ;;  %v5649_v55 = vpack.c.bf16 %v843_v42, %v839_v1 }
 0x1a5   : > { %v818_v3 = vpop.f32.mrf.mxu0  ;;  %v853_v61 = vadd.f32 %v5544_v29, %v5500_v58  ;;  %v837_v60 = vadd.f32 %v5513_v6, %v5503_v59  ;;  %v859_v6 = vadd.f32 %v5555_v38, %v5500_v58 }
 0x1a6   : > { %6320 = vst [vmem:[#allocation25_spill] sm:$0xff] %v5613_v63  ;;  %1145 = vmatprep.mubr.bf16.mxu1 %v5613_v63  ;;  %v819_v23 = vadd.f32 %v818_v3, %v5500_v58  ;;  %6325 = vst [vmem:[#allocation30_spill] sm:$0xff] %v5649_v55  ;;  %v5652_v10 = vpack.c.bf16 %v831_v45, %v827_v44  ;;  %v896_v15 = vpop.f32.mrf.mxu1  ;;  %v841_v3 = vadd.f32 %v5523_v12, %v5503_v59 }
 0x1a7   : > { %v820_v9 = vpop.f32.mrf.mxu0  ;;  %1146 = vmatmul.mubr.bf16.gmra.mxu1 %v5615_v2  ;;  %v5667_v11 = vpack.c.bf16 %v853_v61, %v849_v54  ;;  %v863_v12 = vadd.f32 %v5562_v43, %v5500_v58  ;;  %v897_v1 = vadd.f32 %v896_v15, %v5503_v59  ;;  %v861_v44 = vadd.f32 %v5559_v40, %v5503_v59 }
 0x1a8   : > { %v821_v18 = vadd.f32 %v820_v9, %v5503_v59  ;;  %6326 = vst [vmem:[#allocation31_spill] sm:$0xff] %v5652_v10  ;;  %v898_v9 = vpop.f32.mrf.mxu1  ;;  %v5670_v24 = vpack.c.bf16 %v841_v3, %v837_v60  ;;  %v887_v15 = vadd.f32 %v5618_v4, %v5503_v59  ;;  %v891_v54 = vadd.f32 %v890_v57, %v5503_v59 }
 0x1a9   : > { %v822_v19 = vpop.f32.mrf.mxu0  ;;  %6327 = vst [vmem:[#allocation32_spill] sm:$0xff] %v5667_v11  ;;  %v899_v43 = vadd.f32 %v898_v9, %v5500_v58  ;;  %v5719_v40 = vpack.c.bf16 %v861_v44, %v857_v20  ;;  %v877_v4 = vadd.f32 %v5590_v17, %v5503_v59  ;;  %v881_v57 = vadd.f32 %v5604_v39, %v5503_v59 }
 0x1aa   : > { %v823_v25 = vadd.f32 %v822_v19, %v5500_v58  ;;  %v5633_v41 = vpack.c.bf16 %v821_v18, %v817_v30  ;;  %6328 = vst [vmem:[#allocation33_spill] sm:$0xff] %v5670_v24  ;;  %v900_v29 = vpop.f32.mrf.mxu1  ;;  %v851_v18 = vadd.f32 %v5541_v26, %v5503_v59  ;;  %v869_v26 = vadd.f32 %v5573_v56, %v5500_v58 }
 0x1ab   : > { %v873_v30 = vadd.f32 %v5582_v5, %v5500_v58  ;;  %v901_v42 = vadd.f32 %v900_v29, %v5503_v59  ;;  %v893_v56 = vadd.f32 %v892_v46, %v5500_v58  ;;  %6334 = vst [vmem:[#allocation39_spill] sm:$0xff] %v5719_v40  ;;  %v883_v46 = vadd.f32 %v5610_v47, %v5500_v58 }
 0x1ac   : > { %v5631_v37 = vpack.c.bf16 %v823_v25, %v819_v23  ;;  %6324 = vst [vmem:[#allocation29_spill] sm:$0xff] %v5633_v41  ;;  %v902_v19 = vpop.f32.mrf.mxu1  ;;  %v5685_v23 = vpack.c.bf16 %v863_v12, %v859_v6  ;;  %v5688_v38 = vpack.c.bf16 %v851_v18, %v847_v16  ;;  %v5733_v3 = vpack.c.bf16 %v891_v54, %v887_v15 }
 0x1ad   : > { %v903_v25 = vadd.f32 %v902_v19, %v5500_v58  ;;  %v5711_v5 = vpack.c.bf16 %v873_v30, %v869_v26  ;;  %v5716_v61 = vpack.c.bf16 %v901_v42, %v897_v1  ;;  %v5725_v60 = vpack.c.bf16 %v893_v56, %v889_v34 }
 0x1ae   : > { %6323 = vst [vmem:[#allocation28_spill] sm:$0xff] %v5631_v37  ;;  %1153 = vmatprep.mubr.bf16.mxu1 %v5631_v37  ;;  %1478 = vmatprep.subr.bf16.mxu1 %v5631_v37  ;;  %6329 = vst [vmem:[#allocation34_spill] sm:$0xff] %v5685_v23  ;;  %v867_v58 = vadd.f32 %v5567_v48, %v5503_v59  ;;  %v5741_v47 = vpack.c.bf16 %v883_v46, %v879_v27 }
 0x1af   : > { %1154 = vmatmul.mubr.bf16.gmra.mxu1 %v5633_v41  ;;  %6330 = vst [vmem:[#allocation35_spill] sm:$0xff] %v5688_v38  ;;  %v5709_v45 = vpack.c.bf16 %v903_v25, %v899_v43  ;;  %6332 = vst [vmem:[#allocation37_spill] sm:$0xff] %v5711_v5  ;;  %v5744_v17 = vpack.c.bf16 %v881_v57, %v877_v4 }
 0x1b0   : > { %1479 = vmatpush1.bf16.msra.mxu1 %v5633_v41  ;;  %1161 = vmatprep.mubr.bf16.mxu1 %v5629_v31  ;;  %6333 = vst [vmem:[#allocation38_spill] sm:$0xff] %v5716_v61  ;;  %6335 = vst [vmem:[#allocation40_spill] sm:$0xff] %v5725_v60  ;;  %v5747_v39 = vpack.c.bf16 %v871_v28, %v867_v58 }
 0x1b1   : > { %1480 = vmatprep.subr.bf16.mxu1 %v5613_v63  ;;  %6331 = vst [vmem:[#allocation36_spill] sm:$0xff] %v5709_v45  ;;  %6336 = vst [vmem:[#allocation41_spill] sm:$0xff] %v5733_v3 }
 0x1b2   : > { %6337 = vst [vmem:[#allocation42_spill] sm:$0xff] %v5741_v47  ;;  %6338 = vst [vmem:[#allocation43_spill] sm:$0xff] %v5744_v17 }
 0x1b3   : > { %6339 = vst [vmem:[#allocation44_spill] sm:$0xff] %v5747_v39 }
 0x1b4   : > { %1481 = vmatpush1.bf16.msra.mxu1 %v5615_v2 }
 0x1b5   : > { %1482 = vmatprep.subr.bf16.mxu1 %v5599_v32 }
 0x1b7   : > { %1162 = vmatmul.mubr.bf16.gmra.mxu1 %v5652_v10 }
 0x1b8   : > { %1483 = vmatpush1.bf16.msra.mxu1 %v5601_v33  ;;  %1169 = vmatprep.mubr.bf16.mxu1 %v5649_v55 }
 0x1b9   : > { %1484 = vmatprep.subr.bf16.mxu1 %v5585_v13 }
 0x1bc   : > { %1485 = vmatpush1.bf16.msra.mxu1 %v5587_v14 }
 0x1bd   : > { %1486 = vmatprep.subr.bf16.mxu1 %v5569_v49 }
 0x1bf   : > { %1170 = vmatmul.mubr.bf16.gmra.mxu1 %v5670_v24 }
 0x1c0   : > { %1487 = vmatpush1.bf16.msra.mxu1 %v5571_v53  ;;  %1177 = vmatprep.mubr.bf16.mxu1 %v5667_v11 }
 0x1c1   : > { %1488 = vmatprep.subr.bf16.mxu1 %v5551_v35 }
 0x1c4   : > { %1489 = vmatpush1.bf16.msra.mxu1 %v5553_v36 }
 0x1c5   : > { %1490 = vmatprep.subr.bf16.mxu1 %v5533_v21 }
 0x1c7   : > { %1178 = vmatmul.mubr.bf16.gmra.mxu1 %v5688_v38 }
 0x1c8   : > { %1491 = vmatpush1.bf16.msra.mxu1 %v5535_v22  ;;  %1185 = vmatprep.mubr.bf16.mxu1 %v5685_v23 }
 0x1c9   : > { %1492 = vmatprep.subr.bf16.mxu1 %v5515_v7 }
 0x1cc   : > { %1493 = vmatpush1.bf16.msra.mxu1 %v5517_v8 }
 0x1cd   : > { %1494 = vmatprep.subr.bf16.mxu1 %v5709_v45 }
 0x1cf   : > { %1186 = vmatmul.mubr.bf16.gmra.mxu1 %v5719_v40 }
 0x1d0   : > { %1495 = vmatpush2.bf16.msra.mxu1 %v5716_v61  ;;  %1193 = vmatprep.mubr.bf16.mxu1 %v5711_v5 }
 0x1d1   : > { %1496 = vmatprep.subr.bf16.mxu1 %v5725_v60 }
 0x1d4   : > { %1497 = vmatpush2.bf16.msra.mxu1 %v5733_v3 }
 0x1d5   : > { %1498 = vmatprep.subr.bf16.mxu1 %v5741_v47 }
 0x1d7   : > { %1194 = vmatmul.mubr.bf16.gmra.mxu1 %v5747_v39 }
 0x1d8   : > { %1499 = vmatpush2.bf16.msra.mxu1 %v5744_v17  ;;  %1201 = vmatprep.mubr.bf16.mxu1 %v5741_v47 }
 0x1d9   : > { %1500 = vmatprep.subr.bf16.mxu1 %v5711_v5 }
 0x1dc   : > { %1501 = vmatpush2.bf16.msra.mxu1 %v5747_v39 }
 0x1dd   : > { %1502 = vmatprep.subr.bf16.mxu1 %v5685_v23 }
 0x1df   : > { %1202 = vmatmul.mubr.bf16.gmra.mxu1 %v5744_v17 }
 0x1e0   : > { %1503 = vmatpush2.bf16.msra.mxu1 %v5719_v40  ;;  %1209 = vmatprep.mubr.bf16.mxu1 %v5725_v60 }
 0x1e1   : > { %1504 = vmatprep.subr.bf16.mxu1 %v5667_v11 }
 0x1e4   : > { %1505 = vmatpush2.bf16.msra.mxu1 %v5688_v38 }
 0x1e5   : > { %1506 = vmatprep.subr.bf16.mxu1 %v5649_v55 }
 0x1e7   : > { %1210 = vmatmul.mubr.bf16.gmra.mxu1 %v5733_v3 }
 0x1e8   : > { %1507 = vmatpush2.bf16.msra.mxu1 %v5670_v24  ;;  %1217 = vmatprep.mubr.bf16.mxu1 %v5709_v45 }
 0x1e9   : > { %1508 = vmatprep.subr.bf16.mxu1 %v5629_v31 }
 0x1ec   : > { %1509 = vmatpush2.bf16.msra.mxu1 %v5652_v10 }
 0x1ef   : > { %1218 = vmatmul.mubr.bf16.gmra.mxu1 %v5716_v61 }
 0x237   : > { %v4158_v59 = vpop.f32.mrf.mxu1 }
 0x239   : > { %v4159_v48 = vpop.f32.mrf.mxu1 }
 0x23a   : > { %v5768_v62 = vadd.f32 %v4159_v48, %v4158_v59 }
 0x23b   : > { %v4161_v9 = vpop.f32.mrf.mxu1 }
 0x23c   : > { %v1265_v42 = vsel %vm1264_vm0, %v5768_v62, -inf }
 0x23d   : > { %v4162_v29 = vpop.f32.mrf.mxu1 }
 0x23e   : > { %v5770_v6 = vadd.f32 %v4162_v29, %v4161_v9 }
 0x23f   : > { %v4164_v12 = vpop.f32.mrf.mxu1 }
 0x240   : > { %v1266_v27 = vsel %vm1264_vm0, %v5770_v6, -inf }
 0x241   : > { %v4165_v16 = vpop.f32.mrf.mxu1 }
 0x242   : > { %v5772_v18 = vadd.f32 %v4165_v16, %v4164_v12 }
 0x243   : > { %v4167_v19 = vpop.f32.mrf.mxu1 }
 0x244   : > { %v1267_v59 = vsel %vm1264_vm0, %v5772_v18, -inf }
 0x245   : > { %v4168_v43 = vpop.f32.mrf.mxu1 }
 0x246   : > { %v5774_v25 = vadd.f32 %v4168_v43, %v4167_v19 }
 0x247   : > { %v4170_v20 = vpop.f32.mrf.mxu1 }
 0x248   : > { %v1268_v19 = vsel %vm1264_vm0, %v5774_v25, -inf }
 0x249   : > { %v4171_v26 = vpop.f32.mrf.mxu1 }
 0x24a   : > { %v5776_v30 = vadd.f32 %v4171_v26, %v4170_v20 }
 0x24b   : > { %v4173_v1 = vpop.f32.mrf.mxu1 }
 0x24c   : > { %v1269_v44 = vsel %vm1264_vm0, %v5776_v30, -inf }
 0x24d   : > { %v1270_v34 = vmax.f32 %v1265_v42, %v1269_v44  ;;  %v4174_v56 = vpop.f32.mrf.mxu1 }
 0x24e   : > { %v5782_v15 = vadd.f32 %v4174_v56, %v4173_v1 }
 0x24f   : > { %v4176_v54 = vpop.f32.mrf.mxu1 }
 0x250   : > { %v1271_v46 = vsel %vm1264_vm0, %v5782_v15, -inf }
 0x251   : > { %v1272_v4 = vmax.f32 %v1266_v27, %v1271_v46  ;;  %v4177_v57 = vpop.f32.mrf.mxu1 }
 0x252   : > { %v5788_v58 = vadd.f32 %v4177_v57, %v4176_v54 }
 0x253   : > { %v4179_v28 = vpop.f32.mrf.mxu1 }
 0x254   : > { %v1273_v48 = vsel %vm1264_vm0, %v5788_v58, -inf }
 0x255   : > { %v1274_v9 = vmax.f32 %v1267_v59, %v1273_v48  ;;  %v4180_v29 = vpop.f32.mrf.mxu1 }
 0x256   : > { %v5794_v12 = vadd.f32 %v4180_v29, %v4179_v28 }
 0x257   : > { %v4182_v16 = vpop.f32.mrf.mxu1 }
 0x258   : > { %v1275_v43 = vsel %vm1264_vm0, %v5794_v12, -inf }
 0x259   : > { %v1276_v20 = vmax.f32 %v1268_v19, %v1275_v43  ;;  %v4183_v26 = vpop.f32.mrf.mxu1 }
 0x25a   : > { %v5800_v1 = vadd.f32 %v4183_v26, %v4182_v16 }
 0x25b   : > { %v4185_v42 = vpop.f32.mrf.mxu1 }
 0x25c   : > { %v1277_v44 = vsel %vm1264_vm0, %v5800_v1, -inf }
 0x25d   : > { %v5804_v56 = vmax.f32 %v1270_v34, %v1277_v44  ;;  %v4186_v54 = vpop.f32.mrf.mxu1 }
 0x25e   : > { %v5806_v27 = vadd.f32 %v4186_v54, %v4185_v42 }
 0x25f   : > { %v4188_v46 = vpop.f32.mrf.mxu1 }
 0x260   : > { %v1279_v57 = vsel %vm1264_vm0, %v5806_v27, -inf }
 0x261   : > { %v5810_v28 = vmax.f32 %v1272_v4, %v1279_v57  ;;  %v4189_v59 = vpop.f32.mrf.mxu1 }
 0x262   : > { %v5812_v48 = vadd.f32 %v4189_v59, %v4188_v46 }
 0x263   : > { %v4191_v29 = vpop.f32.mrf.mxu1 }
 0x264   : > { %v1281_v16 = vsel %vm1264_vm0, %v5812_v48, -inf }
 0x265   : > { %v5816_v19 = vmax.f32 %v1274_v9, %v1281_v16  ;;  %v4192_v34 = vpop.f32.mrf.mxu1 }
 0x266   : > { %v5818_v43 = vadd.f32 %v4192_v34, %v4191_v29 }
 0x267   : > { %v4194_v26 = vpop.f32.mrf.mxu1 }
 0x268   : > { %v1283_v42 = vsel %vm1264_vm0, %v5818_v43, -inf }
 0x269   : > { %v5822_v44 = vmax.f32 %v1276_v20, %v1283_v42  ;;  %v4195_v4 = vpop.f32.mrf.mxu1 }
 0x26a   : > { %v5824_v54 = vadd.f32 %v4195_v4, %v4194_v26 }
 0x26b   : > { %v4197_v46 = vpop.f32.mrf.mxu1 }
 0x26c   : > { %v1285_v57 = vsel %vm1264_vm0, %v5824_v54, -inf }
 0x26d   : > { %v1286_v59 = vmax.f32 %v5804_v56, %v1285_v57  ;;  %v4198_v9 = vpop.f32.mrf.mxu1 }
 0x26e   : > { %v5829_v16 = vadd.f32 %v4198_v9, %v4197_v46 }
 0x26f   : > { %v4200_v29 = vpop.f32.mrf.mxu1 }
 0x270   : > { %v1287_v34 = vsel %vm1264_vm0, %v5829_v16, -inf }
 0x271   : > { %v1288_v51 = vmax.f32 %v5810_v28, %v1287_v34  ;;  %v4201_v20 = vpop.f32.mrf.mxu1 }
 0x273   : > { %v4203_v42 = vpop.f32.mrf.mxu1 }
 0x275   : > { %v4204_v0 = vpop.f32.mrf.mxu1 }
 0x277   : > { %v4206_v26 = vpop.f32.mrf.mxu1 }
 0x279   : > { %v4207_v4 = vpop.f32.mrf.mxu1 }
 0x27a   : > { %v5834_v10 = vadd.f32 %v4207_v4, %v4206_v26  ;;  %v5850_v26 = vadd.f32 %v4201_v20, %v4200_v29 }
 0x27b   : > { %v4209_v52 = vpop.f32.mrf.mxu1 }
 0x27c   : > { %v1293_v33 = vsel %vm1264_vm0, %v5834_v10, -inf  ;;  %v1289_v29 = vsel %vm1264_vm0, %v5850_v26, -inf }
 0x27d   : > { %v4210_v61 = vpop.f32.mrf.mxu1 }
 0x27e   : > { %v5836_v31 = vadd.f32 %v4210_v61, %v4209_v52  ;;  %v5852_v52 = vadd.f32 %v4204_v0, %v4203_v42 }
 0x27f   : > { %v4212_v45 = vpop.f32.mrf.mxu1 }
 0x280   : > { %v1295_v32 = vsel %vm1264_vm0, %v5836_v31, -inf }
 0x281   : > { %v4213_v3 = vpop.f32.mrf.mxu1 }
 0x282   : > { %v5860_v53 = vadd.f32 %v4213_v3, %v4212_v45 }
 0x283   : > { %v4215_v60 = vpop.f32.mrf.mxu1 }
 0x285   : > { %v4216_v56 = vpop.f32.mrf.mxu1 }
 0x287   : > { %v4218_v57 = vpop.f32.mrf.mxu1 }
 0x289   : > { %v4219_v46 = vpop.f32.mrf.mxu1 }
 0x28a   : > { %v5838_v37 = vadd.f32 %v4219_v46, %v4218_v57  ;;  %v1294_v46 = vmax.f32 %v1286_v59, %v1293_v33  ;;  %v1297_v59 = vsel %vm1264_vm0, %v5860_v53, -inf }
 0x28b   : > { %v4221_v9 = vpop.f32.mrf.mxu1 }
 0x28d   : > { %v4222_v17 = vpop.f32.mrf.mxu1 }
 0x28e   : > { %v5840_v2 = vadd.f32 %v4222_v17, %v4221_v9  ;;  %v1301_v17 = vsel %vm1264_vm0, %v5838_v37, -inf  ;;  %v1296_v9 = vmax.f32 %v1288_v51, %v1295_v32 }
 0x28f   : > { %v4224_v47 = vpop.f32.mrf.mxu1  ;;  %v1302_v20 = vmax.f32 %v1294_v46, %v1301_v17 }
 0x290   : > { %v1303_v4 = vsel %vm1264_vm0, %v5840_v2, -inf }
 0x291   : > { %v4225_v39 = vpop.f32.mrf.mxu1  ;;  %v1304_v33 = vmax.f32 %v1296_v9, %v1303_v4 }
 0x292   : > { %v5872_v32 = vadd.f32 %v4225_v39, %v4224_v47 }
 0x293   : > { %v4227_v5 = vpop.f32.mrf.mxu1 }
 0x295   : > { %v4228_v40 = vpop.f32.mrf.mxu1 }
 0x296   : > { %v5874_v45 = vadd.f32 %v4228_v40, %v4227_v5  ;;  %v1290_v40 = vmax.f32 %v5816_v19, %v1289_v29 }
 0x297   : > { %v4230_v28 = vpop.f32.mrf.mxu1 }
 0x299   : > { %v4231_v34 = vpop.f32.mrf.mxu1 }
 0x29a   : > { %v5846_v14 = vadd.f32 %v4231_v34, %v4230_v28 }
 0x29b   : > { %v4233_v23 = vpop.f32.mrf.mxu1 }
 0x29c   : > { %v1309_v0 = vsel %vm1264_vm0, %v5846_v14, -inf }
 0x29d   : > { %v4234_v38 = vpop.f32.mrf.mxu1  ;;  %v1310_v42 = vmax.f32 %v1302_v20, %v1309_v0  ;;  %v1307_v0 = vsel %vm1264_vm0, %v5874_v45, -inf }
 0x29e   : > { %v5848_v13 = vadd.f32 %v4234_v38, %v4233_v23  ;;  %v5862_v23 = vadd.f32 %v4216_v56, %v4215_v60 }
 0x29f   : > { %v4236_v11 = vpop.f32.mrf.mxu1 }
 0x2a0   : > { %v1311_v38 = vsel %vm1264_vm0, %v5848_v13, -inf }
 0x2a1   : > { %v4237_v24 = vpop.f32.mrf.mxu1  ;;  %v1312_v56 = vmax.f32 %v1304_v33, %v1311_v38 }
 0x2a2   : > { %v5884_v17 = vadd.f32 %v4237_v24, %v4236_v11 }
 0x2a3   : > { %v4239_v55 = vpop.f32.mrf.mxu1 }
 0x2a4   : > { %v1313_v19 = vsel %vm1264_vm0, %v5884_v17, -inf }
 0x2a5   : > { %v4240_v41 = vpop.f32.mrf.mxu1 }
 0x2a6   : > { %v5886_v47 = vadd.f32 %v4240_v41, %v4239_v55  ;;  %v1298_v41 = vmax.f32 %v1290_v40, %v1297_v59 }
 0x2a7   : > { %v4242_v63 = vpop.f32.mrf.mxu1 }
 0x2a9   : > { %v4243_v61 = vpop.f32.mrf.mxu1 }
 0x2aa   : > { %v5858_v57 = vadd.f32 %v4243_v61, %v4242_v63  ;;  %v1291_v63 = vsel %vm1264_vm0, %v5852_v52, -inf  ;;  %v1299_v61 = vsel %vm1264_vm0, %v5862_v23, -inf }
 0x2ab   : > { %v4245_v28 = vpop.f32.mrf.mxu1  ;;  %v1292_v39 = vmax.f32 %v5822_v44, %v1291_v63  ;;  %v1315_v44 = vsel %vm1264_vm0, %v5886_v47, -inf }
 0x2ac   : > { %v1317_v60 = vsel %vm1264_vm0, %v5858_v57, -inf }
 0x2ad   : > { %v4246_v51 = vpop.f32.mrf.mxu1  ;;  %v1318_v4 = vmax.f32 %v1310_v42, %v1317_v60  ;;  %v1300_v55 = vmax.f32 %v1292_v39, %v1299_v61 }
 0x2ae   : > { %v5878_v3 = vadd.f32 %v4246_v51, %v4245_v28  ;;  %v1305_v28 = vsel %vm1264_vm0, %v5872_v32, -inf }
 0x2af   : > { %v4248_v34 = vpop.f32.mrf.mxu1  ;;  %v1306_v29 = vmax.f32 %v1298_v41, %v1305_v28  ;;  %v1308_v63 = vmax.f32 %v1300_v55, %v1307_v0 }
 0x2b0   : > { %v1319_v5 = vsel %vm1264_vm0, %v5878_v3, -inf }
 0x2b1   : > { %v1320_v46 = vmax.f32 %v1312_v56, %v1319_v5  ;;  %v4249_v9 = vpop.f32.mrf.mxu1  ;;  %v1314_v60 = vmax.f32 %v1306_v29, %v1313_v19  ;;  %v1316_v42 = vmax.f32 %v1308_v63, %v1315_v44 }
 0x2b2   : > { %v5896_v11 = vadd.f32 %v4249_v9, %v4248_v34 }
 0x2b3   : > { %v1325_v24 = vmax.f32 %v1318_v4, %v1320_v46  ;;  %v4251_v38 = vpop.f32.mrf.mxu1 }
 0x2b4   : > { %v1321_v33 = vsel %vm1264_vm0, %v5896_v11, -inf }
 0x2b5   : > { %v4252_v20 = vpop.f32.mrf.mxu1  ;;  %v1322_v56 = vmax.f32 %v1314_v60, %v1321_v33 }
 0x2b6   : > { %v5904_v51 = vadd.f32 %v4252_v20, %v4251_v38 }
 0x2b8   : > { %v1323_v59 = vsel %vm1264_vm0, %v5904_v51, -inf }
 0x2b9   : > { %v1324_v34 = vmax.f32 %v1316_v42, %v1323_v59 }
 0x2bb   : > { %v1326_v61 = vmax.f32 %v1322_v56, %v1324_v34  ;;  %v5109_v56 = vmov 1065369472  }
 0x2bc   : > { %4254 = vmatprep.subr.bf16.mxu1 %v5109_v56 }
 0x2bd   : > { %v1327_v5 = vmax.f32 %v1325_v24, %v1326_v61 }
 0x2bf   : > { %v1328_v40 = vrot.slane %v1327_v5, 4 }
 0x2c1   : > { %v1329_v39 = vmax.f32 %v1327_v5, %v1328_v40 }
 0x2c3   : > { %v1330_v4 = vrot.slane %v1329_v39, 2 }
 0x2c5   : > { %v1331_v46 = vmax.f32 %v1329_v39, %v1330_v4 }
 0x2c7   : > { %v1332_v9 = vrot.slane %v1331_v46, 1 }
 0x2c9   : > { %v5908_v28 = vmax.f32 %v1331_v46, %v1332_v9 }
 0x2cb   : > { %v1334_v0 = vsub.f32 %v5768_v62, %v5908_v28  ;;  %v1335_v41 = vsub.f32 %v5770_v6, %v5908_v28  ;;  %v1336_v55 = vsub.f32 %v5772_v18, %v5908_v28  ;;  %v1337_v38 = vsub.f32 %v5774_v25, %v5908_v28 }
 0x2cc   : > { %v1338_v24 = vsub.f32 %v5776_v30, %v5908_v28  ;;  %v1339_v19 = vsub.f32 %v5782_v15, %v5908_v28  ;;  %v1340_v44 = vsub.f32 %v5788_v58, %v5908_v28  ;;  %v1341_v62 = vsub.f32 %v5794_v12, %v5908_v28 }
 0x2cd   : > { %v1342_v6 = vsub.f32 %v5800_v1, %v5908_v28  ;;  %v1343_v18 = vsub.f32 %v5806_v27, %v5908_v28  ;;  %v1344_v25 = vsub.f32 %v5812_v48, %v5908_v28  ;;  %v1345_v30 = vsub.f32 %v5818_v43, %v5908_v28 }
 0x2ce   : > { %v1346_v15 = vsub.f32 %v5824_v54, %v5908_v28  ;;  %v1347_v58 = vsub.f32 %v5829_v16, %v5908_v28  ;;  %v1350_v12 = vsub.f32 %v5834_v10, %v5908_v28  ;;  %v1351_v1 = vsub.f32 %v5836_v31, %v5908_v28 }
 0x2cf   : > { %v1366_v63 = vmul.f32 1.442695, %v1334_v0  ;;  %v1368_v20 = vmul.f32 1.442695, %v1335_v41  ;;  %v1370_v48 = vmul.f32 1.442695, %v1336_v55  ;;  %v1352_v34 = vsub.f32 %v5860_v53, %v5908_v28 }
 0x2d0   : > { %v1398_v29 = vmul.f32 1.442695, %v1350_v12  ;;  %v1400_v27 = vmul.f32 1.442695, %v1351_v1  ;;  %v1372_v43 = vmul.f32 1.442695, %v1337_v38  ;;  %v1353_v5 = vsub.f32 %v5862_v23, %v5908_v28 }
 0x2d1   : > { %v1374_v33 = vmul.f32 1.442695, %v1338_v24  ;;  %v1376_v54 = vmul.f32 1.442695, %v1339_v19  ;;  %v1378_v60 = vmul.f32 1.442695, %v1340_v44  ;;  %v1354_v39 = vsub.f32 %v5838_v37, %v5908_v28 }
 0x2d2   : > { %4794 = vpow2.f32 %v1398_v29  ;;  %v1380_v16 = vmul.f32 1.442695, %v1341_v62  ;;  %v1382_v10 = vmul.f32 1.442695, %v1342_v6  ;;  %v1384_v42 = vmul.f32 1.442695, %v1343_v18 }
 0x2d3   : > { %4796 = vpow2.f32 %v1400_v27  ;;  %v1386_v31 = vmul.f32 1.442695, %v1344_v25  ;;  %v1388_v59 = vmul.f32 1.442695, %v1345_v30  ;;  %v1390_v61 = vmul.f32 1.442695, %v1346_v15 }
 0x2d4   : > { %4798 = vpow2.f32 %v1366_v63  ;;  %v1392_v40 = vmul.f32 1.442695, %v1347_v58  ;;  %v1355_v46 = vsub.f32 %v5840_v2, %v5908_v28  ;;  %v1402_v0 = vmul.f32 1.442695, %v1352_v34 }
 0x2d5   : > { %4800 = vpow2.f32 %v1368_v20  ;;  %v1404_v55 = vmul.f32 1.442695, %v1353_v5  ;;  %v1356_v23 = vsub.f32 %v5872_v32, %v5908_v28  ;;  %v1406_v24 = vmul.f32 1.442695, %v1354_v39 }
 0x2d6   : > { %4802 = vpow2.f32 %v1370_v48  ;;  %v1357_v37 = vsub.f32 %v5874_v45, %v5908_v28  ;;  %v1408_v44 = vmul.f32 1.442695, %v1355_v46  ;;  %v1348_v6 = vsub.f32 %v5850_v26, %v5908_v28 }
 0x2d7   : > { %4804 = vpow2.f32 %v1372_v43  ;;  %v1349_v25 = vsub.f32 %v5852_v52, %v5908_v28  ;;  %v1358_v15 = vsub.f32 %v5846_v14, %v5908_v28  ;;  %v1410_v45 = vmul.f32 1.442695, %v1356_v23 }
 0x2d8   : > { %4806 = vpow2.f32 %v1374_v33  ;;  %v1359_v12 = vsub.f32 %v5848_v13, %v5908_v28  ;;  %v1412_v1 = vmul.f32 1.442695, %v1357_v37  ;;  %v1394_v27 = vmul.f32 1.442695, %v1348_v6 }
 0x2d9   : > { %4808 = vpow2.f32 %v1376_v54  ;;  %v1396_v52 = vmul.f32 1.442695, %v1349_v25  ;;  %v1360_v43 = vsub.f32 %v5884_v17, %v5908_v28  ;;  %v1414_v14 = vmul.f32 1.442695, %v1358_v15 }
 0x2da   : > { %4810 = vpow2.f32 %v1378_v60  ;;  %v1361_v54 = vsub.f32 %v5886_v47, %v5908_v28  ;;  %v1416_v13 = vmul.f32 1.442695, %v1359_v12  ;;  %v1363_v34 = vsub.f32 %v5878_v3, %v5908_v28 }
 0x2db   : > { %4812 = vpow2.f32 %v1380_v16  ;;  %v1418_v17 = vmul.f32 1.442695, %v1360_v43  ;;  %v1365_v39 = vsub.f32 %v5904_v51, %v5908_v28  ;;  %v4464_v43 = vld [vmem:[#allocation7 + $0x160] ss:$8 sps:$4 sm:$0xff]  }
 0x2dc   : > { %4814 = vpow2.f32 %v1382_v10 }
 0x2dd   : > { %4816 = vpow2.f32 %v1384_v42  ;;  %v1428_v3 = vmul.f32 1.442695, %v1365_v39  ;;  %v4496_v39 = vld [vmem:[#allocation7 + $0x114] ss:$8 sps:$4 sm:$0xff]  }
 0x2de   : > { %4818 = vpow2.f32 %v1386_v31 }
 0x2df   : > { %v4795_v4 = vpop.eup %4794  ;;  %4820 = vpow2.f32 %v1388_v59  ;;  %v1362_v59 = vsub.f32 %v5858_v57, %v5908_v28  ;;  %v1364_v57 = vsub.f32 %v5896_v11, %v5908_v28 }
 0x2e0   : > { %v4797_v9 = vpop.eup %4796  ;;  %4822 = vpow2.f32 %v1390_v61  ;;  %v1420_v61 = vmul.f32 1.442695, %v1361_v54  ;;  %v4467_v54 = vld [vmem:[#allocation7 + $0x50] ss:$8 sps:$4 sm:$0xff]  }
 0x2e1   : > { %v4799_v53 = vpop.eup %4798  ;;  %v1438_v41 = vpack.c.bf16 %v4797_v9, %v4795_v4  ;;  %4824 = vpow2.f32 %v1392_v40  ;;  %v1422_v4 = vmul.f32 1.442695, %v1362_v59  ;;  %v1424_v9 = vmul.f32 1.442695, %v1363_v34  ;;  %v4479_v59 = vld [vmem:[#allocation7 + $0x30] ss:$8 sps:$4 sm:$0xff]  }
 0x2e2   : > { %v4801_v38 = vpop.eup %4800  ;;  %4826 = vpow2.f32 %v1402_v0  ;;  %v4487_v34 = vld [vmem:[#allocation7 + $0x24] ss:$8 sps:$4 sm:$0xff]  }
 0x2e3   : > { %v4803_v19 = vpop.eup %4802  ;;  %1462 = vxpose.xlu0.c.b16.start [1/8] (narrow) %v1438_v41, 16  ;;  %v1430_v2 = vpack.c.bf16 %v4801_v38, %v4799_v53  ;;  %4828 = vpow2.f32 %v1404_v55  ;;  %v1426_v55 = vmul.f32 1.442695, %v1364_v57  ;;  %v4499_v57 = vld [vmem:[#allocation7 + $0x4] ss:$8 sps:$4 sm:$0xff]  }
 0x2e4   : > { %v4805_v62 = vpop.eup %4804  ;;  %4830 = vpow2.f32 %v1406_v24 }
 0x2e5   : > { %v4807_v18 = vpop.eup %4806  ;;  %1446 = vxpose.xlu1.c.b16.start [1/8] (narrow) %v1430_v2, 16  ;;  %v1431_v32 = vpack.c.bf16 %v4805_v62, %v4803_v19  ;;  %4832 = vpow2.f32 %v1408_v44 }
 0x2e6   : > { %v4809_v30 = vpop.eup %4808  ;;  %4834 = vpow2.f32 %v1410_v45 }
 0x2e7   : > { %v4811_v58 = vpop.eup %4810  ;;  %v1432_v26 = vpack.c.bf16 %v4809_v30, %v4807_v18  ;;  %4836 = vpow2.f32 %v1412_v1 }
 0x2e8   : > { %v4813_v29 = vpop.eup %4812  ;;  %4838 = vpow2.f32 %v1394_v27  ;;  %v4458_v27 = vld [vmem:[#allocation7 + $0x170] ss:$8 sps:$4 sm:$0xff]  }
 0x2e9   : > { %v4815_v63 = vpop.eup %4814  ;;  %1447 = vxpose.xlu1.c.b16.cont [2/8] (narrow) %v1431_v32, 16  ;;  %v1433_v20 = vpack.c.bf16 %v4813_v29, %v4811_v58  ;;  %4840 = vpow2.f32 %v1396_v52  ;;  %v6340_v58 = vmov 0   ;;  %v4457_v29 = vld [vmem:[#allocation7 + $0x74] ss:$8 sps:$4 sm:$0xff]   ;;  %v4463_v52 = vld [vmem:[#allocation7 + $0x64] ss:$8 sps:$4 sm:$0xff]  }
 0x2ea   : > { %v4817_v48 = vpop.eup %4816  ;;  %4842 = vpow2.f32 %v1414_v14  ;;  %2166 = vmatprep.subr.bf16.mxu0 %v4457_v29  ;;  %v4469_v14 = vld [vmem:[#allocation7 + $0x54] ss:$8 sps:$4 sm:$0xff]  }
 0x2eb   : > { %v4819_v33 = vpop.eup %4818  ;;  %v1434_v60 = vpack.c.bf16 %v4817_v48, %v4815_v63  ;;  %4844 = vpow2.f32 %v1416_v13  ;;  %v4460_v63 = vld [vmem:[#allocation7 + $0x174] ss:$8 sps:$4 sm:$0xff]   ;;  %v4461_v48 = vld [vmem:[#allocation7 + $0x60] ss:$8 sps:$4 sm:$0xff]   ;;  %v4475_v13 = vld [vmem:[#allocation7 + $0x44] ss:$8 sps:$4 sm:$0xff]  }
 0x2ec   : > { %v4821_v16 = vpop.eup %4820  ;;  %4846 = vpow2.f32 %v1418_v17  ;;  %v4482_v17 = vld [vmem:[#allocation7 + $0x130] ss:$8 sps:$4 sm:$0xff]   ;;  %v4544_v29 = vld [vmem:[#allocation7 + $0x194] ss:$8 sps:$4 sm:$0xff]  }
 0x2ed   : > { %v4823_v10 = vpop.eup %4822  ;;  %1448 = vxpose.xlu1.c.b16.cont [3/8] (narrow) %v1432_v26, 16  ;;  %v1435_v42 = vpack.c.bf16 %v4821_v16, %v4819_v33  ;;  %4848 = vpow2.f32 %v1420_v61  ;;  %v4455_v26 = vld [vmem:[#allocation7 + $0x70] ss:$8 sps:$4 sm:$0xff]   ;;  %v4472_v33 = vld [vmem:[#allocation7 + $0x154] ss:$8 sps:$4 sm:$0xff]  }
 0x2ee   : > { %v4825_v31 = vpop.eup %4824  ;;  %4850 = vpow2.f32 %v1422_v4  ;;  %2167 = vmatpush1.bf16.msra.mxu0 %v4455_v26  ;;  %v4473_v16 = vld [vmem:[#allocation7 + $0x40] ss:$8 sps:$4 sm:$0xff]   ;;  %v4490_v61 = vld [vmem:[#allocation7 + $0x124] ss:$8 sps:$4 sm:$0xff]   ;;  %v4491_v4 = vld [vmem:[#allocation7 + $0x10] ss:$8 sps:$4 sm:$0xff]  }
 0x2ef   : > { %v1436_v47 = vpack.c.bf16 %v4825_v31, %v4823_v10  ;;  %v4827_v5 = vpop.eup %4826  ;;  %4852 = vpow2.f32 %v1424_v9  ;;  %2168 = vmatprep.subr.bf16.mxu0 %v4463_v52  ;;  %v4476_v10 = vld [vmem:[#allocation7 + $0x140] ss:$8 sps:$4 sm:$0xff]   ;;  %v4484_v31 = vld [vmem:[#allocation7 + $0x134] ss:$8 sps:$4 sm:$0xff]   ;;  %v4502_v9 = vld [vmem:[#allocation7 + $0x104] ss:$8 sps:$4 sm:$0xff]  }
 0x2f0   : > { %v4829_v40 = vpop.eup %4828  ;;  %4854 = vpow2.f32 %v1428_v3  ;;  %v4505_v3 = vld [vmem:[#allocation7 + $0xf4] ss:$8 sps:$4 sm:$0xff]  }
 0x2f1   : > { %1449 = vxpose.xlu1.c.b16.cont [4/8] (narrow) %v1433_v20, 16  ;;  %v4831_v46 = vpop.eup %4830  ;;  %v1439_v0 = vpack.c.bf16 %v4829_v40, %v4827_v5  ;;  %4856 = vpow2.f32 %v1426_v55  ;;  %v4466_v20 = vld [vmem:[#allocation7 + $0x164] ss:$8 sps:$4 sm:$0xff]   ;;  %v4488_v5 = vld [vmem:[#allocation7 + $0x120] ss:$8 sps:$4 sm:$0xff]  }
 0x2f2   : > { %v4833_v53 = vpop.eup %4832  ;;  %2169 = vmatpush1.bf16.msra.mxu0 %v4461_v48  ;;  %v4493_v40 = vld [vmem:[#allocation7 + $0x14] ss:$8 sps:$4 sm:$0xff]   ;;  %v4503_v55 = vld [vmem:[#allocation7 + $0xf0] ss:$8 sps:$4 sm:$0xff]  }
 0x2f3   : > { %1463 = vxpose.xlu0.c.b16.cont [2/8] (narrow) %v1439_v0, 16  ;;  %v4835_v41 = vpop.eup %4834  ;;  %v1440_v38 = vpack.c.bf16 %v4833_v53, %v4831_v46  ;;  %2170 = vmatprep.subr.bf16.mxu0 %v4469_v14  ;;  %v4494_v46 = vld [vmem:[#allocation7 + $0x110] ss:$8 sps:$4 sm:$0xff]   ;;  %v4497_v0 = vld [vmem:[#allocation7] ss:$8 sps:$4 sm:$0xff]  }
 0x2f4   : > { %v4837_v23 = vpop.eup %4836  ;;  %v4500_v53 = vld [vmem:[#allocation7 + $0x100] ss:$8 sps:$4 sm:$0xff]   ;;  %v4541_v26 = vld [vmem:[#allocation7 + $0x94] ss:$8 sps:$4 sm:$0xff]  }
 0x2f5   : > { %1450 = vxpose.xlu1.c.b16.cont [5/8] (narrow) %v1434_v60, 16  ;;  %v4839_v51 = vpop.eup %4838  ;;  %v1441_v11 = vpack.c.bf16 %v4837_v23, %v4835_v41  ;;  %v4478_v60 = vld [vmem:[#allocation7 + $0x144] ss:$8 sps:$4 sm:$0xff]   ;;  %v4508_v41 = vld [vmem:[#allocation7 + $0x1f4] ss:$8 sps:$4 sm:$0xff]  }
 0x2f6   : > { %v4841_v24 = vpop.eup %4840  ;;  %2171 = vmatpush1.bf16.msra.mxu0 %v4467_v54  ;;  %v4511_v23 = vld [vmem:[#allocation7 + $0xe4] ss:$8 sps:$4 sm:$0xff]  }
 0x2f7   : > { %1464 = vxpose.xlu0.c.b16.cont [3/8] (narrow) %v1440_v38, 16  ;;  %v4843_v19 = vpop.eup %4842  ;;  %v1437_v2 = vpack.c.bf16 %v4841_v24, %v4839_v51  ;;  %2172 = vmatprep.subr.bf16.mxu0 %v4475_v13  ;;  %v4506_v38 = vld [vmem:[#allocation7 + $0x1f0] ss:$8 sps:$4 sm:$0xff]   ;;  %v4514_v51 = vld [vmem:[#allocation7 + $0x1e4] ss:$8 sps:$4 sm:$0xff]  }
 0x2f8   : > { %v4845_v28 = vpop.eup %4844  ;;  %v4509_v24 = vld [vmem:[#allocation7 + $0xe0] ss:$8 sps:$4 sm:$0xff]  }
 0x2f9   : > { %1451 = vxpose.xlu1.c.b16.cont [6/8] (narrow) %v1435_v42, 16  ;;  %v4847_v37 = vpop.eup %4846  ;;  %v1442_v44 = vpack.c.bf16 %v4845_v28, %v4843_v19  ;;  %v4481_v42 = vld [vmem:[#allocation7 + $0x34] ss:$8 sps:$4 sm:$0xff]   ;;  %v4512_v19 = vld [vmem:[#allocation7 + $0x1e0] ss:$8 sps:$4 sm:$0xff]  }
 0x2fa   : > { %v4849_v62 = vpop.eup %4848  ;;  %2173 = vmatpush1.bf16.msra.mxu0 %v4473_v16  ;;  %v4520_v28 = vld [vmem:[#allocation7 + $0x1d4] ss:$8 sps:$4 sm:$0xff]   ;;  %v4545_v16 = vld [vmem:[#allocation7 + $0x80] ss:$8 sps:$4 sm:$0xff]  }
 0x2fb   : > { %1465 = vxpose.xlu0.c.b16.cont [4/8] (narrow) %v1441_v11, 16  ;;  %v4851_v6 = vpop.eup %4850  ;;  %v1443_v18 = vpack.c.bf16 %v4849_v62, %v4847_v37  ;;  %2174 = vmatprep.subr.bf16.mxu0 %v4481_v42  ;;  %v4517_v11 = vld [vmem:[#allocation7 + $0xd4] ss:$8 sps:$4 sm:$0xff]   ;;  %v4515_v37 = vld [vmem:[#allocation7 + $0xd0] ss:$8 sps:$4 sm:$0xff]  }
 0x2fc   : > { %v4853_v25 = vpop.eup %4852  ;;  %v4526_v62 = vld [vmem:[#allocation7 + $0x1c4] ss:$8 sps:$4 sm:$0xff]   ;;  %v4548_v42 = vld [vmem:[#allocation7 + $0x180] ss:$8 sps:$4 sm:$0xff]  }
 0x2fd   : > { %1452 = vxpose.xlu1.c.b16.cont [7/8] (narrow) %v1436_v47, 16  ;;  %v4855_v32 = vpop.eup %4854  ;;  %v1444_v30 = vpack.c.bf16 %v4853_v25, %v4851_v6  ;;  %v4485_v47 = vld [vmem:[#allocation7 + $0x20] ss:$8 sps:$4 sm:$0xff]   ;;  %v4529_v25 = vld [vmem:[#allocation7 + $0xb4] ss:$8 sps:$4 sm:$0xff]  }
 0x2fe   : > { %v4857_v15 = vpop.eup %4856  ;;  %2175 = vmatpush1.bf16.msra.mxu0 %v4479_v59  ;;  %v4521_v6 = vld [vmem:[#allocation7 + $0xc0] ss:$8 sps:$4 sm:$0xff]   ;;  %v4553_v59 = vld [vmem:[#allocation7 + $0x274] ss:$8 sps:$4 sm:$0xff]  }
 0x2ff   : > { %1466 = vxpose.xlu0.c.b16.cont [5/8] (narrow) %v1442_v44, 16  ;;  %v1445_v45 = vpack.c.bf16 %v4855_v32, %v4857_v15  ;;  %2176 = vmatprep.subr.bf16.mxu0 %v4487_v34  ;;  %v4518_v44 = vld [vmem:[#allocation7 + $0x1d0] ss:$8 sps:$4 sm:$0xff]   ;;  %v4532_v32 = vld [vmem:[#allocation7 + $0x1b4] ss:$8 sps:$4 sm:$0xff]  }
 0x300   : > { %v4530_v15 = vld [vmem:[#allocation7 + $0x1b0] ss:$8 sps:$4 sm:$0xff]  }
 0x301   : > { %1453 = vxpose.xlu1.c.b16.end [8/8] (narrow) %v1437_v2, 16  ;;  %v4523_v2 = vld [vmem:[#allocation7 + $0xc4] ss:$8 sps:$4 sm:$0xff]  }
 0x302   : > { %2177 = vmatpush1.bf16.msra.mxu0 %v4485_v47 }
 0x303   : > { %1467 = vxpose.xlu0.c.b16.cont [6/8] (narrow) %v1443_v18, 16  ;;  %2178 = vmatprep.subr.bf16.mxu0 %v4493_v40  ;;  %v4524_v18 = vld [vmem:[#allocation7 + $0x1c0] ss:$8 sps:$4 sm:$0xff]  }
 0x306   : > { %2179 = vmatpush1.bf16.msra.mxu0 %v4491_v4 }
 0x307   : > { %1468 = vxpose.xlu0.c.b16.cont [7/8] (narrow) %v1444_v30, 16  ;;  %2180 = vmatprep.subr.bf16.mxu0 %v4499_v57  ;;  %v4527_v30 = vld [vmem:[#allocation7 + $0xb0] ss:$8 sps:$4 sm:$0xff]  }
 0x30a   : > { %2181 = vmatpush1.bf16.msra.mxu0 %v4497_v0 }
 0x30b   : > { %1469 = vxpose.xlu0.c.b16.end [8/8] (narrow) %v1445_v45, 16  ;;  %2182 = vmatprep.subr.bf16.mxu0 %v4505_v3  ;;  %v4535_v45 = vld [vmem:[#allocation7 + $0xa4] ss:$8 sps:$4 sm:$0xff]  }
 0x30e   : > { %2183 = vmatpush2.bf16.msra.mxu0 %v4503_v55  ;;  %v4551_v55 = vld [vmem:[#allocation7 + $0x270] ss:$8 sps:$4 sm:$0xff]  }
 0x30f   : > { %2184 = vmatprep.subr.bf16.mxu0 %v4511_v23  ;;  %v4556_v23 = vld [vmem:[#allocation7 + $0x264] ss:$8 sps:$4 sm:$0xff]  }
 0x312   : > { %2185 = vmatpush2.bf16.msra.mxu0 %v4509_v24  ;;  %v4554_v24 = vld [vmem:[#allocation7 + $0x260] ss:$8 sps:$4 sm:$0xff]  }
 0x313   : > { %2186 = vmatprep.subr.bf16.mxu0 %v4517_v11  ;;  %v4557_v11 = vld [vmem:[#allocation7 + $0x250] ss:$8 sps:$4 sm:$0xff]  }
 0x314   : > { %4398 = vset.pattern.permute.xlu0 %v6340_v58  ;;  %v4538_v58 = vld [vmem:[#allocation7 + $0x1a4] ss:$8 sps:$4 sm:$0xff]  }
 0x316   : > { %2187 = vmatpush2.bf16.msra.mxu0 %v4515_v37  ;;  %v4560_v37 = vld [vmem:[#allocation7 + $0x240] ss:$8 sps:$4 sm:$0xff]  }
 0x317   : > { %2188 = vmatprep.subr.bf16.mxu0 %v4523_v2  ;;  %v4563_v2 = vld [vmem:[#allocation7 + $0x230] ss:$8 sps:$4 sm:$0xff]  }
 0x31a   : > { %2189 = vmatpush2.bf16.msra.mxu0 %v4521_v6  ;;  %v4566_v6 = vld [vmem:[#allocation7 + $0x220] ss:$8 sps:$4 sm:$0xff]  }
 0x31b   : > { %2190 = vmatprep.subr.bf16.mxu0 %v4529_v25  ;;  %v4569_v25 = vld [vmem:[#allocation7 + $0x210] ss:$8 sps:$4 sm:$0xff]  }
 0x31e   : > { %2191 = vmatpush2.bf16.msra.mxu0 %v4527_v30  ;;  %v4572_v30 = vld [vmem:[#allocation7 + $0x200] ss:$8 sps:$4 sm:$0xff]  }
 0x31f   : > { %2192 = vmatprep.subr.bf16.mxu0 %v4535_v45  ;;  %v4575_v45 = vld [vmem:[#allocation7 + $0x2f0] ss:$8 sps:$4 sm:$0xff]  }
 0x347   : > { %v1454_v12 = vpop.trf.xlu1 }
 0x351   : > { %v1470_v1 = vpop.trf.xlu0 }
 0x352   : > { %1510 = vmatprep.mubr.bf16.mxu1 %v1470_v1 }
 0x353   : > { %1511 = vmatmul.mubr.bf16.vlgmr.msra.gmra.mxu1 %v1454_v12 }
 0x354   : > { %4255 = vmatpush3.bf16.msra.mxu1 %v5109_v56  ;;  %1551 = vmatprep.mubr.bf16.mxu1 %v1470_v1  ;;  %v4536_v1 = vld [vmem:[#allocation7 + $0x1a0] ss:$8 sps:$4 sm:$0xff]  }
 0x355   : > { %4256 = vmatprep.subr.bf16.mxu1 %v5109_v56 }
 0x358   : > { %4257 = vmatpush3.bf16.msra.mxu1 %v5109_v56 }
 0x359   : > { %4258 = vmatprep.subr.bf16.mxu1 %v5109_v56 }
 0x35c   : > { %4259 = vmatpush3.bf16.msra.mxu1 %v5109_v56 }
 0x35d   : > { %4260 = vmatprep.subr.bf16.mxu1 %v5109_v56 }
 0x360   : > { %4261 = vmatpush3.bf16.msra.mxu1 %v5109_v56 }
 0x361   : > { %4262 = vmatprep.subr.bf16.mxu1 %v5109_v56 }
 0x364   : > { %4263 = vmatpush3.bf16.msra.mxu1 %v5109_v56 }
 0x365   : > { %4264 = vmatprep.subr.bf16.mxu1 %v5109_v56 }
 0x368   : > { %4265 = vmatpush3.bf16.msra.mxu1 %v5109_v56 }
 0x369   : > { %4266 = vmatprep.subr.bf16.mxu1 %v5109_v56 }
 0x36c   : > { %4267 = vmatpush3.bf16.msra.mxu1 %v5109_v56 }
 0x36d   : > { %4268 = vmatprep.subr.bf16.mxu1 %v5109_v56 }
 0x370   : > { %4269 = vmatpush3.bf16.msra.mxu1 %v5109_v56  ;;  %v4470_v56 = vld [vmem:[#allocation7 + $0x150] ss:$8 sps:$4 sm:$0xff]  }
 0x371   : > { %2207 = vmatprep.subr.bf16.mxu1 %v4460_v63  ;;  %v4542_v63 = vld [vmem:[#allocation7 + $0x190] ss:$8 sps:$4 sm:$0xff]  }
 0x373   : > { %1552 = vmatmul.mubr.bf16.vlgmr.msra.gmra.mxu1 %v1454_v12  ;;  %v4533_v12 = vld [vmem:[#allocation7 + $0xa0] ss:$8 sps:$4 sm:$0xff]  }
 0x374   : > { %2208 = vmatpush1.bf16.msra.mxu1 %v4458_v27  ;;  %2193 = vmatpush2.bf16.msra.mxu0 %v4533_v12  ;;  %v4539_v27 = vld [vmem:[#allocation7 + $0x90] ss:$8 sps:$4 sm:$0xff]   ;;  %v4578_v12 = vld [vmem:[#allocation7 + $0x2e0] ss:$8 sps:$4 sm:$0xff]  }
 0x375   : > { %2209 = vmatprep.subr.bf16.mxu1 %v4466_v20  ;;  %2194 = vmatprep.subr.bf16.mxu0 %v4541_v26  ;;  %v4581_v26 = vld [vmem:[#allocation7 + $0x2d0] ss:$8 sps:$4 sm:$0xff]  }
 0x378   : > { %2210 = vmatpush1.bf16.msra.mxu1 %v4464_v43  ;;  %2195 = vmatpush2.bf16.msra.mxu0 %v4539_v27  ;;  %v4584_v27 = vld [vmem:[#allocation7 + $0x2c0] ss:$8 sps:$4 sm:$0xff]  }
 0x379   : > { %2211 = vmatprep.subr.bf16.mxu1 %v4472_v33 }
 0x37c   : > { %2212 = vmatpush1.bf16.msra.mxu1 %v4470_v56 }
 0x37d   : > { %2213 = vmatprep.subr.bf16.mxu1 %v4478_v60 }
 0x380   : > { %2214 = vmatpush1.bf16.msra.mxu1 %v4476_v10  ;;  %v4547_v10 = vld [vmem:[#allocation7 + $0x84] ss:$8 sps:$4 sm:$0xff]  }
 0x381   : > { %2215 = vmatprep.subr.bf16.mxu1 %v4484_v31  ;;  %v4550_v31 = vld [vmem:[#allocation7 + $0x184] ss:$8 sps:$4 sm:$0xff]   ;;  %2196 = vmatprep.subr.bf16.mxu0 %v4547_v10 }
 0x382   : > { %2197 = vmatpush2.bf16.msra.mxu0 %v4545_v16 }
 0x383   : > { %2248 = vmatprep.subr.bf16.mxu0 %v4553_v59 }
 0x384   : > { %2216 = vmatpush1.bf16.msra.mxu1 %v4482_v17  ;;  %v5110_v17 = vmov 0.0  }
 0x385   : > { %2217 = vmatprep.subr.bf16.mxu1 %v4490_v61  ;;  %v3844_v34 = vsel %vm1569_vm1, 1.0, %v5110_v17  ;;  %v3845_v61 = vsel %vm1575_vm2, 1.0, %v5110_v17  ;;  %v3846_v47 = vsel %vm1581_vm3, 1.0, %v5110_v17 }
 0x386   : > { %v5994_v40 = vpack.c.bf16 %v3844_v34, %v3844_v34  ;;  %v6000_v0 = vpack.c.bf16 %v3846_v47, %v3846_v47  ;;  %v1260_v34 = vld [vmem:[%s6248_s5] sm:$0x77] }
 0x388   : > { %2218 = vmatpush1.bf16.msra.mxu1 %v4488_v5 }
 0x389   : > { %2219 = vmatprep.subr.bf16.mxu1 %v4496_v39  ;;  %v5996_v39 = vpack.c.bf16 %v3845_v61, %v3845_v61  ;;  %v2164_v61 = vcombine.high %v1260_v34, %v1260_v34 }
 0x38c   : > { %2220 = vmatpush1.bf16.msra.mxu1 %v4494_v46 }
 0x38d   : > { %2221 = vmatprep.subr.bf16.mxu1 %v4502_v9 }
 0x390   : > { %2222 = vmatpush1.bf16.msra.mxu1 %v4500_v53 }
 0x391   : > { %2223 = vmatprep.subr.bf16.mxu1 %v4508_v41 }
 0x394   : > { %2224 = vmatpush2.bf16.msra.mxu1 %v4506_v38 }
 0x395   : > { %2225 = vmatprep.subr.bf16.mxu1 %v4514_v51 }
 0x398   : > { %2226 = vmatpush2.bf16.msra.mxu1 %v4512_v19  ;;  %v4559_v19 = vld [vmem:[#allocation7 + $0x254] ss:$8 sps:$4 sm:$0xff]  }
 0x399   : > { %2227 = vmatprep.subr.bf16.mxu1 %v4520_v28  ;;  %v4562_v28 = vld [vmem:[#allocation7 + $0x244] ss:$8 sps:$4 sm:$0xff]  }
 0x39c   : > { %2228 = vmatpush2.bf16.msra.mxu1 %v4518_v44  ;;  %v4565_v44 = vld [vmem:[#allocation7 + $0x234] ss:$8 sps:$4 sm:$0xff]  }
 0x39d   : > { %2229 = vmatprep.subr.bf16.mxu1 %v4526_v62  ;;  %v4568_v62 = vld [vmem:[#allocation7 + $0x224] ss:$8 sps:$4 sm:$0xff]  }
 0x3a0   : > { %2230 = vmatpush2.bf16.msra.mxu1 %v4524_v18  ;;  %v4571_v18 = vld [vmem:[#allocation7 + $0x214] ss:$8 sps:$4 sm:$0xff]  }
 0x3a1   : > { %2231 = vmatprep.subr.bf16.mxu1 %v4532_v32  ;;  %v4574_v32 = vld [vmem:[#allocation7 + $0x204] ss:$8 sps:$4 sm:$0xff]  }
 0x3a4   : > { %2232 = vmatpush2.bf16.msra.mxu1 %v4530_v15  ;;  %v4577_v15 = vld [vmem:[#allocation7 + $0x2f4] ss:$8 sps:$4 sm:$0xff]  }
 0x3a5   : > { %2233 = vmatprep.subr.bf16.mxu1 %v4538_v58  ;;  %v4580_v58 = vld [vmem:[#allocation7 + $0x2e4] ss:$8 sps:$4 sm:$0xff]  }
 0x3a8   : > { %2234 = vmatpush2.bf16.msra.mxu1 %v4536_v1  ;;  %v4583_v1 = vld [vmem:[#allocation7 + $0x2d4] ss:$8 sps:$4 sm:$0xff]  }
 0x3a9   : > { %2235 = vmatprep.subr.bf16.mxu1 %v4544_v29  ;;  %v4586_v29 = vld [vmem:[#allocation7 + $0x2c4] ss:$8 sps:$4 sm:$0xff]  }
 0x3ac   : > { %2236 = vmatpush2.bf16.msra.mxu1 %v4542_v63  ;;  %v4589_v63 = vld [vmem:[#allocation7 + $0x2b4] ss:$8 sps:$4 sm:$0xff]  }
 0x3ad   : > { %2237 = vmatprep.subr.bf16.mxu1 %v4550_v31 }
 0x3b0   : > { %2238 = vmatpush2.bf16.msra.mxu1 %v4548_v42 }
 0x413   : > { %v1512_v52 = vpop.f32.mrf.mxu1 }
 0x415   : > { %v1514_v20 = vpop.f32.mrf.mxu1 }
 0x417   : > { %v1516_v48 = vpop.f32.mrf.mxu1 }
 0x418   : > { %v4590_v48 = vld [vmem:[#allocation7 + $0x2a0] ss:$8 sps:$4 sm:$0xff]  }
 0x419   : > { %v1517_v43 = vpop.f32.mrf.mxu1 }
 0x41a   : > { %v4595_v43 = vld [vmem:[#allocation7 + $0x294] ss:$8 sps:$4 sm:$0xff]  }
 0x433   : > { %v4270_v14 = vpop.f32.mrf.mxu1 }
 0x435   : > { %v4271_v33 = vpop.f32.mrf.mxu1 }
 0x436   : > { %v4272_v54 = vadd.f32 %v4271_v33, %v4270_v14  ;;  %v4593_v14 = vld [vmem:[#allocation7 + $0x290] ss:$8 sps:$4 sm:$0xff]   ;;  %v4598_v33 = vld [vmem:[#allocation7 + $0x284] ss:$8 sps:$4 sm:$0xff]  }
 0x437   : > { %v4273_v56 = vpop.f32.mrf.mxu1 }
 0x438   : > { %4858 = vrcp.f32 %v4272_v54  ;;  %v4596_v54 = vld [vmem:[#allocation7 + $0x280] ss:$8 sps:$4 sm:$0xff]  }
 0x439   : > { %v4274_v13 = vpop.f32.mrf.mxu1 }
 0x445   : > { %v4859_v60 = vpop.eup %4858 }
 0x446   : > { %1562 = vperm.xlu0 %4398, %v4859_v60  }
 0x4c1   : > { %v1563_v5 = vpop.permute.xlu0 %1562 }
 0x4c2   : > { %v1565_v4 = vmul.f32 %v1563_v5, %v1512_v52  ;;  %v1566_v46 = vmul.f32 %v1563_v5, %v1514_v20  ;;  %v4587_v52 = vld [vmem:[#allocation7 + $0x2b0] ss:$8 sps:$4 sm:$0xff]   ;;  %v4592_v20 = vld [vmem:[#allocation7 + $0x2a4] ss:$8 sps:$4 sm:$0xff]  }
 0x4c4   : > { %v5998_v57 = vpack.c.bf16 %v1565_v4, %v1565_v4  ;;  %v1568_v9 = vpack.c.bf16 %v1566_v46, %v1566_v46 }
 0x4c6   : > { %v1573_v53 = vmul.bf16 %v5994_v40, %v5998_v57  ;;  %v1579_v3 = vmul.bf16 %v5996_v39, %v5998_v57  ;;  %v1574_v41 = vmul.bf16 %v5994_v40, %v1568_v9  ;;  %v1580_v38 = vmul.bf16 %v5996_v39, %v1568_v9 }
 0x4c7   : > { %v1586_v51 = vmul.bf16 %v6000_v0, %v1568_v9  ;;  %v1585_v56 = vmul.bf16 %v6000_v0, %v5998_v57 }
 0x4c8   : > { %2198 = vmatprep.mubr.bf16.mxu0 %v1574_v41  ;;  %2239 = vmatprep.mubr.bf16.mxu1 %v1580_v38 }
 0x4c9   : > { %2199 = vmatmul.mubr.bf16.vlgmr.msra.gmra.mxu0 %v1573_v53  ;;  %2240 = vmatmul.mubr.bf16.vlgmr.msra.gmra.mxu1 %v1579_v3 }
 0x4ca   : > { %2249 = vmatpush1.bf16.msra.mxu0 %v4551_v55  ;;  %2280 = vmatprep.mubr.bf16.mxu0 %v1586_v51 }
 0x4cb   : > { %2250 = vmatprep.subr.bf16.mxu0 %v4556_v23 }
 0x4ce   : > { %2251 = vmatpush1.bf16.msra.mxu0 %v4554_v24  ;;  %v4600_v24 = vld [vmem:[#allocation10 + $0x70] ss:$8 sps:$4 sm:$0xff]  }
 0x4cf   : > { %2252 = vmatprep.subr.bf16.mxu0 %v4559_v19  ;;  %v4602_v19 = vld [vmem:[#allocation10 + $0x74] ss:$8 sps:$4 sm:$0xff]  }
 0x4d0   : > { %2907 = vmatprep.subr.bf16.mxu1 %v4602_v19  ;;  %v4671_v19 = vld [vmem:[#allocation10 + $0x1c4] ss:$8 sps:$4 sm:$0xff]  }
 0x4d1   : > { %2908 = vmatpush1.bf16.msra.mxu1 %v4600_v24  ;;  %v4668_v24 = vld [vmem:[#allocation10 + $0xc4] ss:$8 sps:$4 sm:$0xff]  }
 0x4d2   : > { %2253 = vmatpush1.bf16.msra.mxu0 %v4557_v11  ;;  %v4603_v11 = vld [vmem:[#allocation10 + $0x170] ss:$8 sps:$4 sm:$0xff]  }
 0x4d3   : > { %2254 = vmatprep.subr.bf16.mxu0 %v4562_v28  ;;  %v4605_v28 = vld [vmem:[#allocation10 + $0x174] ss:$8 sps:$4 sm:$0xff]  }
 0x4d6   : > { %2255 = vmatpush1.bf16.msra.mxu0 %v4560_v37  ;;  %v4608_v37 = vld [vmem:[#allocation10 + $0x64] ss:$8 sps:$4 sm:$0xff]  }
 0x4d7   : > { %2256 = vmatprep.subr.bf16.mxu0 %v4565_v44  ;;  %v4611_v44 = vld [vmem:[#allocation10 + $0x164] ss:$8 sps:$4 sm:$0xff]   ;;  %2909 = vmatprep.subr.bf16.mxu1 %v4608_v37  ;;  %v4674_v37 = vld [vmem:[#allocation10 + $0xb4] ss:$8 sps:$4 sm:$0xff]  }
 0x4da   : > { %2257 = vmatpush1.bf16.msra.mxu0 %v4563_v2  ;;  %v4606_v2 = vld [vmem:[#allocation10 + $0x60] ss:$8 sps:$4 sm:$0xff]  }
 0x4db   : > { %2258 = vmatprep.subr.bf16.mxu0 %v4568_v62  ;;  %v4609_v62 = vld [vmem:[#allocation10 + $0x160] ss:$8 sps:$4 sm:$0xff]   ;;  %2910 = vmatpush1.bf16.msra.mxu1 %v4606_v2  ;;  %v4672_v2 = vld [vmem:[#allocation10 + $0xb0] ss:$8 sps:$4 sm:$0xff]  }
 0x4de   : > { %2259 = vmatpush1.bf16.msra.mxu0 %v4566_v6  ;;  %v4614_v6 = vld [vmem:[#allocation10 + $0x54] ss:$8 sps:$4 sm:$0xff]  }
 0x4df   : > { %2260 = vmatprep.subr.bf16.mxu0 %v4571_v18  ;;  %v4617_v18 = vld [vmem:[#allocation10 + $0x154] ss:$8 sps:$4 sm:$0xff]   ;;  %2911 = vmatprep.subr.bf16.mxu1 %v4614_v6  ;;  %v4680_v6 = vld [vmem:[#allocation10 + $0xa4] ss:$8 sps:$4 sm:$0xff]  }
 0x4e2   : > { %2261 = vmatpush1.bf16.msra.mxu0 %v4569_v25  ;;  %v4612_v25 = vld [vmem:[#allocation10 + $0x50] ss:$8 sps:$4 sm:$0xff]  }
 0x4e3   : > { %2262 = vmatprep.subr.bf16.mxu0 %v4574_v32  ;;  %v4615_v32 = vld [vmem:[#allocation10 + $0x150] ss:$8 sps:$4 sm:$0xff]   ;;  %2912 = vmatpush1.bf16.msra.mxu1 %v4612_v25  ;;  %v4678_v25 = vld [vmem:[#allocation10 + $0xa0] ss:$8 sps:$4 sm:$0xff]  }
 0x4e6   : > { %2263 = vmatpush1.bf16.msra.mxu0 %v4572_v30  ;;  %v4620_v30 = vld [vmem:[#allocation10 + $0x44] ss:$8 sps:$4 sm:$0xff]  }
 0x4e7   : > { %2264 = vmatprep.subr.bf16.mxu0 %v4577_v15  ;;  %v4623_v15 = vld [vmem:[#allocation10 + $0x144] ss:$8 sps:$4 sm:$0xff]   ;;  %2913 = vmatprep.subr.bf16.mxu1 %v4620_v30  ;;  %v4686_v30 = vld [vmem:[#allocation10 + $0x94] ss:$8 sps:$4 sm:$0xff]  }
 0x4ea   : > { %2265 = vmatpush2.bf16.msra.mxu0 %v4575_v45  ;;  %v4618_v45 = vld [vmem:[#allocation10 + $0x40] ss:$8 sps:$4 sm:$0xff]  }
 0x4eb   : > { %2266 = vmatprep.subr.bf16.mxu0 %v4580_v58  ;;  %v4621_v58 = vld [vmem:[#allocation10 + $0x140] ss:$8 sps:$4 sm:$0xff]   ;;  %2914 = vmatpush1.bf16.msra.mxu1 %v4618_v45  ;;  %v4684_v45 = vld [vmem:[#allocation10 + $0x90] ss:$8 sps:$4 sm:$0xff]  }
 0x4ee   : > { %2267 = vmatpush2.bf16.msra.mxu0 %v4578_v12  ;;  %v4626_v12 = vld [vmem:[#allocation10 + $0x34] ss:$8 sps:$4 sm:$0xff]  }
 0x4ef   : > { %2268 = vmatprep.subr.bf16.mxu0 %v4583_v1  ;;  %v4629_v1 = vld [vmem:[#allocation10 + $0x134] ss:$8 sps:$4 sm:$0xff]   ;;  %2915 = vmatprep.subr.bf16.mxu1 %v4626_v12  ;;  %v4692_v12 = vld [vmem:[#allocation10 + $0x84] ss:$8 sps:$4 sm:$0xff]  }
 0x4f2   : > { %2269 = vmatpush2.bf16.msra.mxu0 %v4581_v26  ;;  %v4624_v26 = vld [vmem:[#allocation10 + $0x30] ss:$8 sps:$4 sm:$0xff]  }
 0x4f3   : > { %2270 = vmatprep.subr.bf16.mxu0 %v4586_v29  ;;  %v4627_v29 = vld [vmem:[#allocation10 + $0x130] ss:$8 sps:$4 sm:$0xff]   ;;  %2916 = vmatpush1.bf16.msra.mxu1 %v4624_v26  ;;  %v4690_v26 = vld [vmem:[#allocation10 + $0x80] ss:$8 sps:$4 sm:$0xff]  }
 0x4f6   : > { %2271 = vmatpush2.bf16.msra.mxu0 %v4584_v27  ;;  %v4632_v27 = vld [vmem:[#allocation10 + $0x24] ss:$8 sps:$4 sm:$0xff]  }
 0x4f7   : > { %2272 = vmatprep.subr.bf16.mxu0 %v4589_v63  ;;  %v4635_v63 = vld [vmem:[#allocation10 + $0x124] ss:$8 sps:$4 sm:$0xff]   ;;  %2917 = vmatprep.subr.bf16.mxu1 %v4632_v27  ;;  %v4700_v27 = vld [vmem:[#allocation10 + $0x274] ss:$8 sps:$4 sm:$0xff]  }
 0x4fa   : > { %2273 = vmatpush2.bf16.msra.mxu0 %v4587_v52  ;;  %v4630_v52 = vld [vmem:[#allocation10 + $0x20] ss:$8 sps:$4 sm:$0xff]  }
 0x4fb   : > { %2274 = vmatprep.subr.bf16.mxu0 %v4592_v20  ;;  %v4633_v20 = vld [vmem:[#allocation10 + $0x120] ss:$8 sps:$4 sm:$0xff]   ;;  %2918 = vmatpush1.bf16.msra.mxu1 %v4630_v52 }
 0x4fe   : > { %2275 = vmatpush2.bf16.msra.mxu0 %v4590_v48  ;;  %v4638_v48 = vld [vmem:[#allocation10 + $0x14] ss:$8 sps:$4 sm:$0xff]  }
 0x4ff   : > { %2276 = vmatprep.subr.bf16.mxu0 %v4595_v43  ;;  %v4641_v43 = vld [vmem:[#allocation10 + $0x114] ss:$8 sps:$4 sm:$0xff]   ;;  %2919 = vmatprep.subr.bf16.mxu1 %v4638_v48 }
 0x502   : > { %2277 = vmatpush2.bf16.msra.mxu0 %v4593_v14  ;;  %v4636_v14 = vld [vmem:[#allocation10 + $0x10] ss:$8 sps:$4 sm:$0xff]  }
 0x503   : > { %2278 = vmatprep.subr.bf16.mxu0 %v4598_v33  ;;  %v4639_v33 = vld [vmem:[#allocation10 + $0x110] ss:$8 sps:$4 sm:$0xff]   ;;  %2920 = vmatpush1.bf16.msra.mxu1 %v4636_v14 }
 0x504   : > { %v1262_v14 = vld [vmem:[%s6250_s7] sm:$0x77] }
 0x506   : > { %2279 = vmatpush2.bf16.msra.mxu0 %v4596_v54  ;;  %v4644_v54 = vld [vmem:[#allocation10 + $0x4] ss:$8 sps:$4 sm:$0xff]  }
 0x507   : > { %2948 = vmatprep.subr.bf16.mxu0 %v4605_v28  ;;  %2921 = vmatprep.subr.bf16.mxu1 %v4644_v54  ;;  %v4669_v28 = vld [vmem:[#allocation10 + $0x1c0] ss:$8 sps:$4 sm:$0xff]  }
 0x509   : > { %2281 = vmatmul.mubr.bf16.vlgmr.msra.gmra.mxu0 %v1585_v56  ;;  %v4647_v56 = vld [vmem:[#allocation10 + $0x104] ss:$8 sps:$4 sm:$0xff]  }
 0x50a   : > { %2949 = vmatpush1.bf16.msra.mxu0 %v4603_v11  ;;  %v4666_v11 = vld [vmem:[#allocation10 + $0xc0] ss:$8 sps:$4 sm:$0xff]  }
 0x50b   : > { %2950 = vmatprep.subr.bf16.mxu0 %v4611_v44  ;;  %v4677_v44 = vld [vmem:[#allocation10 + $0x1b4] ss:$8 sps:$4 sm:$0xff]  }
 0x50e   : > { %2951 = vmatpush1.bf16.msra.mxu0 %v4609_v62  ;;  %v4675_v62 = vld [vmem:[#allocation10 + $0x1b0] ss:$8 sps:$4 sm:$0xff]  }
 0x50f   : > { %2952 = vmatprep.subr.bf16.mxu0 %v4617_v18  ;;  %v4683_v18 = vld [vmem:[#allocation10 + $0x1a4] ss:$8 sps:$4 sm:$0xff]  }
 0x512   : > { %2953 = vmatpush1.bf16.msra.mxu0 %v4615_v32  ;;  %v4681_v32 = vld [vmem:[#allocation10 + $0x1a0] ss:$8 sps:$4 sm:$0xff]  }
 0x513   : > { %2954 = vmatprep.subr.bf16.mxu0 %v4623_v15  ;;  %v4689_v15 = vld [vmem:[#allocation10 + $0x194] ss:$8 sps:$4 sm:$0xff]  }
 0x516   : > { %2955 = vmatpush1.bf16.msra.mxu0 %v4621_v58  ;;  %v4687_v58 = vld [vmem:[#allocation10 + $0x190] ss:$8 sps:$4 sm:$0xff]  }
 0x517   : > { %2956 = vmatprep.subr.bf16.mxu0 %v4629_v1  ;;  %v4695_v1 = vld [vmem:[#allocation10 + $0x184] ss:$8 sps:$4 sm:$0xff]  }
 0x51a   : > { %2957 = vmatpush1.bf16.msra.mxu0 %v4627_v29  ;;  %v4693_v29 = vld [vmem:[#allocation10 + $0x180] ss:$8 sps:$4 sm:$0xff]  }
 0x51b   : > { %2958 = vmatprep.subr.bf16.mxu0 %v4635_v63  ;;  %v4703_v63 = vld [vmem:[#allocation11 + $0x74] ss:$8 sps:$4 sm:$0xff]  }
 0x51e   : > { %2959 = vmatpush1.bf16.msra.mxu0 %v4633_v20 }
 0x51f   : > { %2960 = vmatprep.subr.bf16.mxu0 %v4641_v43  ;;  %v1261_v43 = vld [vmem:[#allocation8] sm:$0x77] }
 0x522   : > { %2961 = vmatpush1.bf16.msra.mxu0 %v4639_v33  ;;  %v2312_v33 = vcombine.high %v1261_v43, %v1261_v43 }
 0x523   : > { %2962 = vmatprep.subr.bf16.mxu0 %v4647_v56 }
 0x589   : > { %v2200_v13 = vpop.f32.mrf.mxu0  ;;  %v2241_v60 = vpop.f32.mrf.mxu1 }
 0x58a   : > { %v2201_v47 = vadd.f32 %v2200_v13, %v1260_v34  ;;  %v4642_v13 = vld [vmem:[#allocation10] ss:$8 sps:$4 sm:$0xff]  }
 0x58b   : > { %v2202_v16 = vpop.f32.mrf.mxu0  ;;  %v2243_v10 = vpop.f32.mrf.mxu1  ;;  %2922 = vmatpush1.bf16.msra.mxu1 %v4642_v13 }
 0x58c   : > { %v2203_v5 = vadd.f32 %v2202_v16, %v2164_v61  ;;  %v2242_v4 = vadd.f32 %v2241_v60, %v2201_v47  ;;  %v4645_v60 = vld [vmem:[#allocation10 + $0x100] ss:$8 sps:$4 sm:$0xff]   ;;  %v4650_v16 = vld [vmem:[#allocation10 + $0xf4] ss:$8 sps:$4 sm:$0xff]  }
 0x58d   : > { %v2204_v42 = vpop.f32.mrf.mxu0  ;;  %v2245_v31 = vpop.f32.mrf.mxu1  ;;  %2963 = vmatpush1.bf16.msra.mxu0 %v4645_v60  ;;  %2923 = vmatprep.subr.bf16.mxu1 %v4650_v16  ;;  %v2317_v60 = vcombine.high %v1262_v14, %v1262_v14 }
 0x58e   : > { %v2244_v9 = vadd.f32 %v2243_v10, %v2203_v5  ;;  %v4653_v10 = vld [vmem:[#allocation10 + $0x1f4] ss:$8 sps:$4 sm:$0xff]   ;;  %v4648_v42 = vld [vmem:[#allocation10 + $0xf0] ss:$8 sps:$4 sm:$0xff]  }
 0x58f   : > { %v2205_v59 = vpop.f32.mrf.mxu0  ;;  %v2246_v17 = vpop.f32.mrf.mxu1  ;;  %v4651_v31 = vld [vmem:[#allocation10 + $0x1f0] ss:$8 sps:$4 sm:$0xff]   ;;  %2964 = vmatprep.subr.bf16.mxu0 %v4653_v10  ;;  %2924 = vmatpush2.bf16.msra.mxu1 %v4648_v42 }
 0x591   : > { %2965 = vmatpush2.bf16.msra.mxu0 %v4651_v31 }
 0x5c9   : > { %v2282_v46 = vpop.f32.mrf.mxu0 }
 0x5ca   : > { %v6014_v57 = vadd.f32 %v2282_v46, %v2242_v4 }
 0x5cb   : > { %v2284_v53 = vpop.f32.mrf.mxu0 }
 0x5cc   : > { %v6016_v3 = vadd.f32 %v2284_v53, %v2244_v9  ;;  %v2290_v55 = vsel %vm2289_vm4, %v6014_v57, 0.0  ;;  %v4656_v53 = vld [vmem:[#allocation10 + $0xe4] ss:$8 sps:$4 sm:$0xff]  }
 0x5cd   : > { %v2286_v41 = vpop.f32.mrf.mxu0  ;;  %2925 = vmatprep.subr.bf16.mxu1 %v4656_v53  ;;  %v4701_v53 = vld [vmem:[#allocation11 + $0x70] ss:$8 sps:$4 sm:$0xff]  }
 0x5ce   : > { %v2291_v38 = vsel %vm2289_vm4, %v6016_v3, 0.0  ;;  %v4659_v41 = vld [vmem:[#allocation10 + $0x1e4] ss:$8 sps:$4 sm:$0xff]  }
 0x5cf   : > { %v2287_v23 = vpop.f32.mrf.mxu0  ;;  %v2292_v51 = vadd.f32 %v2291_v38, %v2290_v55  ;;  %v4654_v55 = vld [vmem:[#allocation10 + $0xe0] ss:$8 sps:$4 sm:$0xff]   ;;  %2966 = vmatprep.subr.bf16.mxu0 %v4659_v41  ;;  %v4665_v38 = vld [vmem:[#allocation10 + $0x1d4] ss:$8 sps:$4 sm:$0xff]   ;;  %v4706_v41 = vld [vmem:[#allocation10 + $0x264] ss:$8 sps:$4 sm:$0xff]  }
 0x5d0   : > { %2926 = vmatpush2.bf16.msra.mxu1 %v4654_v55  ;;  %v4660_v23 = vld [vmem:[#allocation10 + $0xd0] ss:$8 sps:$4 sm:$0xff]   ;;  %v4709_v55 = vld [vmem:[#allocation11 + $0x64] ss:$8 sps:$4 sm:$0xff]  }
 0x5d1   : > { %2293 = vadd.xlane.f32.xlu1 %v2292_v51  ;;  %v4663_v51 = vld [vmem:[#allocation10 + $0x1d0] ss:$8 sps:$4 sm:$0xff]  }
 0x65a   : > { %v2294_v59 = vpop.xlane.xlu1 %2293 }
 0x65b   : > { %v2296_v17 = vmul.f32 0.00390625, %v2294_v59 }
 0x65d   : > { %v6023_v34 = vsub.f32 %v6014_v57, %v2296_v17  ;;  %v6026_v61 = vsub.f32 %v6016_v3, %v2296_v17  ;;  %v4657_v57 = vld [vmem:[#allocation10 + $0x1e0] ss:$8 sps:$4 sm:$0xff]   ;;  %v4662_v3 = vld [vmem:[#allocation10 + $0xd4] ss:$8 sps:$4 sm:$0xff]  }
 0x65e   : > { %2967 = vmatpush2.bf16.msra.mxu0 %v4657_v57  ;;  %2927 = vmatprep.subr.bf16.mxu1 %v4662_v3  ;;  %v4704_v3 = vld [vmem:[#allocation10 + $0x260] ss:$8 sps:$4 sm:$0xff]  }
 0x65f   : > { %v2299_v47 = vmul.f32 %v6023_v34, %v6023_v34  ;;  %v2300_v5 = vmul.f32 %v6026_v61, %v6026_v61  ;;  %2968 = vmatprep.subr.bf16.mxu0 %v4665_v38  ;;  %2928 = vmatpush2.bf16.msra.mxu1 %v4660_v23  ;;  %v4707_v38 = vld [vmem:[#allocation11 + $0x60] ss:$8 sps:$4 sm:$0xff]   ;;  %v4712_v23 = vld [vmem:[#allocation10 + $0x254] ss:$8 sps:$4 sm:$0xff]  }
 0x660   : > { %2929 = vmatprep.subr.bf16.mxu1 %v4668_v24  ;;  %v4718_v24 = vld [vmem:[#allocation10 + $0x244] ss:$8 sps:$4 sm:$0xff]  }
 0x661   : > { %v2301_v4 = vsel %vm2289_vm4, %v2299_v47, 0.0  ;;  %v2302_v46 = vsel %vm2289_vm4, %v2300_v5, 0.0 }
 0x662   : > { %v2303_v9 = vadd.f32 %v2302_v46, %v2301_v4  ;;  %2969 = vmatpush2.bf16.msra.mxu0 %v4663_v51  ;;  %v4713_v51 = vld [vmem:[#allocation11 + $0x50] ss:$8 sps:$4 sm:$0xff]  }
 0x663   : > { %2970 = vmatprep.subr.bf16.mxu0 %v4671_v19  ;;  %2930 = vmatpush2.bf16.msra.mxu1 %v4666_v11  ;;  %v4721_v19 = vld [vmem:[#allocation11 + $0x44] ss:$8 sps:$4 sm:$0xff]   ;;  %v4716_v11 = vld [vmem:[#allocation10 + $0x240] ss:$8 sps:$4 sm:$0xff]  }
 0x664   : > { %2304 = vadd.xlane.f32.xlu0 %v2303_v9  ;;  %2931 = vmatprep.subr.bf16.mxu1 %v4674_v37  ;;  %v4698_v9 = vld [vmem:[#allocation10 + $0x270] ss:$8 sps:$4 sm:$0xff]   ;;  %v4724_v37 = vld [vmem:[#allocation10 + $0x234] ss:$8 sps:$4 sm:$0xff]  }
 0x666   : > { %2971 = vmatpush2.bf16.msra.mxu0 %v4669_v28  ;;  %v4719_v28 = vld [vmem:[#allocation11 + $0x40] ss:$8 sps:$4 sm:$0xff]  }
 0x667   : > { %2972 = vmatprep.subr.bf16.mxu0 %v4677_v44  ;;  %2932 = vmatpush2.bf16.msra.mxu1 %v4672_v2  ;;  %v4722_v44 = vld [vmem:[#allocation10 + $0x230] ss:$8 sps:$4 sm:$0xff]  }
 0x668   : > { %2933 = vmatprep.subr.bf16.mxu1 %v4680_v6  ;;  %v4725_v2 = vld [vmem:[#allocation11 + $0x30] ss:$8 sps:$4 sm:$0xff]   ;;  %v4733_v6 = vld [vmem:[#allocation11 + $0x24] ss:$8 sps:$4 sm:$0xff]  }
 0x66a   : > { %2973 = vmatpush2.bf16.msra.mxu0 %v4675_v62  ;;  %v4730_v62 = vld [vmem:[#allocation10 + $0x224] ss:$8 sps:$4 sm:$0xff]  }
 0x66b   : > { %2974 = vmatprep.subr.bf16.mxu0 %v4683_v18  ;;  %2934 = vmatpush2.bf16.msra.mxu1 %v4678_v25  ;;  %v4728_v18 = vld [vmem:[#allocation10 + $0x220] ss:$8 sps:$4 sm:$0xff]  }
 0x66c   : > { %2935 = vmatprep.subr.bf16.mxu1 %v4686_v30  ;;  %v4731_v25 = vld [vmem:[#allocation11 + $0x20] ss:$8 sps:$4 sm:$0xff]   ;;  %v4739_v30 = vld [vmem:[#allocation11 + $0x14] ss:$8 sps:$4 sm:$0xff]  }
 0x66e   : > { %2975 = vmatpush2.bf16.msra.mxu0 %v4681_v32  ;;  %v4736_v32 = vld [vmem:[#allocation10 + $0x214] ss:$8 sps:$4 sm:$0xff]  }
 0x66f   : > { %2976 = vmatprep.subr.bf16.mxu0 %v4689_v15  ;;  %2936 = vmatpush2.bf16.msra.mxu1 %v4684_v45  ;;  %v4734_v15 = vld [vmem:[#allocation10 + $0x210] ss:$8 sps:$4 sm:$0xff]  }
 0x670   : > { %2937 = vmatprep.subr.bf16.mxu1 %v4692_v12  ;;  %v4737_v45 = vld [vmem:[#allocation11 + $0x10] ss:$8 sps:$4 sm:$0xff]   ;;  %v4745_v12 = vld [vmem:[#allocation11 + $0x4] ss:$8 sps:$4 sm:$0xff]  }
 0x672   : > { %2977 = vmatpush2.bf16.msra.mxu0 %v4687_v58  ;;  %v4742_v58 = vld [vmem:[#allocation10 + $0x204] ss:$8 sps:$4 sm:$0xff]  }
 0x673   : > { %2978 = vmatprep.subr.bf16.mxu0 %v4695_v1  ;;  %2938 = vmatpush2.bf16.msra.mxu1 %v4690_v26  ;;  %v4740_v1 = vld [vmem:[#allocation10 + $0x200] ss:$8 sps:$4 sm:$0xff]  }
 0x674   : > { %2989 = vmatprep.subr.bf16.mxu1 %v4700_v27  ;;  %v4743_v26 = vld [vmem:[#allocation11] ss:$8 sps:$4 sm:$0xff]   ;;  %v4751_v27 = vld [vmem:[#allocation11 + $0xf4] ss:$8 sps:$4 sm:$0xff]  }
 0x676   : > { %2979 = vmatpush2.bf16.msra.mxu0 %v4693_v29  ;;  %v4748_v29 = vld [vmem:[#allocation10 + $0x2f4] ss:$8 sps:$4 sm:$0xff]  }
 0x677   : > { %3225 = vmatprep.subr.bf16.mxu0 %v4703_v63  ;;  %v4746_v63 = vld [vmem:[#allocation10 + $0x2f0] ss:$8 sps:$4 sm:$0xff]  }
 0x6ed   : > { %v2305_v52 = vpop.xlane.xlu0 %2304 }
 0x6ee   : > { %v2306_v20 = vmul.f32 0.00390625, %v2305_v52  ;;  %v4749_v52 = vld [vmem:[#allocation11 + $0xf0] ss:$8 sps:$4 sm:$0xff]  }
 0x6f0   : > { %v2307_v48 = vadd.f32 1e-05, %v2306_v20  ;;  %v4754_v20 = vld [vmem:[#allocation10 + $0x2e4] ss:$8 sps:$4 sm:$0xff]  }
 0x6f2   : > { %4860 = vrsqrt.f32 %v2307_v48  ;;  %v4757_v48 = vld [vmem:[#allocation11 + $0xe4] ss:$8 sps:$4 sm:$0xff]  }
 0x6ff   : > { %v4861_v54 = vpop.eup %4860 }
 0x700   : > { %v2309_v56 = vmul.f32 %v4861_v54, %v6023_v34  ;;  %v2310_v13 = vmul.f32 %v4861_v54, %v6026_v61  ;;  %v4763_v54 = vld [vmem:[#allocation11 + $0xd4] ss:$8 sps:$4 sm:$0xff]  }
 0x702   : > { %v2315_v16 = vmul.f32 %v2312_v33, %v2310_v13  ;;  %v2314_v10 = vmul.f32 %v2309_v56, %v1261_v43  ;;  %v4752_v43 = vld [vmem:[#allocation10 + $0x2e0] ss:$8 sps:$4 sm:$0xff]   ;;  %v4760_v33 = vld [vmem:[#allocation10 + $0x2d4] ss:$8 sps:$4 sm:$0xff]   ;;  %v4758_v56 = vld [vmem:[#allocation10 + $0x2d0] ss:$8 sps:$4 sm:$0xff]  }
 0x703   : > { %v4761_v13 = vld [vmem:[#allocation11 + $0xd0] ss:$8 sps:$4 sm:$0xff]  }
 0x704   : > { %v2320_v42 = vadd.f32 %v2317_v60, %v2315_v16  ;;  %v2319_v31 = vadd.f32 %v2314_v10, %v1262_v14  ;;  %v4755_v14 = vld [vmem:[#allocation11 + $0xe0] ss:$8 sps:$4 sm:$0xff]   ;;  %v4766_v60 = vld [vmem:[#allocation10 + $0x2c4] ss:$8 sps:$4 sm:$0xff]  }
 0x705   : > { %v4769_v16 = vld [vmem:[#allocation11 + $0xc4] ss:$8 sps:$4 sm:$0xff]   ;;  %v4764_v10 = vld [vmem:[#allocation10 + $0x2c0] ss:$8 sps:$4 sm:$0xff]  }
 0x706   : > { %v2322_v59 = vmax.f32 %v2320_v42, 0.0  ;;  %v2321_v17 = vmax.f32 %v2319_v31, 0.0  ;;  %v4767_v42 = vld [vmem:[#allocation11 + $0xc0] ss:$8 sps:$4 sm:$0xff]   ;;  %v4772_v31 = vld [vmem:[#allocation10 + $0x2b4] ss:$8 sps:$4 sm:$0xff]  }
 0x708   : > { %v2324_v47 = vpack.c.bf16 %v2322_v59, %v2322_v59  ;;  %v6039_v5 = vpack.c.bf16 %v2321_v17, %v2321_v17  ;;  %v4775_v59 = vld [vmem:[#allocation11 + $0xb4] ss:$8 sps:$4 sm:$0xff]   ;;  %v4770_v17 = vld [vmem:[#allocation10 + $0x2b0] ss:$8 sps:$4 sm:$0xff]  }
 0x70a   : > { %v2326_v4 = vmul.bf16 %v2324_v47, %v5994_v40  ;;  %v2328_v46 = vmul.bf16 %v2324_v47, %v5996_v39  ;;  %v2325_v34 = vmul.bf16 %v6039_v5, %v5994_v40  ;;  %v2327_v61 = vmul.bf16 %v6039_v5, %v5996_v39  ;;  %v4715_v40 = vld [vmem:[#allocation11 + $0x54] ss:$8 sps:$4 sm:$0xff]   ;;  %v4710_v39 = vld [vmem:[#allocation10 + $0x250] ss:$8 sps:$4 sm:$0xff]  }
 0x70b   : > { %v2330_v57 = vmul.bf16 %v2324_v47, %v6000_v0  ;;  %v4773_v47 = vld [vmem:[#allocation11 + $0xb0] ss:$8 sps:$4 sm:$0xff]  }
 0x70c   : > { %2939 = vmatprep.mubr.bf16.mxu1 %v2326_v4  ;;  %2980 = vmatprep.mubr.bf16.mxu0 %v2328_v46  ;;  %v4778_v4 = vld [vmem:[#allocation10 + $0x2a4] ss:$8 sps:$4 sm:$0xff]  }
 0x70d   : > { %2940 = vmatmul.mubr.bf16.vlgmr.msra.gmra.mxu1 %v2325_v34  ;;  %2981 = vmatmul.mubr.bf16.vlgmr.msra.gmra.mxu0 %v2327_v61  ;;  %v4781_v46 = vld [vmem:[#allocation11 + $0xa4] ss:$8 sps:$4 sm:$0xff]   ;;  %v4784_v34 = vld [vmem:[#allocation10 + $0x294] ss:$8 sps:$4 sm:$0xff]  }
 0x70e   : > { %2990 = vmatpush1.bf16.msra.mxu1 %v4698_v9  ;;  %3226 = vmatpush1.bf16.msra.mxu0 %v4701_v53  ;;  %v4776_v9 = vld [vmem:[#allocation10 + $0x2a0] ss:$8 sps:$4 sm:$0xff]   ;;  %v4787_v61 = vld [vmem:[#allocation11 + $0x94] ss:$8 sps:$4 sm:$0xff]  }
 0x70f   : > { %3021 = vmatprep.mubr.bf16.mxu1 %v2330_v57  ;;  %3257 = vmatprep.mubr.bf16.mxu0 %v5515_v7  ;;  %v4727_v7 = vld [vmem:[#allocation11 + $0x34] ss:$8 sps:$4 sm:$0xff]   ;;  %v4779_v53 = vld [vmem:[#allocation11 + $0xa0] ss:$8 sps:$4 sm:$0xff]   ;;  %v4790_v57 = vld [vmem:[#allocation10 + $0x284] ss:$8 sps:$4 sm:$0xff]  }
 0x710   : > { %2991 = vmatprep.subr.bf16.mxu1 %v4706_v41  ;;  %3227 = vmatprep.subr.bf16.mxu0 %v4709_v55  ;;  %v4782_v41 = vld [vmem:[#allocation10 + $0x290] ss:$8 sps:$4 sm:$0xff]  }
 0x711   : > { %v4785_v55 = vld [vmem:[#allocation11 + $0x90] ss:$8 sps:$4 sm:$0xff]  }
 0x712   : > { %2992 = vmatpush1.bf16.msra.mxu1 %v4704_v3  ;;  %3228 = vmatpush1.bf16.msra.mxu0 %v4707_v38  ;;  %v4793_v3 = vld [vmem:[#allocation11 + $0x84] ss:$8 sps:$4 sm:$0xff]   ;;  %v4788_v38 = vld [vmem:[#allocation10 + $0x280] ss:$8 sps:$4 sm:$0xff]  }
 0x713   : > { %2993 = vmatprep.subr.bf16.mxu1 %v4712_v23  ;;  %3229 = vmatprep.subr.bf16.mxu0 %v4715_v40  ;;  %v4791_v23 = vld [vmem:[#allocation11 + $0x80] ss:$8 sps:$4 sm:$0xff]   ;;  %v2329_v40 = vmul.bf16 %v6039_v5, %v6000_v0 }
 0x714   : > { %v6344_v0 = vld [vmem:[#allocation23_spill] sm:$0xff]  ;;  %v6345_v5 = vld [vmem:[#allocation24_spill] sm:$0xff] }
 0x716   : > { %2994 = vmatpush1.bf16.msra.mxu1 %v4710_v39  ;;  %3230 = vmatpush1.bf16.msra.mxu0 %v4713_v51  ;;  %v6341_v39 = vld [vmem:[#allocation20_spill] sm:$0xff]  ;;  %v6342_v51 = vld [vmem:[#allocation21_spill] sm:$0xff] }
 0x717   : > { %2995 = vmatprep.subr.bf16.mxu1 %v4718_v24  ;;  %3231 = vmatprep.subr.bf16.mxu0 %v4721_v19  ;;  %v6343_v24 = vld [vmem:[#allocation22_spill] sm:$0xff] }
 0x718   : > { %v6352_v19 = vld [vmem:[#allocation30_spill] sm:$0xff] }
 0x71a   : > { %2996 = vmatpush1.bf16.msra.mxu1 %v4716_v11  ;;  %3232 = vmatpush1.bf16.msra.mxu0 %v4719_v28  ;;  %v6353_v11 = vld [vmem:[#allocation33_spill] sm:$0xff]  ;;  %v6354_v28 = vld [vmem:[#allocation32_spill] sm:$0xff] }
 0x71b   : > { %2997 = vmatprep.subr.bf16.mxu1 %v4724_v37  ;;  %3233 = vmatprep.subr.bf16.mxu0 %v4727_v7  ;;  %v6355_v37 = vld [vmem:[#allocation35_spill] sm:$0xff]  ;;  %v6356_v7 = vld [vmem:[#allocation34_spill] sm:$0xff] }
 0x71e   : > { %2998 = vmatpush1.bf16.msra.mxu1 %v4722_v44  ;;  %3234 = vmatpush1.bf16.msra.mxu0 %v4725_v2  ;;  %v6357_v44 = vld [vmem:[#allocation39_spill] sm:$0xff]  ;;  %v6358_v2 = vld [vmem:[#allocation37_spill] sm:$0xff] }
 0x71f   : > { %2999 = vmatprep.subr.bf16.mxu1 %v4730_v62  ;;  %3235 = vmatprep.subr.bf16.mxu0 %v4733_v6  ;;  %v6359_v62 = vld [vmem:[#allocation44_spill] sm:$0xff]  ;;  %v6360_v6 = vld [vmem:[#allocation42_spill] sm:$0xff] }
 0x722   : > { %3000 = vmatpush1.bf16.msra.mxu1 %v4728_v18  ;;  %3236 = vmatpush1.bf16.msra.mxu0 %v4731_v25  ;;  %v6361_v18 = vld [vmem:[#allocation43_spill] sm:$0xff]  ;;  %v6362_v25 = vld [vmem:[#allocation40_spill] sm:$0xff] }
 0x723   : > { %3001 = vmatprep.subr.bf16.mxu1 %v4736_v32  ;;  %3237 = vmatprep.subr.bf16.mxu0 %v4739_v30  ;;  %v6363_v32 = vld [vmem:[#allocation41_spill] sm:$0xff]  ;;  %v6364_v30 = vld [vmem:[#allocation36_spill] sm:$0xff] }
 0x726   : > { %3002 = vmatpush1.bf16.msra.mxu1 %v4734_v15  ;;  %3238 = vmatpush1.bf16.msra.mxu0 %v4737_v45  ;;  %v6365_v15 = vld [vmem:[#allocation38_spill] sm:$0xff] }
 0x727   : > { %3003 = vmatprep.subr.bf16.mxu1 %v4742_v58  ;;  %3239 = vmatprep.subr.bf16.mxu0 %v4745_v12 }
 0x72a   : > { %3004 = vmatpush1.bf16.msra.mxu1 %v4740_v1  ;;  %3240 = vmatpush1.bf16.msra.mxu0 %v4743_v26 }
 0x72b   : > { %3005 = vmatprep.subr.bf16.mxu1 %v4748_v29  ;;  %3241 = vmatprep.subr.bf16.mxu0 %v4751_v27 }
 0x72e   : > { %3006 = vmatpush2.bf16.msra.mxu1 %v4746_v63  ;;  %3242 = vmatpush2.bf16.msra.mxu0 %v4749_v52 }
 0x72f   : > { %3007 = vmatprep.subr.bf16.mxu1 %v4754_v20  ;;  %3243 = vmatprep.subr.bf16.mxu0 %v4757_v48 }
 0x732   : > { %3008 = vmatpush2.bf16.msra.mxu1 %v4752_v43  ;;  %3244 = vmatpush2.bf16.msra.mxu0 %v4755_v14 }
 0x733   : > { %3009 = vmatprep.subr.bf16.mxu1 %v4760_v33  ;;  %3245 = vmatprep.subr.bf16.mxu0 %v4763_v54  ;;  %v1263_v33 = vld [vmem:[%s6253_s10] sm:$0x3] }
 0x736   : > { %3010 = vmatpush2.bf16.msra.mxu1 %v4758_v56  ;;  %3246 = vmatpush2.bf16.msra.mxu0 %v4761_v13 }
 0x737   : > { %3011 = vmatprep.subr.bf16.mxu1 %v4766_v60  ;;  %3247 = vmatprep.subr.bf16.mxu0 %v4769_v16 }
 0x73a   : > { %3012 = vmatpush2.bf16.msra.mxu1 %v4764_v10  ;;  %3248 = vmatpush2.bf16.msra.mxu0 %v4767_v42 }
 0x73b   : > { %3013 = vmatprep.subr.bf16.mxu1 %v4772_v31  ;;  %3249 = vmatprep.subr.bf16.mxu0 %v4775_v59  ;;  %v6366_v59 = vld [vmem:[#allocation19_spill] sm:$0xff] }
 0x73e   : > { %3014 = vmatpush2.bf16.msra.mxu1 %v4770_v17  ;;  %3250 = vmatpush2.bf16.msra.mxu0 %v4773_v47  ;;  %v3048_v17 = vrot.slane %v1263_v33, %v6366_v59 }
 0x73f   : > { %3015 = vmatprep.subr.bf16.mxu1 %v4778_v4  ;;  %3251 = vmatprep.subr.bf16.mxu0 %v4781_v46 }
 0x742   : > { %3016 = vmatpush2.bf16.msra.mxu1 %v4776_v9  ;;  %3252 = vmatpush2.bf16.msra.mxu0 %v4779_v53 }
 0x743   : > { %3017 = vmatprep.subr.bf16.mxu1 %v4784_v34  ;;  %3253 = vmatprep.subr.bf16.mxu0 %v4787_v61  ;;  %v6367_v61 = vsub.s32 1, %v5488_v50 }
 0x746   : > { %3018 = vmatpush2.bf16.msra.mxu1 %v4782_v41  ;;  %3254 = vmatpush2.bf16.msra.mxu0 %v4785_v55  ;;  %v3052_v41 = vrot.slane %v1263_v33, %v6367_v61 }
 0x747   : > { %3019 = vmatprep.subr.bf16.mxu1 %v4790_v57  ;;  %3255 = vmatprep.subr.bf16.mxu0 %v4793_v3 }
 0x74a   : > { %3020 = vmatpush2.bf16.msra.mxu1 %v4788_v38  ;;  %3256 = vmatpush2.bf16.msra.mxu0 %v4791_v23 }
 0x74d   : > { %3022 = vmatmul.mubr.bf16.vlgmr.msra.gmra.mxu1 %v2329_v40  ;;  %3258 = vmatmul.mubr.bf16.vlgmr.msra.gmra.mxu0 %v5517_v8  ;;  %v6346_v8 = vld [vmem:[#allocation25_spill] sm:$0xff] }
 0x74e   : > { %3267 = vmatprep.mubr.bf16.mxu0 %v5533_v21  ;;  %v6347_v21 = vld [vmem:[#allocation26_spill] sm:$0xff] }
 0x755   : > { %3268 = vmatmul.mubr.bf16.gmra.mxu0 %v5535_v22  ;;  %v6348_v22 = vld [vmem:[#allocation28_spill] sm:$0xff] }
 0x756   : > { %3277 = vmatprep.mubr.bf16.mxu0 %v5551_v35  ;;  %v6349_v35 = vld [vmem:[#allocation29_spill] sm:$0xff] }
 0x75d   : > { %3278 = vmatmul.mubr.bf16.gmra.mxu0 %v5553_v36  ;;  %v6350_v36 = vld [vmem:[#allocation27_spill] sm:$0xff] }
 0x75e   : > { %3287 = vmatprep.mubr.bf16.mxu0 %v5569_v49  ;;  %v6351_v49 = vld [vmem:[#allocation31_spill] sm:$0xff] }
 0x765   : > { %3288 = vmatmul.mubr.bf16.gmra.mxu0 %v6341_v39 }
 0x766   : > { %3297 = vmatprep.mubr.bf16.mxu0 %v6342_v51 }
 0x76d   : > { %3298 = vmatmul.mubr.bf16.gmra.mxu0 %v6343_v24 }
 0x76e   : > { %3307 = vmatprep.mubr.bf16.mxu0 %v6344_v0 }
 0x775   : > { %3308 = vmatmul.mubr.bf16.gmra.mxu0 %v6345_v5 }
 0x776   : > { %3317 = vmatprep.mubr.bf16.mxu0 %v6346_v8 }
 0x77d   : > { %3318 = vmatmul.mubr.bf16.gmra.mxu0 %v6347_v21 }
 0x77e   : > { %3327 = vmatprep.mubr.bf16.mxu0 %v6348_v22 }
 0x785   : > { %3328 = vmatmul.mubr.bf16.gmra.mxu0 %v6349_v35 }
 0x786   : > { %3337 = vmatprep.mubr.bf16.mxu0 %v6350_v36 }
 0x78d   : > { %3338 = vmatmul.mubr.bf16.gmra.mxu0 %v6351_v49 }
 0x78e   : > { %3347 = vmatprep.mubr.bf16.mxu0 %v6352_v19 }
 0x795   : > { %3348 = vmatmul.mubr.bf16.gmra.mxu0 %v6353_v11 }
 0x796   : > { %3357 = vmatprep.mubr.bf16.mxu0 %v6354_v28 }
 0x79d   : > { %3358 = vmatmul.mubr.bf16.gmra.mxu0 %v6355_v37 }
 0x79e   : > { %3367 = vmatprep.mubr.bf16.mxu0 %v6356_v7 }
 0x7a5   : > { %3368 = vmatmul.mubr.bf16.gmra.mxu0 %v6357_v44 }
 0x7a6   : > { %3377 = vmatprep.mubr.bf16.mxu0 %v6358_v2 }
 0x7ad   : > { %3378 = vmatmul.mubr.bf16.gmra.mxu0 %v6359_v62 }
 0x7ae   : > { %3387 = vmatprep.mubr.bf16.mxu0 %v6360_v6 }
 0x7b5   : > { %3388 = vmatmul.mubr.bf16.gmra.mxu0 %v6361_v18 }
 0x7b6   : > { %3397 = vmatprep.mubr.bf16.mxu0 %v6362_v25 }
 0x7bd   : > { %3398 = vmatmul.mubr.bf16.gmra.mxu0 %v6363_v32 }
 0x7be   : > { %3407 = vmatprep.mubr.bf16.mxu0 %v6364_v30 }
 0x7c5   : > { %3408 = vmatmul.mubr.bf16.gmra.mxu0 %v6365_v15 }
 0x7cd   : > { %v2941_v45 = vpop.f32.mrf.mxu1  ;;  %v2982_v58 = vpop.f32.mrf.mxu0 }
 0x7ce   : > { %v2983_v12 = vadd.f32 %v2982_v58, %v2941_v45 }
 0x7cf   : > { %v2943_v1 = vpop.f32.mrf.mxu1  ;;  %v2984_v26 = vpop.f32.mrf.mxu0 }
 0x7d0   : > { %v2985_v43 = vadd.f32 %v2984_v26, %v2943_v1 }
 0x7d1   : > { %v2945_v29 = vpop.f32.mrf.mxu1  ;;  %v2986_v27 = vpop.f32.mrf.mxu0 }
 0x7d3   : > { %v2946_v63 = vpop.f32.mrf.mxu1  ;;  %v2987_v52 = vpop.f32.mrf.mxu0 }
 0x80d   : > { %v3023_v20 = vpop.f32.mrf.mxu1  ;;  %v3259_v48 = vpop.f32.mrf.mxu0 }
 0x80e   : > { %v3024_v14 = vadd.f32 %v3023_v20, %v2983_v12 }
 0x80f   : > { %v3025_v54 = vpop.f32.mrf.mxu1  ;;  %v3261_v56 = vpop.f32.mrf.mxu0 }
 0x810   : > { %v3032_v13 = vrot.slane %v3024_v14, 1  ;;  %v3026_v60 = vadd.f32 %v3025_v54, %v2985_v43  ;;  %v3038_v31 = vrot.slane %v3024_v14, 2 }
 0x811   : > { %v3027_v16 = vpop.f32.mrf.mxu1  ;;  %v3263_v10 = vpop.f32.mrf.mxu0 }
 0x812   : > { %v3036_v42 = vadd.f32 %v3032_v13, %v3024_v14  ;;  %v3033_v47 = vrot.slane %v3026_v60, 1  ;;  %v3039_v34 = vrot.slane %v3026_v60, 2 }
 0x813   : > { %v3028_v4 = vpop.f32.mrf.mxu1  ;;  %v3265_v46 = vpop.f32.mrf.mxu0 }
 0x814   : > { %v3042_v9 = vadd.f32 %v3038_v31, %v3036_v42  ;;  %v3037_v53 = vadd.f32 %v3033_v47, %v3026_v60 }
 0x815   : > { %v3269_v55 = vpop.f32.mrf.mxu0 }
 0x816   : > { %v3055_v57 = vadd.f32 %v3048_v17, %v3042_v9  ;;  %v3043_v3 = vadd.f32 %v3039_v34, %v3037_v53 }
 0x817   : > { %v3271_v38 = vpop.f32.mrf.mxu0 }
 0x818   : > { %v6089_v23 = vrot.slane %v3055_v57, %v6366_v59  ;;  %v3056_v40 = vadd.f32 %v3052_v41, %v3043_v3 }
 0x819   : > { %v3273_v39 = vpop.f32.mrf.mxu0 }
 0x81a   : > { %v6092_v51 = vrot.slane %v3056_v40, %v6366_v59  ;;  %v3260_v24 = vadd.f32 %v3259_v48, %v6089_v23  ;;  %v3264_v0 = vadd.f32 %v3263_v10, %v6089_v23  ;;  %v3270_v50 = vadd.f32 %v3269_v55, %v6089_v23 }
 0x81b   : > { %v3274_v5 = vadd.f32 %v3273_v39, %v6089_v23  ;;  %v3275_v8 = vpop.f32.mrf.mxu0 }
 0x81c   : > { %v3262_v21 = vadd.f32 %v3261_v56, %v6092_v51  ;;  %v3266_v22 = vadd.f32 %v3265_v46, %v6092_v51  ;;  %v3272_v35 = vadd.f32 %v3271_v38, %v6092_v51  ;;  %v3276_v36 = vadd.f32 %v3275_v8, %v6092_v51 }
 0x81d   : > { %v3279_v49 = vpop.f32.mrf.mxu0 }
 0x81e   : > { %v4109_v19 = vpack.c.bf16 %v3262_v21, %v3260_v24  ;;  %v4110_v11 = vpack.c.bf16 %v3266_v22, %v3264_v0  ;;  %v4111_v28 = vpack.c.bf16 %v3272_v35, %v3270_v50  ;;  %v4112_v37 = vpack.c.bf16 %v3276_v36, %v3274_v5 }
 0x81f   : > { %v3281_v7 = vpop.f32.mrf.mxu0  ;;  %v3280_v44 = vadd.f32 %v3279_v49, %v6089_v23 }
 0x820   : > { %3610 = vst [vmem:[%s6103_s29] sm:$0xff] %v4109_v19  ;;  %3611 = vst [vmem:[%s6103_s29 + $0x8] sm:$0xff] %v4110_v11  ;;  %v3282_v2 = vadd.f32 %v3281_v7, %v6092_v51 }
 0x821   : > { %3612 = vst [vmem:[%s6103_s29 + $0x10] sm:$0xff] %v4111_v28  ;;  %3613 = vst [vmem:[%s6103_s29 + $0x18] sm:$0xff] %v4112_v37  ;;  %v3283_v62 = vpop.f32.mrf.mxu0 }
 0x822   : > { %v4113_v6 = vpack.c.bf16 %v3282_v2, %v3280_v44  ;;  %v3284_v25 = vadd.f32 %v3283_v62, %v6089_v23 }
 0x823   : > { %v3285_v18 = vpop.f32.mrf.mxu0 }
 0x824   : > { %3614 = vst [vmem:[%s6103_s29 + $0x20] sm:$0xff] %v4113_v6  ;;  %v3286_v32 = vadd.f32 %v3285_v18, %v6092_v51 }
 0x825   : > { %v3289_v30 = vpop.f32.mrf.mxu0 }
 0x826   : > { %v4114_v15 = vpack.c.bf16 %v3286_v32, %v3284_v25  ;;  %v3290_v58 = vadd.f32 %v3289_v30, %v6089_v23 }
 0x827   : > { %v3291_v45 = vpop.f32.mrf.mxu0 }
 0x828   : > { %3615 = vst [vmem:[%s6103_s29 + $0x28] sm:$0xff] %v4114_v15  ;;  %v3292_v12 = vadd.f32 %v3291_v45, %v6092_v51 }
 0x829   : > { %v3293_v1 = vpop.f32.mrf.mxu0 }
 0x82a   : > { %v4115_v26 = vpack.c.bf16 %v3292_v12, %v3290_v58  ;;  %v3294_v27 = vadd.f32 %v3293_v1, %v6089_v23 }
 0x82b   : > { %v3295_v29 = vpop.f32.mrf.mxu0 }
 0x82c   : > { %3616 = vst [vmem:[%s6103_s29 + $0x30] sm:$0xff] %v4115_v26  ;;  %v3296_v63 = vadd.f32 %v3295_v29, %v6092_v51 }
 0x82d   : > { %v3299_v52 = vpop.f32.mrf.mxu0 }
 0x82e   : > { %v4116_v20 = vpack.c.bf16 %v3296_v63, %v3294_v27  ;;  %v3300_v43 = vadd.f32 %v3299_v52, %v6089_v23 }
 0x82f   : > { %v3301_v48 = vpop.f32.mrf.mxu0 }
 0x830   : > { %3617 = vst [vmem:[%s6103_s29 + $0x38] sm:$0xff] %v4116_v20  ;;  %v3302_v14 = vadd.f32 %v3301_v48, %v6092_v51 }
 0x831   : > { %v3303_v33 = vpop.f32.mrf.mxu0 }
 0x832   : > { %v4117_v54 = vpack.c.bf16 %v3302_v14, %v3300_v43  ;;  %v3304_v13 = vadd.f32 %v3303_v33, %v6089_v23 }
 0x833   : > { %v3305_v56 = vpop.f32.mrf.mxu0 }
 0x834   : > { %3618 = vst [vmem:[%s6103_s29 + $0x40] sm:$0xff] %v4117_v54  ;;  %v3306_v60 = vadd.f32 %v3305_v56, %v6092_v51 }
 0x835   : > { %v3309_v16 = vpop.f32.mrf.mxu0 }
 0x836   : > { %v4118_v10 = vpack.c.bf16 %v3306_v60, %v3304_v13  ;;  %v3310_v31 = vadd.f32 %v3309_v16, %v6089_v23 }
 0x837   : > { %v3311_v42 = vpop.f32.mrf.mxu0 }
 0x838   : > { %3619 = vst [vmem:[%s6103_s29 + $0x48] sm:$0xff] %v4118_v10  ;;  %v3312_v59 = vadd.f32 %v3311_v42, %v6092_v51 }
 0x839   : > { %v3313_v17 = vpop.f32.mrf.mxu0 }
 0x83a   : > { %v4119_v47 = vpack.c.bf16 %v3312_v59, %v3310_v31  ;;  %v3314_v46 = vadd.f32 %v3313_v17, %v6089_v23 }
 0x83b   : > { %v3315_v4 = vpop.f32.mrf.mxu0 }
 0x83c   : > { %3620 = vst [vmem:[%s6103_s29 + $0x50] sm:$0xff] %v4119_v47  ;;  %v3316_v9 = vadd.f32 %v3315_v4, %v6092_v51 }
 0x83d   : > { %v3319_v53 = vpop.f32.mrf.mxu0 }
 0x83e   : > { %v4120_v34 = vpack.c.bf16 %v3316_v9, %v3314_v46  ;;  %v3320_v41 = vadd.f32 %v3319_v53, %v6089_v23 }
 0x83f   : > { %v3321_v61 = vpop.f32.mrf.mxu0 }
 0x840   : > { %3621 = vst [vmem:[%s6103_s29 + $0x58] sm:$0xff] %v4120_v34  ;;  %v3322_v55 = vadd.f32 %v3321_v61, %v6092_v51 }
 0x841   : > { %v3323_v57 = vpop.f32.mrf.mxu0 }
 0x842   : > { %v4121_v3 = vpack.c.bf16 %v3322_v55, %v3320_v41  ;;  %v3324_v40 = vadd.f32 %v3323_v57, %v6089_v23 }
 0x843   : > { %v3325_v38 = vpop.f32.mrf.mxu0 }
 0x844   : > { %3622 = vst [vmem:[%s6103_s29 + $0x60] sm:$0xff] %v4121_v3  ;;  %v3326_v39 = vadd.f32 %v3325_v38, %v6092_v51 }
 0x845   : > { %v3329_v24 = vpop.f32.mrf.mxu0 }
 0x846   : > { %v4122_v0 = vpack.c.bf16 %v3326_v39, %v3324_v40  ;;  %v3330_v5 = vadd.f32 %v3329_v24, %v6089_v23 }
 0x847   : > { %v3331_v50 = vpop.f32.mrf.mxu0 }
 0x848   : > { %3623 = vst [vmem:[%s6103_s29 + $0x68] sm:$0xff] %v4122_v0  ;;  %v3332_v8 = vadd.f32 %v3331_v50, %v6092_v51 }
 0x849   : > { %v3333_v21 = vpop.f32.mrf.mxu0 }
 0x84a   : > { %v4123_v22 = vpack.c.bf16 %v3332_v8, %v3330_v5  ;;  %v3334_v36 = vadd.f32 %v3333_v21, %v6089_v23 }
 0x84b   : > { %v3335_v35 = vpop.f32.mrf.mxu0 }
 0x84c   : > { %3624 = vst [vmem:[%s6103_s29 + $0x70] sm:$0xff] %v4123_v22  ;;  %v3336_v49 = vadd.f32 %v3335_v35, %v6092_v51 }
 0x84d   : > { %v3339_v19 = vpop.f32.mrf.mxu0 }
 0x84e   : > { %v4124_v11 = vpack.c.bf16 %v3336_v49, %v3334_v36  ;;  %v3340_v37 = vadd.f32 %v3339_v19, %v6089_v23 }
 0x84f   : > { %v3341_v28 = vpop.f32.mrf.mxu0 }
 0x850   : > { %3625 = vst [vmem:[%s6103_s29 + $0x78] sm:$0xff] %v4124_v11  ;;  %v3342_v7 = vadd.f32 %v3341_v28, %v6092_v51 }
 0x851   : > { %v3343_v44 = vpop.f32.mrf.mxu0 }
 0x852   : > { %v4125_v2 = vpack.c.bf16 %v3342_v7, %v3340_v37  ;;  %v3344_v6 = vadd.f32 %v3343_v44, %v6089_v23 }
 0x853   : > { %v3345_v62 = vpop.f32.mrf.mxu0 }
 0x854   : > { %3626 = vst [vmem:[%s6103_s29 + $0x80] sm:$0xff] %v4125_v2  ;;  %v3346_v18 = vadd.f32 %v3345_v62, %v6092_v51 }
 0x855   : > { %v3349_v25 = vpop.f32.mrf.mxu0 }
 0x856   : > { %v4126_v32 = vpack.c.bf16 %v3346_v18, %v3344_v6  ;;  %v3350_v15 = vadd.f32 %v3349_v25, %v6089_v23 }
 0x857   : > { %v3351_v30 = vpop.f32.mrf.mxu0 }
 0x858   : > { %3627 = vst [vmem:[%s6103_s29 + $0x88] sm:$0xff] %v4126_v32  ;;  %v3352_v45 = vadd.f32 %v3351_v30, %v6092_v51 }
 0x859   : > { %v3353_v58 = vpop.f32.mrf.mxu0 }
 0x85a   : > { %v4127_v12 = vpack.c.bf16 %v3352_v45, %v3350_v15  ;;  %v3354_v26 = vadd.f32 %v3353_v58, %v6089_v23 }
 0x85b   : > { %v3355_v1 = vpop.f32.mrf.mxu0 }
 0x85c   : > { %3628 = vst [vmem:[%s6103_s29 + $0x90] sm:$0xff] %v4127_v12  ;;  %v3356_v29 = vadd.f32 %v3355_v1, %v6092_v51 }
 0x85d   : > { %v3359_v27 = vpop.f32.mrf.mxu0 }
 0x85e   : > { %v4128_v63 = vpack.c.bf16 %v3356_v29, %v3354_v26  ;;  %v3360_v20 = vadd.f32 %v3359_v27, %v6089_v23 }
 0x85f   : > { %v3361_v52 = vpop.f32.mrf.mxu0 }
 0x860   : > { %3629 = vst [vmem:[%s6103_s29 + $0x98] sm:$0xff] %v4128_v63  ;;  %v3362_v48 = vadd.f32 %v3361_v52, %v6092_v51 }
 0x861   : > { %v3363_v43 = vpop.f32.mrf.mxu0 }
 0x862   : > { %v4129_v14 = vpack.c.bf16 %v3362_v48, %v3360_v20  ;;  %v3364_v54 = vadd.f32 %v3363_v43, %v6089_v23 }
 0x863   : > { %v3365_v33 = vpop.f32.mrf.mxu0 }
 0x864   : > { %3630 = vst [vmem:[%s6103_s29 + $0xa0] sm:$0xff] %v4129_v14  ;;  %v3366_v56 = vadd.f32 %v3365_v33, %v6092_v51 }
 0x865   : > { %v3369_v13 = vpop.f32.mrf.mxu0 }
 0x866   : > { %v4130_v60 = vpack.c.bf16 %v3366_v56, %v3364_v54  ;;  %v3370_v10 = vadd.f32 %v3369_v13, %v6089_v23 }
 0x867   : > { %v3371_v16 = vpop.f32.mrf.mxu0 }
 0x868   : > { %3631 = vst [vmem:[%s6103_s29 + $0xa8] sm:$0xff] %v4130_v60  ;;  %v3372_v42 = vadd.f32 %v3371_v16, %v6092_v51 }
 0x869   : > { %v3373_v31 = vpop.f32.mrf.mxu0 }
 0x86a   : > { %v4131_v59 = vpack.c.bf16 %v3372_v42, %v3370_v10  ;;  %v3374_v47 = vadd.f32 %v3373_v31, %v6089_v23 }
 0x86b   : > { %v3375_v17 = vpop.f32.mrf.mxu0 }
 0x86c   : > { %3632 = vst [vmem:[%s6103_s29 + $0xb0] sm:$0xff] %v4131_v59  ;;  %v3376_v4 = vadd.f32 %v3375_v17, %v6092_v51 }
 0x86d   : > { %v3379_v46 = vpop.f32.mrf.mxu0 }
 0x86e   : > { %v4132_v9 = vpack.c.bf16 %v3376_v4, %v3374_v47  ;;  %v3380_v34 = vadd.f32 %v3379_v46, %v6089_v23 }
 0x86f   : > { %v3381_v53 = vpop.f32.mrf.mxu0 }
 0x870   : > { %3633 = vst [vmem:[%s6103_s29 + $0xb8] sm:$0xff] %v4132_v9  ;;  %v3382_v61 = vadd.f32 %v3381_v53, %v6092_v51 }
 0x871   : > { %v3383_v41 = vpop.f32.mrf.mxu0 }
 0x872   : > { %v4133_v55 = vpack.c.bf16 %v3382_v61, %v3380_v34  ;;  %v3384_v3 = vadd.f32 %v3383_v41, %v6089_v23 }
 0x873   : > { %v3385_v57 = vpop.f32.mrf.mxu0 }
 0x874   : > { %3634 = vst [vmem:[%s6103_s29 + $0xc0] sm:$0xff] %v4133_v55  ;;  %v3386_v38 = vadd.f32 %v3385_v57, %v6092_v51 }
 0x875   : > { %v3389_v40 = vpop.f32.mrf.mxu0 }
 0x876   : > { %v4134_v39 = vpack.c.bf16 %v3386_v38, %v3384_v3  ;;  %v3390_v0 = vadd.f32 %v3389_v40, %v6089_v23 }
 0x877   : > { %v3391_v24 = vpop.f32.mrf.mxu0 }
 0x878   : > { %3635 = vst [vmem:[%s6103_s29 + $0xc8] sm:$0xff] %v4134_v39  ;;  %v3392_v50 = vadd.f32 %v3391_v24, %v6092_v51 }
 0x879   : > { %v3393_v5 = vpop.f32.mrf.mxu0 }
 0x87a   : > { %v4135_v8 = vpack.c.bf16 %v3392_v50, %v3390_v0  ;;  %v3394_v22 = vadd.f32 %v3393_v5, %v6089_v23 }
 0x87b   : > { %v3395_v21 = vpop.f32.mrf.mxu0 }
 0x87c   : > { %3636 = vst [vmem:[%s6103_s29 + $0xd0] sm:$0xff] %v4135_v8  ;;  %v3396_v35 = vadd.f32 %v3395_v21, %v6092_v51 }
 0x87d   : > { %v3399_v36 = vpop.f32.mrf.mxu0 }
 0x87e   : > { %v4136_v49 = vpack.c.bf16 %v3396_v35, %v3394_v22  ;;  %v3400_v11 = vadd.f32 %v3399_v36, %v6089_v23 }
 0x87f   : > { %v3401_v19 = vpop.f32.mrf.mxu0 }
 0x880   : > { %3637 = vst [vmem:[%s6103_s29 + $0xd8] sm:$0xff] %v4136_v49  ;;  %v3402_v28 = vadd.f32 %v3401_v19, %v6092_v51 }
 0x881   : > { %v3403_v37 = vpop.f32.mrf.mxu0 }
 0x882   : > { %v4137_v7 = vpack.c.bf16 %v3402_v28, %v3400_v11  ;;  %v3404_v2 = vadd.f32 %v3403_v37, %v6089_v23 }
 0x883   : > { %v3405_v44 = vpop.f32.mrf.mxu0 }
 0x884   : > { %3638 = vst [vmem:[%s6103_s29 + $0xe0] sm:$0xff] %v4137_v7  ;;  %v3406_v62 = vadd.f32 %v3405_v44, %v6092_v51 }
 0x885   : > { %v3409_v6 = vpop.f32.mrf.mxu0 }
 0x886   : > { %v4138_v18 = vpack.c.bf16 %v3406_v62, %v3404_v2  ;;  %v3410_v32 = vadd.f32 %v3409_v6, %v6089_v23 }
 0x887   : > { %v3411_v25 = vpop.f32.mrf.mxu0 }
 0x888   : > { %3639 = vst [vmem:[%s6103_s29 + $0xe8] sm:$0xff] %v4138_v18  ;;  %v3412_v30 = vadd.f32 %v3411_v25, %v6092_v51 }
 0x889   : > { %v3413_v15 = vpop.f32.mrf.mxu0 }
 0x88a   : > { %v4139_v45 = vpack.c.bf16 %v3412_v30, %v3410_v32  ;;  %v3414_v12 = vadd.f32 %v3413_v15, %v6089_v23 }
 0x88b   : > { %v3415_v58 = vpop.f32.mrf.mxu0 }
 0x88c   : > { %3640 = vst [vmem:[%s6103_s29 + $0xf0] sm:$0xff] %v4139_v45  ;;  %v3416_v1 = vadd.f32 %v3415_v58, %v6092_v51 }
 0x88e   : > { %v4140_v26 = vpack.c.bf16 %v3416_v1, %v3414_v12 }
 0x890   : > { %3641 = vst [vmem:[%s6103_s29 + $0xf8] sm:$0xff] %v4140_v26 }
 0x891   : > { %5033 = shalt.err (!%p5030_p13)
}
 0x892   : > { %s5034_s4 = scalar_lea.hbm %s6197_s12, 4096  ;;  %s5038_s14 = scalar_lea.hbm %s6254_s11, 8192 }
 0x893   : > { %p5035_p6 = scmp.ne.s32.totalorder %s6197_s12, %s5034_s4  ;;  %p5039_p8 = scmp.lt.s32.totalorder %s6197_s12, %s6254_s11 }
 0x894   : > { %p5040_p9 = scmp.lt.s32.totalorder %s5038_s14, %s5034_s4 }
 0x895   : > { %p5036_p3 = pnand %p5035_p6, %p6368_p12 }
 0x896   : > { %p5041_p10 = por %p5040_p9, %p5039_p8 }
 0x897   : > { %p5037_p0 = pneg %p5036_p3 }
 0x899   : > { %p5042_p11 = pnand %p5041_p10, %p5037_p0 }
 0x89b   : > { %5045 = shalt.err (!%p5042_p11)
}
 0x89c   : > { %s5112_s26 = smov 128   ;;  %s5113_s6 = smov 8  }
 0x89d   : > { %4314 = dma.vmem_to_hbm [thread:$0]  (%p6368_p12), %s6199_s27, 4096, %s6197_s12, %s3643_s23, %s5112_s26, %s5112_s26, %s5113_s6  }
 0x89e PF: > { %s3671_s9 = sand.u32 1, %s5084_s17   ;;  %p6369_p1 = scmp.ne.s32.totalorder %s6304_s16, 0 }
 0x89f   : > { %p6370_p4 = scmp.ge.s32.totalorder %s5096_s20, 2  ;;  %s3672_s13 = scalar_lea.sflag [#allocation4], %s3671_s9 }
 0x8a1   : > { %p4337_p2 = pnand %p6370_p4, %p6369_p1 }
 0x8a3   : > { %p4338_p5 = pneg %p4337_p2 }
 0x8a5   : > { %5079 = dma.done.wait (%p4338_p5), %s3672_s13, 4096  }
 0x8a6   : > { %5081 = vsyncadd (%p4338_p5), %s3672_s13, 4294963200  ;;  %p27_p7 = scmp.ge.s32.totalorder %s5272_s30, 4   ;;  %s6371_s17 = smov %s5088_s18 }
 0x8a7   : > { %s6372_s18 = smov %s5092_s19  ;;  %s6373_s19 = smov %s5284_s21 }
 0x8a8   : > { %s6374_s20 = smov %s5272_s30  ;;  %29 = sbr.rel (!%p27_p7) target bundleno = 14 (0xe), region = 129 }
 0x8ad   :  { %3677 = vsyncpa [#allocation3], 1 }
 0x8ae   :  { %3679 = vsyncpa [#allocation3 + $0x1], 1 }
 0x8af   :  { %3680 = vsyncpa [#allocation6], 1 }
 0x8b0   :  { %3681 = vsyncpa [#allocation9], 1 }
 0x8b1   :  { %3682 = vsyncpa [#allocation12], 1 }
 0x8b2   :  { %3683 = vsyncpa [#allocation4], 1 }
 0x8b3   :  { %3685 = vsyncpa [#allocation4 + $0x1], 1 }

</bundles_post_ra>
